<compile_context>
chip_gen: v7x
topology: tpu7x:2x2x1
jax: 0.10.0
libtpu: 0.0.40
codegen_flags: <defaults>
</compile_context>

<pallas_src>
import functools

import jax
import jax.numpy as jnp
from jax.experimental import pallas as pl
from jax.experimental.pallas import tpu as pltpu


def time_embedding_kernel(t_ref, sincos_ref, w1_ref, b1_ref, w2_ref, b2_ref,
                          out_ref):
    # t_ref:      (TILE_B, 1)     f32 timesteps for this grid step
    # sincos_ref: (2, DIM_P)      f32; row 0 = freqs tiled twice, row 1 = phase
    #                             ([0]*half ++ [pi/2]*half).  sin(x + pi/2) == cos(x)
    #                             reproduces cat([sin, cos], dim=1) w/o a concat.
    # w1_ref:     (DIM_P, HID_P)  bf16 (or f32);  b1_ref: (1, HID_P) f32
    # w2_ref:     (HID_P, DIM_P)  bf16 (or f32);  b2_ref: (1, DIM_P) f32
    # out_ref:    (TILE_B, DIM_P) f32
    t = t_ref[...]
    freqs = sincos_ref[0:1, :]
    phase = sincos_ref[1:2, :]
    # Keep the sinusoid in f32: t*freqs reaches ~1e3, bf16 argument precision would
    # wreck the embedding.  This (EUP sin + VPU) is the expected per-step bottleneck
    # at small dim, not the MXU.
    emb = jnp.sin(t * freqs + phase)                                  # (TILE_B, DIM_P)

    w1 = w1_ref[...]
    h = jnp.dot(emb.astype(w1.dtype), w1, preferred_element_type=jnp.float32)
    h = jnp.maximum(h + b1_ref[...], 0.0)                             # (TILE_B, HID_P)

    w2 = w2_ref[...]
    out = jnp.dot(h.astype(w2.dtype), w2, preferred_element_type=jnp.float32)
    out_ref[...] = out + b2_ref[...]


def _round_up(x, m):
    return (x + m - 1) // m * m


def _pad_2d(x, rows, cols):
    return jnp.pad(x, ((0, rows - x.shape[0]), (0, cols - x.shape[1])))


def time_embedding(t, w1, b1, w2, b2, *, tile_b=512, use_bf16_matmul=True):
    """t: (B,) timesteps. Returns (B, dim) float32, matching the PyTorch module."""
    B = t.shape[0]
    dim, hidden = w1.shape
    assert hidden == 4 * dim and w2.shape == (hidden, dim)
    assert b1.shape == (hidden,) and b2.shape == (dim,)
    assert dim % 2 == 0, "sinusoidal time embedding requires an even dim"
    half = dim // 2

    # Lane-dense feature padding (multiples of 128) -> unmasked vst + full MXU-N.
    dim_p = _round_up(dim, 128)
    hid_p = _round_up(hidden, 128)

    # Batch tiling: fat tiles (multiple of 8) amortize per-step overhead; ensure at
    # least 2 grid steps when the batch allows so the "parallel" axis can shard
    # across both v7x TensorCores.
    padded_b0 = _round_up(B, 8)
    tile_b = _round_up(max(8, min(tile_b, padded_b0)), 8)
    if padded_b0 // tile_b < 2 and padded_b0 >= 16:
        tile_b = _round_up(-(-padded_b0 // 2), 8)
    padded_b = _round_up(B, tile_b)
    grid = (padded_b // tile_b,)

    t_pad = jnp.pad(t.astype(jnp.float32), (0, padded_b - B)).reshape(padded_b, 1)

    # Hoisted sinusoidal constants.  Padded columns get freq=0, phase=0 -> emb=0.
    freqs = jnp.exp(
        jnp.arange(half, dtype=jnp.float32) * (-jnp.log(jnp.float32(10000.0)) / half)
    )
    freqs_full = jnp.tile(freqs, 2).reshape(1, dim)
    phase = jnp.concatenate(
        [jnp.zeros((half,), jnp.float32), jnp.full((half,), jnp.pi / 2, jnp.float32)]
    ).reshape(1, dim)
    sincos = _pad_2d(jnp.concatenate([freqs_full, phase], axis=0), 2, dim_p)

    w_dtype = jnp.bfloat16 if use_bf16_matmul else jnp.float32
    w1_p = _pad_2d(w1.astype(jnp.float32), dim_p, hid_p).astype(w_dtype)
    w2_p = _pad_2d(w2.astype(jnp.float32), hid_p, dim_p).astype(w_dtype)
    b1_p = _pad_2d(b1.astype(jnp.float32).reshape(1, hidden), 1, hid_p)
    b2_p = _pad_2d(b2.astype(jnp.float32).reshape(1, dim), 1, dim_p)

    # VMEM budget: weights/consts single-buffered (Buffered(1)), t/out tiles
    # double-buffered, plus the f32 emb/h working set.  2x headroom, capped so the
    # same wrapper stays valid on v7x's 64 MiB VMEM.
    w_bytes = (dim_p * hid_p + hid_p * dim_p) * jnp.dtype(w_dtype).itemsize
    const_bytes = (2 * dim_p + hid_p + dim_p) * 4
    io_bytes = 2 * (tile_b * 1 * 4 + tile_b * dim_p * 4)
    act_bytes = tile_b * (hid_p + dim_p) * 4
    vmem_limit = int(
        max(32 << 20,
            min(2 * (w_bytes + const_bytes + io_bytes + act_bytes) + (4 << 20),
                64 << 20)))

    # Resident (grid-invariant) operands: constant index_map + single buffer.
    resident = functools.partial(pl.BlockSpec, pipeline_mode=pl.Buffered(1))

    cost = pl.CostEstimate(
        flops=2 * padded_b * (dim_p * hid_p + hid_p * dim_p),
        transcendentals=padded_b * dim_p,
        bytes_accessed=int(padded_b * 4 + padded_b * dim_p * 4 + w_bytes
                           + const_bytes),
    )

    out = pl.pallas_call(
        time_embedding_kernel,
        out_shape=jax.ShapeDtypeStruct((padded_b, dim_p), jnp.float32),
        grid_spec=pltpu.PrefetchScalarGridSpec(
            num_scalar_prefetch=0,
            grid=grid,
            in_specs=[
                pl.BlockSpec((tile_b, 1), lambda i: (i, 0)),   # t           (tiled)
                resident((2, dim_p), lambda i: (0, 0)),        # freqs/phase (resident)
                resident((dim_p, hid_p), lambda i: (0, 0)),    # w1          (resident)
                resident((1, hid_p), lambda i: (0, 0)),        # b1          (resident)
                resident((hid_p, dim_p), lambda i: (0, 0)),    # w2          (resident)
                resident((1, dim_p), lambda i: (0, 0)),        # b2          (resident)
            ],
            out_specs=pl.BlockSpec((tile_b, dim_p), lambda i: (i, 0)),
        ),
        compiler_params=pltpu.CompilerParams(
            dimension_semantics=("parallel",),  # batch tiles shard across v7x TCs
            vmem_limit_bytes=vmem_limit,
        ),
        cost_estimate=cost,
    )(t_pad, sincos, w1_p, b1_p, w2_p, b2_p)

    return out[:B, :dim]


def reference(t, w1, b1, w2, b2, *, matmul_dtype=jnp.float32):
    """Pure-JAX mirror of the PyTorch forward (cat of sin/cos, then the MLP)."""
    dim = w1.shape[0]
    half = dim // 2
    freqs = jnp.exp(jnp.arange(half, dtype=jnp.float32) * (-jnp.log(10000.0) / half))
    emb = t.astype(jnp.float32)[:, None] * freqs[None, :]
    emb = jnp.concatenate([jnp.sin(emb), jnp.cos(emb)], axis=1)
    h = jnp.dot(emb.astype(matmul_dtype), w1.astype(matmul_dtype),
                preferred_element_type=jnp.float32) + b1
    h = jnp.maximum(h, 0.0)
    return jnp.dot(h.astype(matmul_dtype), w2.astype(matmul_dtype),
                   preferred_element_type=jnp.float32) + b2


def _make_params(key, dim):
    hidden = dim * 4
    k_w1, k_b1, k_w2, k_b2 = jax.random.split(key, 4)
    w1 = jax.random.normal(k_w1, (dim, hidden), jnp.float32) * 0.05
    b1 = jax.random.normal(k_b1, (hidden,), jnp.float32) * 0.01
    w2 = jax.random.normal(k_w2, (hidden, dim), jnp.float32) * 0.05
    b2 = jax.random.normal(k_b2, (dim,), jnp.float32) * 0.01
    return w1, b1, w2, b2


if __name__ == "__main__":
    key = jax.random.PRNGKey(0)
    k1, k2, kt1, kt2 = jax.random.split(key, 4)

    # Case 1: lane-dense dim (typical diffusion time-embedding width).  B=200 is
    # split into 2 grid steps of 104 rows, so both v7x TensorCores get work.
    dim, B = 128, 200
    w1, b1, w2, b2 = _make_params(k1, dim)
    t = jax.random.uniform(kt1, (B,), jnp.float32, 0.0, 1000.0)
    out = jax.block_until_ready(time_embedding(t, w1, b1, w2, b2))
    assert out.shape == (B, dim), out.shape
    # Tight check against a reference that mirrors the bf16 matmul casts (covers
    # the sin(x+pi/2) reformulation + MXU accumulation order)...
    ref_bf16 = reference(t, w1, b1, w2, b2, matmul_dtype=jnp.bfloat16)
    err = float(jnp.max(jnp.abs(out - ref_bf16)))
    assert jnp.allclose(out, ref_bf16, atol=1e-2, rtol=1e-2), err
    # ...and a looser end-to-end check against the full-f32 reference, bounding
    # the bf16 quantization error itself.
    ref_f32 = reference(t, w1, b1, w2, b2)
    err32 = float(jnp.max(jnp.abs(out - ref_f32)))
    assert jnp.allclose(out, ref_f32, atol=5e-2, rtol=5e-2), err32

    # Case 2: small odd batch + sub-128 dim exercises the lane-padding path
    # (dim 64 -> 128) and batch padding (5 -> 8 rows).
    dim, B = 64, 5
    w1, b1, w2, b2 = _make_params(k2, dim)
    t = jax.random.uniform(kt2, (B,), jnp.float32, 0.0, 1000.0)
    out = jax.block_until_ready(time_embedding(t, w1, b1, w2, b2))
    assert out.shape == (B, dim), out.shape
    ref_bf16 = reference(t, w1, b1, w2, b2, matmul_dtype=jnp.bfloat16)
    err = float(jnp.max(jnp.abs(out - ref_bf16)))
    assert jnp.allclose(out, ref_bf16, atol=1e-2, rtol=1e-2), err

    # Also exercise the pure-f32 MXU fallback once (tight tolerance).
    out_f32 = jax.block_until_ready(
        time_embedding(t, w1, b1, w2, b2, use_bf16_matmul=False))
    ref_f32 = reference(t, w1, b1, w2, b2)
    err32 = float(jnp.max(jnp.abs(out_f32 - ref_f32)))
    assert jnp.allclose(out_f32, ref_f32, atol=2e-3, rtol=2e-3), err32

    print("KERNEL_OK")
</pallas_src>

<mosaic_0001>
module attributes {stable_mosaic.version = 11 : i64} {
  func.func @time_embedding_kernel(%arg0: i32, %arg1: memref<104x1xf32, #tpu.memory_space<vmem>>, %arg2: memref<2x128xf32, #tpu.memory_space<vmem>>, %arg3: memref<128x512xbf16, #tpu.memory_space<vmem>>, %arg4: memref<1x512xf32, #tpu.memory_space<vmem>>, %arg5: memref<512x128xbf16, #tpu.memory_space<vmem>>, %arg6: memref<1x128xf32, #tpu.memory_space<vmem>>, %arg7: memref<104x128xf32, #tpu.memory_space<vmem>>) attributes {dimension_semantics = [#tpu.dimension_semantics<parallel>], iteration_bounds = array<i64: 2>, scalar_prefetch = 0 : i64, scratch_operands = 0 : i64, tpu.core_type = #tpu.core_type<tc>, window_params = [{transform_indices = @transform_0, window_bounds = array<i64: 104, 1>}, {pipeline_mode = #tpu.pipeline_mode<synchronous>, transform_indices = @transform_1, window_bounds = array<i64: 2, 128>}, {pipeline_mode = #tpu.pipeline_mode<synchronous>, transform_indices = @transform_2, window_bounds = array<i64: 128, 512>}, {pipeline_mode = #tpu.pipeline_mode<synchronous>, transform_indices = @transform_3, window_bounds = array<i64: 1, 512>}, {pipeline_mode = #tpu.pipeline_mode<synchronous>, transform_indices = @transform_4, window_bounds = array<i64: 512, 128>}, {pipeline_mode = #tpu.pipeline_mode<synchronous>, transform_indices = @transform_5, window_bounds = array<i64: 1, 128>}, {transform_indices = @transform_6, window_bounds = array<i64: 104, 128>}]} {
    %c0 = arith.constant 0 : index
    %c0_0 = arith.constant 0 : index
    %0 = vector.load %arg1[%c0, %c0_0] : memref<104x1xf32, #tpu.memory_space<vmem>>, vector<104x1xf32>
    %c0_1 = arith.constant 0 : index
    %c0_2 = arith.constant 0 : index
    %1 = vector.load %arg2[%c0_1, %c0_2] : memref<2x128xf32, #tpu.memory_space<vmem>>, vector<1x128xf32>
    %c1 = arith.constant 1 : index
    %c0_3 = arith.constant 0 : index
    %2 = vector.load %arg2[%c1, %c0_3] : memref<2x128xf32, #tpu.memory_space<vmem>>, vector<1x128xf32>
    %3 = vector.broadcast %0 : vector<104x1xf32> to vector<104x128xf32>
    %4 = vector.broadcast %1 : vector<1x128xf32> to vector<104x128xf32>
    %5 = arith.mulf %3, %4 : vector<104x128xf32>
    %6 = vector.broadcast %2 : vector<1x128xf32> to vector<104x128xf32>
    %7 = arith.addf %5, %6 : vector<104x128xf32>
    %8 = math.sin %7 : vector<104x128xf32>
    %c0_4 = arith.constant 0 : index
    %c0_5 = arith.constant 0 : index
    %9 = vector.load %arg3[%c0_4, %c0_5] : memref<128x512xbf16, #tpu.memory_space<vmem>>, vector<128x512xbf16>
    %10 = arith.truncf %8 : vector<104x128xf32> to vector<104x128xbf16>
    %cst = arith.constant dense<0.000000e+00> : vector<104x512xf32>
    %11 = tpu.matmul %10, %9, %cst {dimension_numbers = #tpu.dot_dimension_numbers<[1], [0], [0], [1], [0, 0, 1, 1], [], []>} : vector<104x128xbf16>, vector<128x512xbf16>, vector<104x512xf32> -> vector<104x512xf32>
    %c0_6 = arith.constant 0 : index
    %c0_7 = arith.constant 0 : index
    %12 = vector.load %arg4[%c0_6, %c0_7] : memref<1x512xf32, #tpu.memory_space<vmem>>, vector<1x512xf32>
    %13 = vector.broadcast %12 : vector<1x512xf32> to vector<104x512xf32>
    %14 = arith.addf %11, %13 : vector<104x512xf32>
    %cst_8 = arith.constant 0.000000e+00 : f32
    %15 = vector.broadcast %cst_8 : f32 to vector<104x512xf32>
    %16 = arith.maximumf %14, %15 : vector<104x512xf32>
    %c0_9 = arith.constant 0 : index
    %c0_10 = arith.constant 0 : index
    %17 = vector.load %arg5[%c0_9, %c0_10] : memref<512x128xbf16, #tpu.memory_space<vmem>>, vector<512x128xbf16>
    %18 = arith.truncf %16 : vector<104x512xf32> to vector<104x512xbf16>
    %cst_11 = arith.constant dense<0.000000e+00> : vector<104x128xf32>
    %19 = tpu.matmul %18, %17, %cst_11 {dimension_numbers = #tpu.dot_dimension_numbers<[1], [0], [0], [1], [0, 0, 1, 1], [], []>} : vector<104x512xbf16>, vector<512x128xbf16>, vector<104x128xf32> -> vector<104x128xf32>
    %c0_12 = arith.constant 0 : index
    %c0_13 = arith.constant 0 : index
    %20 = vector.load %arg6[%c0_12, %c0_13] : memref<1x128xf32, #tpu.memory_space<vmem>>, vector<1x128xf32>
    %21 = vector.broadcast %20 : vector<1x128xf32> to vector<104x128xf32>
    %22 = arith.addf %19, %21 : vector<104x128xf32>
    %c0_14 = arith.constant 0 : index
    %c0_15 = arith.constant 0 : index
    %23 = vector.load %arg7[%c0_14, %c0_15] : memref<104x128xf32, #tpu.memory_space<vmem>>, vector<104x128xf32>
    tpu.vector_store %arg7[%c0_14, %c0_15], %22 {strides = array<i32>} : memref<104x128xf32, #tpu.memory_space<vmem>>, vector<104x128xf32>,
    return
  }
  func.func @transform_0(%arg0: i32) -> (i32, i32) {
    %c0_i32 = arith.constant 0 : i32
    %c0_i32_0 = arith.constant 0 : i32
    return %arg0, %c0_i32 : i32, i32
  }
  func.func @transform_1(%arg0: i32) -> (i32, i32) {
    %c0_i32 = arith.constant 0 : i32
    %c0_i32_0 = arith.constant 0 : i32
    %c0_i32_1 = arith.constant 0 : i32
    return %c0_i32, %c0_i32_0 : i32, i32
  }
  func.func @transform_2(%arg0: i32) -> (i32, i32) {
    %c0_i32 = arith.constant 0 : i32
    %c0_i32_0 = arith.constant 0 : i32
    %c0_i32_1 = arith.constant 0 : i32
    return %c0_i32, %c0_i32_0 : i32, i32
  }
  func.func @transform_3(%arg0: i32) -> (i32, i32) {
    %c0_i32 = arith.constant 0 : i32
    %c0_i32_0 = arith.constant 0 : i32
    %c0_i32_1 = arith.constant 0 : i32
    return %c0_i32, %c0_i32_0 : i32, i32
  }
  func.func @transform_4(%arg0: i32) -> (i32, i32) {
    %c0_i32 = arith.constant 0 : i32
    %c0_i32_0 = arith.constant 0 : i32
    %c0_i32_1 = arith.constant 0 : i32
    return %c0_i32, %c0_i32_0 : i32, i32
  }
  func.func @transform_5(%arg0: i32) -> (i32, i32) {
    %c0_i32 = arith.constant 0 : i32
    %c0_i32_0 = arith.constant 0 : i32
    %c0_i32_1 = arith.constant 0 : i32
    return %c0_i32, %c0_i32_0 : i32, i32
  }
  func.func @transform_6(%arg0: i32) -> (i32, i32) {
    %c0_i32 = arith.constant 0 : i32
    %c0_i32_0 = arith.constant 0 : i32
    return %arg0, %c0_i32 : i32, i32
  }
}

</mosaic_0001>

<bundles_post_ra>
// kernel: tpu_custom_call.1
= control target key start
LH: loop header
LB: loop body
LE: loop exit
PB: predicated region body
PF: predicated region fallthrough
CT: control target
= control target key end

     0   :  { %11 = vsyncpa [#allocation3], 0  ;;  %s5034_s0 = inlined_call_operand.vmem [shape: f32[208,1], index: 0, kind: input, shape index: {}]   ;;  %s5035_s1 = inlined_call_operand.vmem [shape: f32[2,128], index: 1, kind: input, shape index: {}]   ;;  %s5036_s2 = inlined_call_operand.hbm [shape: bf16[128,512], index: 2, kind: input, shape index: {}]   ;;  %s5037_s3 = inlined_call_operand.vmem [shape: f32[1,512], index: 3, kind: input, shape index: {}]   ;;  %s5038_s4 = inlined_call_operand.hbm [shape: bf16[512,128], index: 4, kind: input, shape index: {}]   ;;  %s5039_s5 = inlined_call_operand.vmem [shape: f32[1,128], index: 5, kind: input, shape index: {}]   ;;  %s5040_s6 = inlined_call_operand.hbm [shape: f32[208,128], index: 6, kind: output, shape index: {}]  }
   0x1   :  { %12 = vsyncpa [#allocation6], 0 }
   0x2   :  { %13 = vsyncpa [#allocation4], 0 }
   0x3   :  { %15 = vsyncpa [#allocation4 + $0x1], 0  ;;  %s3492_s21 = smov 0   ;;  %s3494_s22 = smov 0  }
   0x4   :  { %s3496_s23 = smov 0   ;;  %s3498_s24 = smov 0  }
   0x5 LB: > { %s3513_s25 = sadd.s32 4294967295, %s3439_s24   ;;  %s2803_s26 = sadd.s32 4294967294, %s3439_s24   ;;  %s3439_s24 = sphi %s3498_s24, %s5178_s24   ;;  %s3435_s23 = sphi %s3496_s23, %s5177_s23   ;;  %s3431_s22 = sphi %s3494_s22, %s5176_s22   ;;  %s3427_s21 = sphi %s3492_s21, %s5175_s21  }
   0x6   : > { %s3517_s27 = sadd.s32 1, %s3439_s24   ;;  %s159_s28 = sadd.s32 1, %s3435_s23 }
   0x7   : > { %s156_s29 = ssub.s32 %s3439_s24, %s3517_s27  ;;  %p169_p0 = scmp.ne.s32.totalorder %s3435_s23, %s3431_s22 }
   0x8   : > { %p157_p1 = scmp.eq.s32.totalorder %s156_s29, 0  ;;  %p170_p2 = scmp.eq.s32.totalorder %s3513_s25, 1 }
   0x9   : > { %p175_p3 = scmp.ne.s32.totalorder %s3431_s22, %s3427_s21  ;;  %p176_p4 = scmp.eq.s32.totalorder %s2803_s26, 1 }
   0xa   : > { %s3528_s30 = scalar_select %p157_p1, %s3435_s23, %s159_s28  }
   0xb   : > { %p3530_p5 = por %p170_p2, %p169_p0  ;;  %p3534_p6 = por %p176_p4, %p175_p3 }
   0xc   : > { %p2804_p7 = scmp.ge.s32.totalorder %s3439_s24, 1  ;;  %p183_p8 = scmp.lt.s32.totalorder %s3439_s24, 3 }
   0xd   : > { %s5086_s7 = scalar_select %p3530_p5, 1, 0 }
   0xe   : > { %s5087_s8 = scalar_select %p3534_p6, 1, 0 }
   0xf   : > { %p5041_p9 = scmp.eq.s32.totalorder %s3513_s25, 0  ;;  %p3541_p10 = pnand %p2804_p7, %p183_p8 }
  0x10   : > { %s3441_s10 = smov [#allocation2]   ;;  %s3442_s13 = smov [#allocation5]  }
  0x11   : > { %s5088_s9 = scalar_select %p3541_p10, 1, 0 }
  0x12   : > { %s198_s11 = sshll.u32 %s3441_s10, 4  ;;  %p3114_p11 = pneg %p3541_p10  ;;  %s199_s11 = int_to_ptr.vmem [resolvable:$true] %s198_s11 }
  0x13   : > { %s214_s14 = sshll.u32 %s3442_s13, 4  ;;  %s3313_s17 = scalar_lea.hbm %s5036_s2, 4096  ;;  %s3553_s14 = int_to_ptr.vmem [resolvable:$true] %s214_s14 }
  0x14   : > { %p3549_p12 = pnand %p5041_p9, %p3114_p11  ;;  %p3314_p13 = scmp.ne.s32.totalorder %s5036_s2, %s3313_s17 }
  0x15   : > { %p3320_p3 = scmp.lt.u32.totalorder %s3313_s17, %s5036_s2 }
  0x16   : > { %p3315_p0 = pneg %p3549_p12 }
  0x18   : > { %p3316_p1 = pnand %p3315_p0, %p3314_p13 }
  0x1a   : > { %p3317_p2 = pneg %p3316_p1 }
  0x1c   : > { %p3322_p4 = pnand %p3320_p3, %p3317_p2 }
  0x1e   : > { %3325 = shalt.err (!%p3322_p4)
}
  0x1f   : > { %s3326_s28 = scalar_lea.vmem %s199_s11, 4096  ;;  %p3334_p9 = scmp.lt.s32.totalorder %s199_s11, %s199_s11 }
  0x20   : > { %p3327_p7 = scmp.ne.s32.totalorder %s199_s11, %s3326_s28  ;;  %p3335_p6 = scmp.lt.s32.totalorder %s3326_s28, %s3326_s28 }
  0x22   : > { %p3329_p8 = pnand %p3327_p7, %p3315_p0  ;;  %p3336_p5 = por %p3335_p6, %p3334_p9 }
  0x24   : > { %p3330_p11 = pneg %p3329_p8 }
  0x26   : > { %p3337_p10 = pnand %p3336_p5, %p3330_p11 }
  0x28   : > { %3340 = shalt.err (!%p3337_p10)
}
  0x29   : > { %s3443_s29 = smov 256   ;;  %s3444_s10 = smov 16  }
  0x2a   : > { %3117 = dma.hbm_to_vmem [thread:$0]  (!%p3549_p12), %s5036_s2, 4096, %s199_s11, [#allocation3], %s3443_s29, %s3443_s29, %s3444_s10  }
  0x2b   : > { %s3341_s18 = scalar_lea.hbm %s5038_s4, 4096 }
  0x2c   : > { %p3342_p13 = scmp.ne.s32.totalorder %s5038_s4, %s3341_s18  ;;  %p3348_p9 = scmp.lt.u32.totalorder %s3341_s18, %s5038_s4 }
  0x2e   : > { %p3344_p5 = pnand %p3342_p13, %p3315_p0 }
  0x30   : > { %p3345_p6 = pneg %p3344_p5 }
  0x32   : > { %p3350_p10 = pnand %p3348_p9, %p3345_p6 }
  0x34   : > { %3353 = shalt.err (!%p3350_p10)
}
  0x35   : > { %s3354_s11 = scalar_lea.vmem %s3553_s14, 4096  ;;  %p3362_p4 = scmp.lt.s32.totalorder %s3553_s14, %s3553_s14 }
  0x36   : > { %p3355_p1 = scmp.ne.s32.totalorder %s3553_s14, %s3354_s11  ;;  %p3363_p7 = scmp.lt.s32.totalorder %s3354_s11, %s3354_s11 }
  0x38   : > { %p3357_p2 = pnand %p3355_p1, %p3315_p0  ;;  %p3364_p8 = por %p3363_p7, %p3362_p4 }
  0x3a   : > { %p3358_p3 = pneg %p3357_p2 }
  0x3c   : > { %p3365_p11 = pnand %p3364_p8, %p3358_p3 }
  0x3e   : > { %3368 = shalt.err (!%p3365_p11)
}
  0x3f   : > { %s3445_s29 = smov 64   ;;  %s3446_s10 = smov 4  }
  0x40   : > { %3120 = dma.hbm_to_vmem [thread:$0]  (!%p3549_p12), %s5038_s4, 4096, %s3553_s14, [#allocation6], %s3445_s29, %s3445_s29, %s3446_s10  }
  0x41   : > { %p5090_p13 = scmp.ne.s32.totalorder %s5088_s9, 0 }
  0x43   : > { %242 = sbr.rel (%p5090_p13) target bundleno = 1023 (0x3ff), region = 44 }
  0x4a   : > { %p5091_p0 = scmp.eq.s32.totalorder %s3513_s25, 0 }
  0x4c   : > { %3414 = dma.done.wait (%p5091_p0), [#allocation3], 4096   ;;  %p5092_p5 = pmov %p5091_p0 }
  0x4d   : > { %p5093_p6 = pmov %p5091_p0 }
  0x4e   : > { %3416 = vsyncadd (%p5092_p5), [#allocation3], 4294963200 }
  0x4f   : > { %3418 = dma.done.wait (%p5093_p6), [#allocation6], 4096   ;;  %p5094_p9 = pmov %p5091_p0 }
  0x50   : > { %s276_s12 = smul.u32 13, %s3513_s25  ;;  %v5046_v0 = vmov 0   ;;  %v3623_v14 = vld [vmem:[%s5035_s1] ss:$0 sm:$0xff]  ;;  %v3628_v15 = vld [vmem:[%s5035_s1 + $0x1] ss:$0 sm:$0xff] }
  0x51   : > { %3420 = vsyncadd (%p5094_p9), [#allocation6], 4294963200  ;;  %3178 = vset.pattern.permute.xlu1 %v5046_v0  ;;  %3177 = vset.pattern.permute.xlu0 %v5046_v0  ;;  %v5065_v58 = vmov 683565275   ;;  %v5056_v60 = vmov 2475754826  }
  0x52   : > { %p277_p12 = scmp.lt.s32.totalorder %s276_s12, 25  ;;  %2003 = vmatprep.mubr.bf16.mxu0 %v5046_v0  ;;  %2104 = vmatprep.mubr.bf16.mxu1 %v5046_v0  ;;  %v5058_v62 = vmov 2131351028   ;;  %s2934_s18 = smul.u32 1664, %s3513_s25 }
  0x53   : > { %p5173_p1 = scmp.ne.s32.totalorder %s5086_s7, 0  ;;  %s3454_s29 = smov [#allocation7]  }
  0x54   : > { %s5180_s12 = smov (!%p277_p12, %s276_s12), 25  ;;  %s4988_s28 = scalar_lea.hbm %s5040_s6, %s2934_s18 }
  0x55   : > { %s2811_s9 = sshll.u32 %s5180_s12, 3  ;;  %s273_s12 = sand.u32 1, %s3431_s22  }
  0x56   : > { %s280_s17 = scalar_lea.vmem %s5034_s0, %s2811_s9  ;;  %s3051_s16 = smul.u32 104, %s273_s12 }
  0x57   : > { %v286_v1 = vld [vmem:[%s280_s17 + $0x10] sm:$0xff]  ;;  %v284_v2 = vld [vmem:[%s280_s17] sm:$0xff]  ;;  %v287_v3 = vld [vmem:[%s280_s17 + $0x18] sm:$0xff]  ;;  %s4993_s11 = scalar_lea.sflag [#allocation4], %s273_s12  ;;  %s3373_s10 = sshll.u32 %s3454_s29, 4  ;;  %s3374_s10 = int_to_ptr.vmem [resolvable:$false] %s3373_s10 }
  0x58   : > { %311 = vperm.xlu1 %3178, %v286_v1   ;;  %301 = vperm.xlu0 %3177, %v284_v2   ;;  %v285_v4 = vld [vmem:[%s280_s17 + $0x8] sm:$0xff]  ;;  %v288_v6 = vld [vmem:[%s280_s17 + $0x20] sm:$0xff]  ;;  %v291_v7 = vld [vmem:[%s280_s17 + $0x38] sm:$0xff]  ;;  %v5054_v1 = vmov 2102212464   ;;  %s3375_s13 = scalar_lea.vmem %s3374_s10, 3328 }
  0x59   : > { %v289_v5 = vld [vmem:[%s280_s17 + $0x28] sm:$0xff]  ;;  %v290_v8 = vld [vmem:[%s280_s17 + $0x30] sm:$0xff]  ;;  %v292_v10 = vld [vmem:[%s280_s17 + $0x40] sm:$0xff] }
  0x5a   : > { %v293_v9 = vld [vmem:[%s280_s17 + $0x48] sm:$0xff]  ;;  %v295_v11 = vld [vmem:[%s280_s17 + $0x58] sm:$0xff]  ;;  %v294_v12 = vld [vmem:[%s280_s17 + $0x50] sm:$0xff] }
  0x5b   : > { %v296_v13 = vld [vmem:[%s280_s17 + $0x60] sm:$0xff]  ;;  %s4956_s17 = scalar_lea.vmem [#allocation7], %s3051_s16 }
  0x5c   : > { %316 = vperm.xlu1 %3178, %v287_v3   ;;  %306 = vperm.xlu0 %3177, %v285_v4   ;;  %v5082_v3 = vmov 920167782   ;;  %s2719_s19 = sshll.u32 %s4956_s17, 4  ;;  %s4983_s19 = int_to_ptr.vmem [resolvable:$true] %s2719_s19 }
  0x5d   : > { %s3369_s25 = scalar_lea.vmem %s4983_s19, 1664  ;;  %p3376_p4 = scmp.lt.s32.totalorder %s4983_s19, %s3374_s10 }
  0x5e   : > { %p3370_p10 = scmp.ne.s32.totalorder %s4983_s19, %s3369_s25  ;;  %p3377_p7 = scmp.lt.s32.totalorder %s3375_s13, %s3369_s25 }
  0x60   : > { %326 = vperm.xlu1 %3178, %v289_v5   ;;  %321 = vperm.xlu0 %3177, %v288_v6   ;;  %p3371_p2 = pnand %p3370_p10, %p5173_p1  ;;  %p3378_p8 = por %p3377_p7, %p3376_p4 }
  0x62   : > { %p3372_p3 = pneg %p3371_p2 }
  0x64   : > { %336 = vperm.xlu1 %3178, %v291_v7   ;;  %331 = vperm.xlu0 %3177, %v290_v8   ;;  %p3379_p11 = pnand %p3378_p8, %p3372_p3 }
  0x68   : > { %346 = vperm.xlu1 %3178, %v293_v9   ;;  %341 = vperm.xlu0 %3177, %v292_v10  }
  0x6c   : > { %356 = vperm.xlu1 %3178, %v295_v11   ;;  %351 = vperm.xlu0 %3177, %v294_v12   ;;  %v5061_v11 = vmov 1326507024  }
  0x70   : > { %361 = vperm.xlu0 %3177, %v296_v13  }
  0xd7   : > { %v312_v16 = vpop.permute.xlu1 %311  ;;  %v302_v17 = vpop.permute.xlu0 %301 }
  0xd8   : > { %v370_v18 = vmul.f32 %v3623_v14, %v312_v16  ;;  %v368_v19 = vmul.f32 %v3623_v14, %v302_v17 }
  0xda   : > { %v3633_v20 = vadd.f32 %v3628_v15, %v370_v18  ;;  %v3636_v21 = vadd.f32 %v3628_v15, %v368_v19 }
  0xdb   : > { %v317_v22 = vpop.permute.xlu1 %316  ;;  %v307_v23 = vpop.permute.xlu0 %306 }
  0xdc   : > { %v5051_v24 = vand.u32 2147483647, %v3633_v20  ;;  %v609_v25 = vand.u32 2139095040, %v3633_v20  ;;  %v5053_v26 = vand.u32 2147483647, %v3636_v21  ;;  %v401_v27 = vand.u32 2139095040, %v3636_v21 }
  0xdd   : > { %v371_v28 = vmul.f32 %v3623_v14, %v317_v22  ;;  %v369_v32 = vmul.f32 %v3623_v14, %v307_v23 }
  0xde   : > { %v610_v29 = vshrl.u32 %v609_v25, 23  ;;  %v613_v30 = vand.u32 8388607, %v5051_v24  ;;  %v405_v31 = vand.u32 8388607, %v5053_v26  ;;  %v402_v33 = vshrl.u32 %v401_v27, 23 }
  0xdf   : > { %v3649_v34 = vadd.f32 %v3628_v15, %v371_v28  ;;  %v3654_v42 = vadd.f32 %v3628_v15, %v369_v32  ;;  %v3195_v26 = vld [vmem:[#allocation2 + $0x40] ss:$16 sps:$4 sm:$0xff]  }
  0xe0   : > { %v2822_v35 = vadd.s32 4294967169, %v610_v29  ;;  %v614_v36 = vor.u32 8388608, %v613_v30  ;;  %v2814_v37 = vadd.s32 4294967169, %v402_v33  ;;  %v406_v38 = vor.u32 8388608, %v405_v31 }
  0xe1   : > { %v5050_v39 = vand.u32 2147483647, %v3649_v34  ;;  %v713_v40 = vand.u32 2139095040, %v3649_v34  ;;  %v5052_v52 = vand.u32 2147483647, %v3654_v42  ;;  %v505_v56 = vand.u32 2139095040, %v3654_v42 }
  0xe2   : > { %v616_v41 = vadd.s32 1, %v2822_v35  ;;  %v408_v43 = vadd.s32 1, %v2814_v37  ;;  %v3660_v47 = vshll.u32 %v614_v36, 8  ;;  %v3662_v48 = vshll.u32 %v406_v38, 8 }
  0xe3   : > { %v714_v44 = vshrl.u32 %v713_v40, 23  ;;  %v3658_v45 = vand.u32 8388607, %v5050_v39 }
  0xe4   : > { %vm617_vm0 = vcmp.gt.s32.totalorder %v616_v41, 0  ;;  %vm409_vm1 = vcmp.gt.s32.totalorder %v408_v43, 0 }
  0xe5   : > { %v618_v46 = vsel %vm617_vm0, %v616_v41, 0  ;;  %v410_v51 = vsel %vm409_vm1, %v408_v43, 0  ;;  %v2826_v54 = vadd.s32 4294967169, %v714_v44  ;;  %v718_v55 = vor.u32 8388608, %v3658_v45 }
  0xe6   : > { %v619_v49 = vshrl.u32 %v618_v46, 5  ;;  %v620_v50 = vand.u32 31, %v618_v46  ;;  %v3665_v53 = vand.u32 31, %v410_v51  ;;  %v3674_v5 = vshrl.u32 %v410_v51, 5 }
  0xe7   : > { %v720_v23 = vadd.s32 1, %v2826_v54 }
  0xe8   : > { %v621_v57 = vsub.s32 32, %v620_v50  ;;  %v623_v59 = vshll.u32 %v5065_v58, %v620_v50  ;;  %v626_v61 = vshll.u32 %v5056_v60, %v620_v50  ;;  %v629_v63 = vshll.u32 %v5058_v62, %v620_v50 }
  0xe9   : > { %v632_v2 = vshll.u32 %v5054_v1, %v620_v50  ;;  %v635_v4 = vshll.u32 %v5082_v3, %v620_v50  ;;  %vm638_vm2 = vcmp.lt.s32.totalorder %v619_v49, 1  ;;  %vm640_vm3 = vcmp.lt.s32.totalorder %v619_v49, 3 }
  0xea   : > { %v622_v6 = vshrl.u32 %v5065_v58, %v621_v57  ;;  %v624_v7 = vshrl.u32 %v5056_v60, %v621_v57  ;;  %v627_v8 = vshrl.u32 %v5058_v62, %v621_v57  ;;  %v630_v9 = vshrl.u32 %v5054_v1, %v621_v57 }
  0xeb   : > { %v633_v10 = vshrl.u32 %v5082_v3, %v621_v57  ;;  %v636_v12 = vshrl.u32 %v5061_v11, %v621_v57  ;;  %vm641_vm4 = vcmp.lt.s32.totalorder %v619_v49, 4  ;;  %v413_v18 = vsub.s32 32, %v3665_v53 }
  0xec   : > { %v625_v13 = vor.u32 %v624_v7, %v623_v59  ;;  %v628_v16 = vor.u32 %v627_v8, %v626_v61  ;;  %v631_v17 = vor.u32 %v630_v9, %v629_v63  ;;  %vm639_vm5 = vcmp.lt.s32.totalorder %v619_v49, 2 }
  0xed   : > { %v634_v19 = vor.u32 %v633_v10, %v632_v2  ;;  %v637_v22 = vor.u32 %v636_v12, %v635_v4  ;;  %v415_v33 = vshll.u32 %v5065_v58, %v3665_v53  ;;  %v416_v37 = vshrl.u32 %v5056_v60, %v413_v18 }
  0xee   : > { %v642_v25 = vsel %vm638_vm2, %v622_v6, %v625_v13  ;;  %v643_v27 = vsel %vm641_vm4, %v631_v17, 2102212464  ;;  %v646_v28 = vsel %vm638_vm2, %v625_v13, %v628_v16  ;;  %v650_v29 = vsel %vm638_vm2, %v628_v16, %v631_v17 }
  0xef   : > { %v644_v30 = vsel %vm640_vm3, %v628_v16, %v643_v27  ;;  %v647_v31 = vsel %vm641_vm4, %v634_v19, 920167782  ;;  %v651_v32 = vsel %vm641_vm4, %v637_v22, 1326507024  ;;  %v418_v38 = vshll.u32 %v5056_v60, %v3665_v53 }
  0xf0   : > { %v648_v35 = vsel %vm640_vm3, %v631_v17, %v647_v31  ;;  %v652_v36 = vsel %vm640_vm3, %v634_v19, %v651_v32  ;;  %v645_v40 = vsel %vm639_vm5, %v642_v25, %v644_v30  ;;  %v419_v44 = vshrl.u32 %v5058_v62, %v413_v18 }
  0xf1   : > { %v649_v41 = vsel %vm639_vm5, %v646_v28, %v648_v35  ;;  %v653_v43 = vsel %vm639_vm5, %v650_v29, %v652_v36  ;;  %v417_v57 = vor.u32 %v416_v37, %v415_v33  ;;  %v421_v61 = vshll.u32 %v5058_v62, %v3665_v53  ;;  %v327_v36 = vpop.permute.xlu1 %326 }
  0xf2   : > { %v3699_v46 = vmul.u32.u64.low %v3660_v47, %v653_v43  ;;  %v3700_v50 = vmul.u32.u64.high %v3660_v47, %v653_v43, %v3699_v46  ;;  %v3703_v51 = vmul.u32.u64.low %v3660_v47, %v649_v41  ;;  %v3704_v54 = vmul.u32.u64.high %v3660_v47, %v649_v41, %v3703_v51 }
  0xf3   : > { %v420_v59 = vor.u32 %v419_v44, %v418_v38  ;;  %v422_v63 = vshrl.u32 %v5054_v1, %v413_v18  ;;  %v414_v49 = vshrl.u32 %v5065_v58, %v413_v18  ;;  %v424_v2 = vshll.u32 %v5054_v1, %v3665_v53 }
  0xf4   : > { %v425_v4 = vshrl.u32 %v5082_v3, %v413_v18  ;;  %v428_v6 = vshrl.u32 %v5061_v11, %v413_v18  ;;  %v661_v7 = vmul.u32 %v3660_v47, %v645_v40  ;;  %v427_v9 = vshll.u32 %v5082_v3, %v3665_v53 }
  0xf5   : > { %v423_v8 = vor.u32 %v422_v63, %v421_v61  ;;  %vm430_vm6 = vcmp.lt.s32.totalorder %v3674_v5, 1  ;;  %vm663_vm7 = vc.u32 %v3700_v50, %v3703_v51  ;;  %v664_v10 = vadd.s32 1, %v3704_v54 }
  0xf6   : > { %v426_v12 = vor.u32 %v425_v4, %v424_v2  ;;  %vm431_vm8 = vcmp.lt.s32.totalorder %v3674_v5, 2  ;;  %v429_v13 = vor.u32 %v428_v6, %v427_v9  ;;  %vm432_vm9 = vcmp.lt.s32.totalorder %v3674_v5, 3 }
  0xf7   : > { %vm433_vm10 = vcmp.lt.s32.totalorder %v3674_v5, 4  ;;  %v438_v47 = vsel %vm430_vm6, %v417_v57, %v420_v59  ;;  %v665_v16 = vsel %vm663_vm7, %v664_v10, %v3704_v54  ;;  %v442_v18 = vsel %vm430_vm6, %v420_v59, %v423_v8 }
  0xf8   : > { %v435_v17 = vsel %vm433_vm10, %v423_v8, 2102212464  ;;  %v439_v53 = vsel %vm433_vm10, %v426_v12, 920167782  ;;  %v666_v19 = vadd.s32 %v665_v16, %v661_v7  ;;  %v434_v22 = vsel %vm430_vm6, %v414_v49, %v417_v57 }
  0xf9   : > { %v440_v25 = vsel %vm432_vm9, %v423_v8, %v439_v53  ;;  %v443_v27 = vsel %vm433_vm10, %v429_v13, 1326507024  ;;  %v436_v28 = vsel %vm432_vm9, %v420_v59, %v435_v17  ;;  %vm721_vm11 = vcmp.gt.s32.totalorder %v720_v23, 0 }
  0xfa   : > { %v441_v29 = vsel %vm431_vm8, %v438_v47, %v440_v25  ;;  %v444_v30 = vsel %vm432_vm9, %v426_v12, %v443_v27  ;;  %v667_v31 = vadd.s32 536870912, %v666_v19  ;;  %v722_v40 = vsel %vm721_vm11, %v720_v23, 0 }
  0xfb   : > { %v445_v32 = vsel %vm431_vm8, %v442_v18, %v444_v30  ;;  %v3731_v33 = vmul.u32.u64.low %v3662_v48, %v441_v29  ;;  %v3732_v35 = vmul.u32.u64.high %v3662_v48, %v441_v29, %v3731_v33  ;;  %v437_v43 = vsel %vm431_vm8, %v434_v22, %v436_v28 }
  0xfc   : > { %v3736_v37 = vmul.u32.u64.low %v3662_v48, %v445_v32  ;;  %v3737_v38 = vmul.u32.u64.high %v3662_v48, %v445_v32, %v3736_v37  ;;  %v3739_v41 = vshrl.u32 %v667_v31, 30  ;;  %v724_v44 = vand.u32 31, %v722_v40 }
  0xfd   : > { %v3745_v46 = vshll.u32 %v718_v55, 8  ;;  %v506_v54 = vshrl.u32 %v505_v56, 23  ;;  %v3751_v57 = vand.u32 8388607, %v5052_v52  ;;  %v373_v59 = vmul.f32 %v3623_v14, %v327_v36 }
  0xfe   : > { %v669_v23 = vshll.u32 %v3739_v41, 30  ;;  %v456_v61 = vadd.s32 1, %v3732_v35  ;;  %v725_v5 = vsub.s32 32, %v724_v44  ;;  %v727_v63 = vshll.u32 %v5065_v58, %v724_v44 }
  0xff   : > { %v453_v45 = vmul.u32 %v3662_v48, %v437_v43  ;;  %vm455_vm12 = vc.u32 %v3737_v38, %v3731_v33  ;;  %v730_v55 = vshll.u32 %v5056_v60, %v724_v44  ;;  %v733_v56 = vshll.u32 %v5058_v62, %v724_v44 }
 0x100   : > { %v3762_v49 = vsub.s32 %v666_v19, %v669_v23  ;;  %v457_v2 = vsel %vm455_vm12, %v456_v61, %v3732_v35  ;;  %v723_v4 = vshrl.u32 %v722_v40, 5  ;;  %v728_v6 = vshrl.u32 %v5056_v60, %v725_v5 }
 0x101   : > { %v458_v7 = vadd.s32 %v457_v2, %v453_v45  ;;  %v731_v8 = vshrl.u32 %v5058_v62, %v725_v5  ;;  %v734_v9 = vshrl.u32 %v5054_v1, %v725_v5  ;;  %v736_v48 = vshll.u32 %v5054_v1, %v724_v44 }
 0x102   : > { %v672_v10 = vsub.s32 0, %v3762_v49  ;;  %v729_v12 = vor.u32 %v728_v6, %v727_v63  ;;  %v737_v13 = vshrl.u32 %v5082_v3, %v725_v5  ;;  %v739_v47 = vshll.u32 %v5082_v3, %v724_v44 }
 0x103   : > { %v459_v16 = vadd.s32 536870912, %v458_v7  ;;  %v732_v17 = vor.u32 %v731_v8, %v730_v55  ;;  %v735_v53 = vor.u32 %v734_v9, %v733_v56  ;;  %v740_v18 = vshrl.u32 %v5061_v11, %v725_v5 }
 0x104   : > { %v2823_v19 = vmin.u32 %v672_v10, %v3762_v49  ;;  %v726_v22 = vshrl.u32 %v5065_v58, %v725_v5  ;;  %v738_v25 = vor.u32 %v737_v13, %v736_v48  ;;  %v2818_v27 = vadd.s32 4294967169, %v506_v54 }
 0x105   : > { %v3775_v28 = vshrl.u32 %v459_v16, 30  ;;  %v741_v29 = vor.u32 %v740_v18, %v739_v47  ;;  %vm742_vm13 = vcmp.lt.s32.totalorder %v723_v4, 1  ;;  %vm745_vm14 = vcmp.lt.s32.totalorder %v723_v4, 4 }
 0x106   : > { %v674_v30 = vclz %v2823_v19  ;;  %vm743_vm15 = vcmp.lt.s32.totalorder %v723_v4, 2  ;;  %v747_v31 = vsel %vm745_vm14, %v735_v53, 2102212464  ;;  %v750_v32 = vsel %vm742_vm13, %v729_v12, %v732_v17 }
 0x107   : > { %v461_v35 = vshll.u32 %v3775_v28, 30  ;;  %vm744_vm0 = vcmp.lt.s32.totalorder %v723_v4, 3  ;;  %v751_v36 = vsel %vm745_vm14, %v738_v25, 920167782  ;;  %v754_v37 = vsel %vm742_vm13, %v732_v17, %v735_v53 }
 0x108   : > { %v2824_v40 = vadd.s32 4294967294, %v674_v30  ;;  %v746_v43 = vsel %vm742_vm13, %v726_v22, %v729_v12  ;;  %v752_v44 = vsel %vm744_vm0, %v735_v53, %v751_v36  ;;  %v755_v23 = vsel %vm745_vm14, %v741_v29, 1326507024 }
 0x109   : > { %v3778_v61 = vsub.s32 %v458_v7, %v461_v35  ;;  %v748_v54 = vsel %vm744_vm0, %v732_v17, %v747_v31  ;;  %v753_v5 = vsel %vm743_vm15, %v750_v32, %v752_v44  ;;  %v756_v63 = vsel %vm744_vm0, %v738_v25, %v755_v23 }
 0x10a   : > { %vm2825_vm1 = vcmp.lt.s32.totalorder %v2824_v40, 0  ;;  %v757_v45 = vsel %vm743_vm15, %v754_v37, %v756_v63  ;;  %v3783_v55 = vmul.u32.u64.low %v3745_v46, %v753_v5  ;;  %v3784_v56 = vmul.u32.u64.high %v3745_v46, %v753_v5, %v3783_v55 }
 0x10b   : > { %v677_v2 = vsel %vm2825_vm1, 0, %v2824_v40  ;;  %v464_v6 = vsub.s32 0, %v3778_v61  ;;  %v3789_v8 = vmul.u32.u64.low %v3745_v46, %v757_v45  ;;  %v3790_v9 = vmul.u32.u64.high %v3745_v46, %v757_v45, %v3789_v8 }
 0x10c   : > { %v682_v7 = vsub.s32 4294967266, %v677_v2  ;;  %v749_v48 = vsel %vm743_vm15, %v746_v43, %v748_v54  ;;  %v512_v10 = vadd.s32 1, %v2818_v27  ;;  %v3794_v12 = vadd.f32 %v3628_v15, %v373_v59 }
 0x10d   : > { %v2815_v13 = vmin.u32 %v464_v6, %v3778_v61  ;;  %v662_v47 = vadd.s32 %v3703_v51, %v3700_v50  ;;  %v678_v16 = vsub.s32 32, %v677_v2  ;;  %v768_v17 = vadd.s32 1, %v3784_v56 }
 0x10e   : > { %vm513_vm2 = vcmp.gt.s32.totalorder %v512_v10, 0  ;;  %v765_v18 = vmul.u32 %v3745_v46, %v749_v48  ;;  %vm767_vm3 = vc.u32 %v3790_v9, %v3783_v55  ;;  %v683_v19 = vadd.s32 127, %v682_v7 }
 0x10f   : > { %v466_v53 = vclz %v2815_v13  ;;  %v514_v4 = vsel %vm513_vm2, %v512_v10, 0  ;;  %v769_v59 = vsel %vm767_vm3, %v768_v17, %v3784_v56  ;;  %v510_v22 = vor.u32 8388608, %v3751_v57 }
 0x110   : > { %v921_v25 = vand.u32 2139095040, %v3794_v12  ;;  %v770_v50 = vadd.s32 %v769_v59, %v765_v18  ;;  %v516_v51 = vand.u32 31, %v514_v4  ;;  %v5045_v29 = vand.u32 2147483647, %v3794_v12 }
 0x111   : > { %v2816_v27 = vadd.s32 4294967294, %v466_v53  ;;  %v680_v30 = vshrl.u32 %v662_v47, %v678_v16  ;;  %v679_v46 = vshll.u32 %v3762_v49, %v677_v2  ;;  %v684_v35 = vshll.u32 %v683_v19, 23 }
 0x112   : > { %v771_v31 = vadd.s32 536870912, %v770_v50  ;;  %v517_v32 = vsub.s32 32, %v516_v51  ;;  %v922_v36 = vshrl.u32 %v921_v25, 23  ;;  %v3810_v40 = vshll.u32 %v510_v22, 8 }
 0x113   : > { %vm2817_vm4 = vcmp.lt.s32.totalorder %v2816_v27, 0  ;;  %v3814_v57 = vand.u32 8388607, %v5045_v29  ;;  %v681_v43 = vor.u32 %v680_v30, %v679_v46  ;;  %v515_v44 = vshrl.u32 %v514_v4, 5 }
 0x114   : > { %v3808_v37 = vshrl.u32 %v771_v31, 30  ;;  %v520_v23 = vshrl.u32 %v5056_v60, %v517_v32  ;;  %v523_v54 = vshrl.u32 %v5058_v62, %v517_v32  ;;  %v519_v49 = vshll.u32 %v5065_v58, %v516_v51 }
 0x115   : > { %v522_v63 = vshll.u32 %v5056_v60, %v516_v51  ;;  %v526_v45 = vshrl.u32 %v5054_v1, %v517_v32  ;;  %v685_v56 = vor.u32 4788187, %v684_v35  ;;  %v3822_v2 = vsel %vm2817_vm4, 0, %v2816_v27 }
 0x116   : > { %v773_v5 = vshll.u32 %v3808_v37, 30  ;;  %v525_v6 = vshll.u32 %v5058_v62, %v516_v51  ;;  %v2834_v8 = vadd.s32 4294967169, %v922_v36  ;;  %v521_v48 = vor.u32 %v520_v23, %v519_v49 }
 0x117   : > { %v524_v10 = vor.u32 %v523_v54, %v522_v63  ;;  %v528_v13 = vshll.u32 %v5054_v1, %v516_v51  ;;  %v529_v16 = vshrl.u32 %v5082_v3, %v517_v32  ;;  %v531_v17 = vshll.u32 %v5082_v3, %v516_v51 }
 0x118   : > { %v3825_v7 = vsub.s32 %v770_v50, %v773_v5  ;;  %v527_v47 = vor.u32 %v526_v45, %v525_v6  ;;  %v532_v53 = vshrl.u32 %v5061_v11, %v517_v32  ;;  %v688_v18 = vcvt.s32.f32 %v681_v43 }
 0x119   : > { %v474_v4 = vsub.s32 4294967266, %v3822_v2  ;;  %vm534_vm5 = vcmp.lt.s32.totalorder %v515_v44, 1  ;;  %v518_v59 = vshrl.u32 %v5065_v58, %v517_v32  ;;  %v530_v22 = vor.u32 %v529_v16, %v528_v13 }
 0x11a   : > { %v776_v19 = vsub.s32 0, %v3825_v7  ;;  %v533_v25 = vor.u32 %v532_v53, %v531_v17  ;;  %vm535_vm6 = vcmp.lt.s32.totalorder %v515_v44, 2  ;;  %vm536_vm7 = vcmp.lt.s32.totalorder %v515_v44, 3 }
 0x11b   : > { %vm537_vm8 = vcmp.lt.s32.totalorder %v515_v44, 4  ;;  %v542_v50 = vsel %vm534_vm5, %v521_v48, %v524_v10  ;;  %v546_v31 = vsel %vm534_vm5, %v524_v10, %v527_v47  ;;  %v686_v35 = vand.u32 2147483647, %v685_v56 }
 0x11c   : > { %v2827_v27 = vmin.u32 %v776_v19, %v3825_v7  ;;  %v539_v51 = vsel %vm537_vm8, %v527_v47, 2102212464  ;;  %v543_v30 = vsel %vm537_vm8, %v530_v22, 920167782  ;;  %v547_v46 = vsel %vm537_vm8, %v533_v25, 1326507024 }
 0x11d   : > { %v475_v36 = vadd.s32 127, %v474_v4  ;;  %v544_v23 = vsel %vm536_vm7, %v527_v47, %v543_v30  ;;  %v470_v32 = vsub.s32 32, %v3822_v2  ;;  %v538_v54 = vsel %vm534_vm5, %v518_v59, %v521_v48  ;;  %v322_v30 = vpop.permute.xlu0 %321 }
 0x11e   : > { %v778_v43 = vclz %v2827_v27  ;;  %v545_v5 = vsel %vm535_vm6, %v542_v50, %v544_v23  ;;  %v548_v49 = vsel %vm536_vm7, %v530_v22, %v547_v46  ;;  %v540_v45 = vsel %vm536_vm7, %v524_v10, %v539_v51 }
 0x11f   : > { %v549_v6 = vsel %vm535_vm6, %v546_v31, %v548_v49  ;;  %v928_v13 = vadd.s32 1, %v2834_v8  ;;  %v3849_v47 = vmul.u32.u64.low %v3810_v40, %v545_v5  ;;  %v3850_v17 = vmul.u32.u64.high %v3810_v40, %v545_v5, %v3849_v47  ;;  %v337_v31 = vpop.permute.xlu1 %336 }
 0x120   : > { %v2828_v63 = vadd.s32 4294967294, %v778_v43  ;;  %v3845_v56 = vmul.u32.u64.low %v3810_v40, %v549_v6  ;;  %v3846_v16 = vmul.u32.u64.high %v3810_v40, %v549_v6, %v3845_v56  ;;  %v3853_v48 = vmul.f32 %v688_v18, %v686_v35 }
 0x121   : > { %v476_v53 = vshll.u32 %v475_v36, 23  ;;  %vm929_vm10 = vcmp.gt.s32.totalorder %v928_v13, 0  ;;  %v541_v4 = vsel %vm535_vm6, %v538_v54, %v540_v45  ;;  %v926_v10 = vor.u32 8388608, %v3814_v57 }
 0x122   : > { %vm2829_vm9 = vcmp.lt.s32.totalorder %v2828_v63, 0  ;;  %v930_v19 = vsel %vm929_vm10, %v928_v13, 0  ;;  %v454_v8 = vadd.s32 %v3731_v33, %v3737_v38  ;;  %v3861_v59 = vadd.s32 %v3783_v55, %v3790_v9 }
 0x123   : > { %v3863_v22 = vsel %vm2829_vm9, 0, %v2828_v63  ;;  %v471_v18 = vshll.u32 %v3778_v61, %v3822_v2  ;;  %vm559_vm11 = vc.u32 %v3846_v16, %v3849_v47  ;;  %v560_v44 = vadd.s32 1, %v3850_v17 }
 0x124   : > { %v932_v25 = vand.u32 31, %v930_v19  ;;  %v690_v57 = vxor.u32 2147483648, %v3853_v48  ;;  %v472_v27 = vshrl.u32 %v454_v8, %v470_v32  ;;  %v3871_v50 = vor.u32 4788187, %v476_v53 }
 0x125   : > { %v557_v33 = vmul.u32 %v3810_v40, %v541_v4  ;;  %v786_v38 = vsub.s32 4294967266, %v3863_v22  ;;  %v561_v55 = vsel %vm559_vm11, %v560_v44, %v3850_v17  ;;  %v3876_v51 = vshll.u32 %v926_v10, 8 }
 0x126   : > { %v933_v9 = vsub.s32 32, %v932_v25  ;;  %v931_v35 = vshrl.u32 %v930_v19, 5  ;;  %v935_v36 = vshll.u32 %v5065_v58, %v932_v25  ;;  %v938_v43 = vshll.u32 %v5056_v60, %v932_v25 }
 0x127   : > { %v562_v46 = vadd.s32 %v561_v55, %v557_v33  ;;  %v941_v40 = vshll.u32 %v5058_v62, %v932_v25  ;;  %v944_v49 = vshll.u32 %v5054_v1, %v932_v25  ;;  %v372_v63 = vmul.f32 %v3623_v14, %v322_v30 }
 0x128   : > { %v936_v23 = vshrl.u32 %v5056_v60, %v933_v9  ;;  %v939_v32 = vshrl.u32 %v5058_v62, %v933_v9  ;;  %v942_v54 = vshrl.u32 %v5054_v1, %v933_v9  ;;  %v375_v45 = vmul.f32 %v3623_v14, %v337_v31 }
 0x129   : > { %v563_v5 = vadd.s32 536870912, %v562_v46  ;;  %v945_v17 = vshrl.u32 %v5082_v3, %v933_v9  ;;  %v787_v53 = vadd.s32 127, %v786_v38  ;;  %v947_v10 = vshll.u32 %v5082_v3, %v932_v25 }
 0x12a   : > { %v937_v6 = vor.u32 %v936_v23, %v935_v36  ;;  %v940_v13 = vor.u32 %v939_v32, %v938_v43  ;;  %v943_v56 = vor.u32 %v942_v54, %v941_v40  ;;  %v948_v19 = vshrl.u32 %v5061_v11, %v933_v9 }
 0x12b   : > { %v3888_v4 = vshrl.u32 %v563_v5, 30  ;;  %v934_v8 = vshrl.u32 %v5065_v58, %v933_v9  ;;  %v946_v44 = vor.u32 %v945_v17, %v944_v49  ;;  %vm950_vm12 = vcmp.lt.s32.totalorder %v931_v35, 1 }
 0x12c   : > { %vm953_vm13 = vcmp.lt.s32.totalorder %v931_v35, 4  ;;  %v949_v55 = vor.u32 %v948_v19, %v947_v10  ;;  %vm951_vm14 = vcmp.lt.s32.totalorder %v931_v35, 2  ;;  %vm952_vm15 = vcmp.lt.s32.totalorder %v931_v35, 3 }
 0x12d   : > { %v565_v33 = vshll.u32 %v3888_v4, 30  ;;  %v955_v30 = vsel %vm953_vm13, %v943_v56, 2102212464  ;;  %v954_v31 = vsel %vm950_vm12, %v934_v8, %v937_v6  ;;  %v958_v36 = vsel %vm950_vm12, %v937_v6, %v940_v13 }
 0x12e   : > { %v959_v38 = vsel %vm953_vm13, %v946_v44, 920167782  ;;  %v956_v23 = vsel %vm952_vm15, %v940_v13, %v955_v30  ;;  %v962_v32 = vsel %vm950_vm12, %v940_v13, %v943_v56  ;;  %v782_v40 = vsub.s32 32, %v3863_v22 }
 0x12f   : > { %v3894_v43 = vsub.s32 %v562_v46, %v565_v33  ;;  %v960_v25 = vsel %vm952_vm15, %v943_v56, %v959_v38  ;;  %v963_v54 = vsel %vm953_vm13, %v949_v55, 1326507024  ;;  %v3899_v5 = vadd.f32 %v3628_v15, %v372_v63 }
 0x130   : > { %v961_v9 = vsel %vm951_vm14, %v958_v36, %v960_v25  ;;  %v788_v49 = vshll.u32 %v787_v53, 23  ;;  %v964_v10 = vsel %vm952_vm15, %v946_v44, %v963_v54  ;;  %v3903_v6 = vadd.f32 %v3628_v15, %v375_v45 }
 0x131   : > { %v568_v17 = vsub.s32 0, %v3894_v43  ;;  %v957_v46 = vsel %vm951_vm14, %v954_v31, %v956_v23  ;;  %v965_v19 = vsel %vm951_vm14, %v962_v32, %v964_v10  ;;  %v5048_v53 = vand.u32 2147483647, %v3899_v5 }
 0x132   : > { %v3908_v13 = vmul.u32.u64.low %v3876_v51, %v961_v9  ;;  %v3909_v56 = vmul.u32.u64.high %v3876_v51, %v961_v9, %v3908_v13  ;;  %v3913_v63 = vmul.u32.u64.low %v3876_v51, %v965_v19  ;;  %v3914_v33 = vmul.u32.u64.high %v3876_v51, %v965_v19, %v3913_v63 }
 0x133   : > { %v2819_v8 = vmin.u32 %v568_v17, %v3894_v43  ;;  %v473_v45 = vor.u32 %v472_v27, %v471_v18  ;;  %v784_v44 = vshrl.u32 %v3861_v59, %v782_v40  ;;  %v817_v35 = vand.u32 2139095040, %v3899_v5  ;;  %v332_v40 = vpop.permute.xlu0 %331 }
 0x134   : > { %v5044_v55 = vand.u32 2147483647, %v3903_v6  ;;  %v478_v30 = vand.u32 2147483647, %v3871_v50  ;;  %v783_v31 = vshll.u32 %v3825_v7, %v3863_v22  ;;  %v1129_v38 = vand.u32 2139095040, %v3903_v6 }
 0x135   : > { %v570_v36 = vclz %v2819_v8  ;;  %v789_v23 = vor.u32 4788187, %v788_v49  ;;  %v973_v25 = vmul.u32 %v3876_v51, %v957_v46  ;;  %v976_v61 = vadd.s32 1, %v3909_v56  ;;  %v347_v8 = vpop.permute.xlu1 %346 }
 0x136   : > { %v818_v2 = vshrl.u32 %v817_v35, 23  ;;  %vm975_vm0 = vc.u32 %v3914_v33, %v3908_v13  ;;  %v821_v59 = vand.u32 8388607, %v5048_v53  ;;  %v1130_v27 = vshrl.u32 %v1129_v38, 23 }
 0x137   : > { %v2820_v18 = vadd.s32 4294967294, %v570_v36  ;;  %v785_v50 = vor.u32 %v784_v44, %v783_v31  ;;  %v977_v32 = vsel %vm975_vm0, %v976_v61, %v3909_v56  ;;  %v1133_v22 = vand.u32 8388607, %v5044_v55 }
 0x138   : > { %v2830_v7 = vadd.s32 4294967169, %v818_v2  ;;  %vm608_vm1 = vcmp.lt.s32.totalorder %v3633_v20, 0  ;;  %v978_v51 = vadd.s32 %v977_v32, %v973_v25  ;;  %v2842_v9 = vadd.s32 4294967169, %v1130_v27 }
 0x139   : > { %v480_v54 = vcvt.s32.f32 %v473_v45  ;;  %v790_v49 = vand.u32 2147483647, %v789_v23  ;;  %vm2821_vm2 = vcmp.lt.s32.totalorder %v2820_v18, 0  ;;  %v3941_v10 = vsel %vm608_vm1, %v690_v57, %v3853_v48 }
 0x13a   : > { %v824_v17 = vadd.s32 1, %v2830_v7  ;;  %v979_v46 = vadd.s32 536870912, %v978_v51  ;;  %v822_v19 = vor.u32 8388608, %v821_v59  ;;  %v374_v56 = vmul.f32 %v3623_v14, %v332_v40 }
 0x13b   : > { %v3944_v63 = vmul.f32 %v480_v54, %v478_v30  ;;  %v792_v44 = vcvt.s32.f32 %v785_v50  ;;  %v1134_v45 = vor.u32 8388608, %v1133_v22  ;;  %v3946_v35 = vsel %vm2821_vm2, 0, %v2820_v18 }
 0x13c   : > { %vm825_vm3 = vcmp.gt.s32.totalorder %v824_v17, 0  ;;  %v3948_v31 = vshrl.u32 %v979_v46, 30  ;;  %v1136_v38 = vadd.s32 1, %v2842_v9  ;;  %v558_v48 = vadd.s32 %v3849_v47, %v3846_v16 }
 0x13d   : > { %v826_v36 = vsel %vm825_vm3, %v824_v17, 0  ;;  %v3950_v23 = vmul.f32 %v792_v44, %v790_v49  ;;  %v377_v25 = vmul.f32 %v3623_v14, %v347_v8  ;;  %v3956_v30 = vadd.s32 %v3908_v13, %v3914_v33 }
 0x13e   : > { %5095 = vst [vmem:[#allocation11_spill] sm:$0xff] %v3948_v31  ;;  %v828_v57 = vand.u32 31, %v826_v36  ;;  %v981_v61 = vshll.u32 %v3948_v31, 30  ;;  %v3959_v2 = vshll.u32 %v822_v19, 8  ;;  %v3962_v18 = vadd.f32 %v3628_v15, %v374_v56 }
 0x13f   : > { %v574_v59 = vsub.s32 32, %v3946_v35  ;;  %v578_v27 = vsub.s32 4294967266, %v3946_v35  ;;  %v3966_v32 = vshll.u32 %v1134_v45, 8  ;;  %v827_v14 = vshrl.u32 %v826_v36, 5 }
 0x140   : > { %v829_v50 = vsub.s32 32, %v828_v57  ;;  %v3968_v16 = vsub.s32 %v978_v51, %v981_v61  ;;  %v831_v47 = vshll.u32 %v5065_v58, %v828_v57  ;;  %vm1137_vm4 = vcmp.gt.s32.totalorder %v1136_v38, 0 }
 0x141   : > { %v834_v33 = vshll.u32 %v5056_v60, %v828_v57  ;;  %v837_v9 = vshll.u32 %v5058_v62, %v828_v57  ;;  %v840_v54 = vshll.u32 %v5054_v1, %v828_v57  ;;  %v843_v46 = vshll.u32 %v5082_v3, %v828_v57 }
 0x142   : > { %v832_v13 = vshrl.u32 %v5056_v60, %v829_v50  ;;  %v835_v7 = vshrl.u32 %v5058_v62, %v829_v50  ;;  %v838_v22 = vshrl.u32 %v5054_v1, %v829_v50  ;;  %v984_v40 = vsub.s32 0, %v3968_v16 }
 0x143   : > { %v841_v51 = vshrl.u32 %v5082_v3, %v829_v50  ;;  %v844_v19 = vshrl.u32 %v5061_v11, %v829_v50  ;;  %v3983_v45 = vadd.f32 %v3628_v15, %v377_v25  ;;  %v576_v36 = vshrl.u32 %v558_v48, %v574_v59 }
 0x144   : > { %v833_v49 = vor.u32 %v832_v13, %v831_v47  ;;  %v836_v17 = vor.u32 %v835_v7, %v834_v33  ;;  %v2835_v56 = vmin.u32 %v984_v40, %v3968_v16  ;;  %v839_v8 = vor.u32 %v838_v22, %v837_v9 }
 0x145   : > { %v842_v44 = vor.u32 %v841_v51, %v840_v54  ;;  %v579_v61 = vadd.s32 127, %v578_v27  ;;  %v845_v55 = vor.u32 %v844_v19, %v843_v46  ;;  %v1138_v29 = vsel %vm1137_vm4, %v1136_v38, 0 }
 0x146   : > { %v986_v0 = vclz %v2835_v56  ;;  %v830_v47 = vshrl.u32 %v5065_v58, %v829_v50  ;;  %vm846_vm5 = vcmp.lt.s32.totalorder %v827_v14, 1  ;;  %vm849_vm6 = vcmp.lt.s32.totalorder %v827_v14, 4 }
 0x147   : > { %vm847_vm7 = vcmp.lt.s32.totalorder %v827_v14, 2  ;;  %vm848_vm8 = vcmp.lt.s32.totalorder %v827_v14, 3  ;;  %v854_v57 = vsel %vm846_vm5, %v833_v49, %v836_v17  ;;  %v855_v13 = vsel %vm849_vm6, %v842_v44, 920167782 }
 0x148   : > { %v2836_v33 = vadd.s32 4294967294, %v986_v0  ;;  %v851_v7 = vsel %vm849_vm6, %v839_v8, 2102212464  ;;  %v856_v22 = vsel %vm848_vm8, %v839_v8, %v855_v13  ;;  %v858_v40 = vsel %vm846_vm5, %v836_v17, %v839_v8 }
 0x149   : > { %v580_v15 = vshll.u32 %v579_v61, 23  ;;  %v850_v25 = vsel %vm846_vm5, %v830_v47, %v833_v49  ;;  %v857_v48 = vsel %vm847_vm7, %v854_v57, %v856_v22  ;;  %v859_v59 = vsel %vm849_vm6, %v845_v55, 1326507024 }
 0x14a   : > { %vm2837_vm9 = vcmp.lt.s32.totalorder %v2836_v33, 0  ;;  %v860_v38 = vsel %vm848_vm8, %v842_v44, %v859_v59  ;;  %v3989_v27 = vmul.u32.u64.low %v3959_v2, %v857_v48  ;;  %v3990_v50 = vmul.u32.u64.high %v3959_v2, %v857_v48, %v3989_v27 }
 0x14b   : > { %v3993_v9 = vsel %vm2837_vm9, 0, %v2836_v33  ;;  %v852_v54 = vsel %vm848_vm8, %v836_v17, %v851_v7  ;;  %v861_v0 = vsel %vm847_vm7, %v858_v40, %v860_v38  ;;  %v1140_v51 = vand.u32 31, %v1138_v29 }
 0x14c   : > { %v575_v46 = vshll.u32 %v3894_v43, %v3946_v35  ;;  %v994_v49 = vsub.s32 4294967266, %v3993_v9  ;;  %v5049_v55 = vand.u32 2147483647, %v3962_v18  ;;  %v1025_v19 = vand.u32 2139095040, %v3962_v18 }
 0x14d   : > { %v4002_v56 = vmul.u32.u64.low %v3959_v2, %v861_v0  ;;  %v4003_v8 = vmul.u32.u64.high %v3959_v2, %v861_v0, %v4002_v56  ;;  %v4005_v44 = vshrl.u32 %v1138_v29, 5  ;;  %v1141_v61 = vsub.s32 32, %v1140_v51 }
 0x14e   : > { %v4007_v17 = vor.u32 %v576_v36, %v575_v46  ;;  %v4009_v47 = vor.u32 4788187, %v580_v15  ;;  %v853_v57 = vsel %vm847_vm7, %v850_v25, %v852_v54  ;;  %v872_v43 = vadd.s32 1, %v3990_v50 }
 0x14f   : > { %v990_v35 = vsub.s32 32, %v3993_v9  ;;  %v1143_v13 = vshll.u32 %v5065_v58, %v1140_v51  ;;  %v1144_v33 = vshrl.u32 %v5056_v60, %v1141_v61  ;;  %v1147_v7 = vshrl.u32 %v5058_v62, %v1141_v61 }
 0x150   : > { %v995_v22 = vadd.s32 127, %v994_v49  ;;  %v1146_v29 = vshll.u32 %v5056_v60, %v1140_v51  ;;  %v1149_v36 = vshll.u32 %v5058_v62, %v1140_v51  ;;  %v1150_v40 = vshrl.u32 %v5054_v1, %v1141_v61 }
 0x151   : > { %v869_v14 = vmul.u32 %v3959_v2, %v853_v57  ;;  %vm871_vm10 = vc.u32 %v4003_v8, %v3989_v27  ;;  %v1152_v15 = vshll.u32 %v5054_v1, %v1140_v51  ;;  %vm1158_vm11 = vcmp.lt.s32.totalorder %v4005_v44, 1 }
 0x152   : > { %v873_v25 = vsel %vm871_vm10, %v872_v43, %v3990_v50  ;;  %v1145_v48 = vor.u32 %v1144_v33, %v1143_v13  ;;  %v1148_v59 = vor.u32 %v1147_v7, %v1146_v29  ;;  %v1151_v38 = vor.u32 %v1150_v40, %v1149_v36 }
 0x153   : > { %v874_v54 = vadd.s32 %v873_v25, %v869_v14  ;;  %v1153_v0 = vshrl.u32 %v5082_v3, %v1141_v61  ;;  %v1155_v46 = vshll.u32 %v5082_v3, %v1140_v51  ;;  %v1156_v49 = vshrl.u32 %v5061_v11, %v1141_v61 }
 0x154   : > { %v991_v2 = vshll.u32 %v3968_v16, %v3993_v9  ;;  %v992_v56 = vshrl.u32 %v3956_v30, %v990_v35  ;;  %v996_v57 = vshll.u32 %v995_v22, 23  ;;  %vm1159_vm12 = vcmp.lt.s32.totalorder %v4005_v44, 2 }
 0x155   : > { %v875_v53 = vadd.s32 536870912, %v874_v54  ;;  %v1154_v50 = vor.u32 %v1153_v0, %v1152_v15  ;;  %v1157_v43 = vor.u32 %v1156_v49, %v1155_v46  ;;  %vm1161_vm13 = vcmp.lt.s32.totalorder %v4005_v44, 4 }
 0x156   : > { %v1142_v13 = vshrl.u32 %v5065_v58, %v1141_v61  ;;  %v1163_v33 = vsel %vm1161_vm13, %v1151_v38, 2102212464  ;;  %v1166_v51 = vsel %vm1158_vm11, %v1145_v48, %v1148_v59  ;;  %v1170_v7 = vsel %vm1158_vm11, %v1148_v59, %v1151_v38 }
 0x157   : > { %v4039_v16 = vshrl.u32 %v875_v53, 30  ;;  %vm1160_vm14 = vcmp.lt.s32.totalorder %v4005_v44, 3  ;;  %v1167_v30 = vsel %vm1161_vm13, %v1154_v50, 920167782  ;;  %v1171_v9 = vsel %vm1161_vm13, %v1157_v43, 1326507024 }
 0x158   : > { %v997_v35 = vor.u32 4788187, %v996_v57  ;;  %v1162_v22 = vsel %vm1158_vm11, %v1142_v13, %v1145_v48  ;;  %v1168_v29 = vsel %vm1160_vm14, %v1151_v38, %v1167_v30  ;;  %v1172_v36 = vsel %vm1160_vm14, %v1154_v50, %v1171_v9 }
 0x159   : > { %5096 = vst [vmem:[#allocation12_spill] sm:$0xff] %v4039_v16  ;;  %v877_v61 = vshll.u32 %v4039_v16, 30  ;;  %v1169_v40 = vsel %vm1159_vm12, %v1166_v51, %v1168_v29  ;;  %v1173_v14 = vsel %vm1159_vm12, %v1170_v7, %v1172_v36  ;;  %v1026_v53 = vshrl.u32 %v1025_v19, 23 }
 0x15a   : > { %v1164_v15 = vsel %vm1160_vm14, %v1148_v59, %v1163_v33  ;;  %v4050_v25 = vmul.u32.u64.low %v3966_v32, %v1173_v14  ;;  %v4051_v0 = vmul.u32.u64.high %v3966_v32, %v1173_v14, %v4050_v25  ;;  %v1029_v46 = vand.u32 8388607, %v5049_v55  ;;  %v3183_v14 = vld [vmem:[#allocation2] ss:$16 sps:$4 sm:$0xff]  }
 0x15b   : > { %v4055_v48 = vsub.s32 %v874_v54, %v877_v61  ;;  %v4058_v38 = vmul.u32.u64.low %v3966_v32, %v1169_v40  ;;  %v4059_v49 = vmul.u32.u64.high %v3966_v32, %v1169_v40, %v4058_v38  ;;  %v2838_v57 = vadd.s32 4294967169, %v1026_v53  ;;  %v342_v61 = vpop.permute.xlu0 %341  ;;  %v3181_v40 = vld [vmem:[#allocation2 + $0xc] ss:$16 sps:$4 sm:$0xff]  }
 0x15c   : > { %v482_v50 = vxor.u32 2147483648, %v3944_v63  ;;  %v582_v59 = vand.u32 2147483647, %v4009_v47  ;;  %v1337_v43 = vand.u32 2139095040, %v3983_v45  ;;  %v993_v13 = vor.u32 %v992_v56, %v991_v2  ;;  %v3179_v2 = vld [vmem:[#allocation2 + $0x4] ss:$16 sps:$4 sm:$0xff]   ;;  %2072 = vmatprep.subr.bf16.mxu1 %v3181_v40 }
 0x15d   : > { %v880_v33 = vsub.s32 0, %v4055_v48  ;;  %v1165_v54 = vsel %vm1159_vm12, %v1162_v22, %v1164_v15  ;;  %v1032_v51 = vadd.s32 1, %v2838_v57  ;;  %v584_v7 = vcvt.s32.f32 %v4007_v17  ;;  %1971 = vmatprep.subr.bf16.mxu0 %v3179_v2  ;;  %v3190_v2 = vld [vmem:[#allocation2 + $0x28] ss:$16 sps:$4 sm:$0xff]  }
 0x15e   : > { %vm1183_vm15 = vc.u32 %v4051_v0, %v4058_v38  ;;  %v1030_v30 = vor.u32 8388608, %v1029_v46  ;;  %v1338_v9 = vshrl.u32 %v1337_v43, 23  ;;  %v998_v29 = vand.u32 2147483647, %v997_v35  ;;  %v3184_v46 = vld [vmem:[#allocation2 + $0x8] ss:$16 sps:$4 sm:$0xff]   ;;  %1972 = vmatpush1.bf16.msra.mxu0 %v3183_v14 }
 0x15f   : > { %v2831_v36 = vmin.u32 %v880_v33, %v4055_v48  ;;  %v1184_v47 = vadd.s32 1, %v4059_v49  ;;  %vm1033_vm0 = vcmp.gt.s32.totalorder %v1032_v51, 0  ;;  %v4074_v56 = vmul.f32 %v584_v7, %v582_v59  ;;  %2073 = vmatpush1.bf16.msra.mxu1 %v3184_v46 }
 0x160   : > { %v4078_v44 = vadd.s32 %v3989_v27, %v4003_v8  ;;  %v1181_v17 = vmul.u32 %v3966_v32, %v1165_v54  ;;  %v1034_v22 = vsel %vm1033_vm0, %v1032_v51, 0  ;;  %v1000_v53 = vcvt.s32.f32 %v993_v13  ;;  %v3185_v54 = vld [vmem:[#allocation2 + $0x24] ss:$16 sps:$4 sm:$0xff]   ;;  %v3187_v51 = vld [vmem:[#allocation2 + $0x2c] ss:$16 sps:$4 sm:$0xff]  }
 0x161   : > { %v882_v35 = vclz %v2831_v36  ;;  %v1185_v15 = vsel %vm1183_vm15, %v1184_v47, %v4059_v49  ;;  %v1036_v25 = vand.u32 31, %v1034_v22  ;;  %v4085_v59 = vshll.u32 %v1030_v30, 8  ;;  %v4095_v49 = vld [vmem:[%s5035_s1] ss:$0 sm:$0xff]  ;;  %v357_v36 = vpop.permute.xlu1 %356  ;;  %1973 = vmatprep.subr.bf16.mxu0 %v3185_v54  ;;  %2074 = vmatprep.subr.bf16.mxu1 %v3187_v51  ;;  %v3191_v54 = vld [vmem:[#allocation2 + $0x44] ss:$16 sps:$4 sm:$0xff]  }
 0x162   : > { %v1186_v57 = vadd.s32 %v1185_v15, %v1181_v17  ;;  %v5060_v27 = vand.u32 2147483647, %v3983_v45  ;;  %v2850_v32 = vadd.s32 4294967169, %v1338_v9  ;;  %v4088_v8 = vmul.f32 %v1000_v53, %v998_v29  ;;  %v3189_v47 = vld [vmem:[#allocation2 + $0x20] ss:$16 sps:$4 sm:$0xff]  }
 0x163   : > { %v2832_v43 = vadd.s32 4294967294, %v882_v35  ;;  %v4090_v13 = vsub.s32 32, %v1036_v25  ;;  %v376_v33 = vmul.f32 %v4095_v49, %v342_v61  ;;  %v4098_v30 = vshrl.u32 %v1034_v22, 5  ;;  %1974 = vmatpush1.bf16.msra.mxu0 %v3189_v47  ;;  %2075 = vmatpush1.bf16.msra.mxu1 %v3190_v2  ;;  %v3193_v51 = vld [vmem:[#allocation2 + $0x4c] ss:$16 sps:$4 sm:$0xff]  }
 0x164   : > { %v1187_v7 = vadd.s32 536870912, %v1186_v57  ;;  %v1039_v9 = vshll.u32 %v5065_v58, %v1036_v25  ;;  %v1042_v29 = vshll.u32 %v5056_v60, %v1036_v25  ;;  %v1048_v40 = vshll.u32 %v5054_v1, %v1036_v25  ;;  %1975 = vmatprep.subr.bf16.mxu0 %v3191_v54  ;;  %2076 = vmatprep.subr.bf16.mxu1 %v3193_v51 }
 0x165   : > { %vm2833_vm2 = vcmp.lt.s32.totalorder %v2832_v43, 0  ;;  %v1040_v17 = vshrl.u32 %v5056_v60, %v4090_v13  ;;  %v1043_v61 = vshrl.u32 %v5058_v62, %v4090_v13  ;;  %v1046_v53 = vshrl.u32 %v5054_v1, %v4090_v13  ;;  %v3196_v1 = vld [vmem:[#allocation2 + $0x48] ss:$16 sps:$4 sm:$0xff]  }
 0x166   : > { %v885_v22 = vsel %vm2833_vm2, 0, %v2832_v43  ;;  %v4107_v14 = vshrl.u32 %v1187_v7, 30  ;;  %v1049_v35 = vshrl.u32 %v5082_v3, %v4090_v13  ;;  %v1045_v55 = vshll.u32 %v5058_v62, %v1036_v25 }
 0x167   : > { %v886_v15 = vsub.s32 32, %v885_v22  ;;  %v890_v46 = vsub.s32 4294967266, %v885_v22  ;;  %v4115_v39 = vmul.f32 %v4095_v49, %v357_v36  ;;  %v1041_v7 = vor.u32 %v1040_v17, %v1039_v9  ;;  %1976 = vmatpush1.bf16.msra.mxu0 %v3195_v26  ;;  %2077 = vmatpush1.bf16.msra.mxu1 %v3196_v1 }
 0x168   : > { %5097 = vst [vmem:[#allocation13_spill] sm:$0xff] %v4107_v14  ;;  %v1189_v43 = vshll.u32 %v4107_v14, 30  ;;  %v1044_v24 = vor.u32 %v1043_v61, %v1042_v29  ;;  %v1050_v52 = vor.u32 %v1049_v35, %v1048_v40  ;;  %v1047_v19 = vor.u32 %v1046_v53, %v1045_v55  ;;  %v4132_v55 = vld [vmem:[%s5035_s1 + $0x1] ss:$0 sm:$0xff]  ;;  %v3199_v61 = vld [vmem:[#allocation2 + $0x6c] ss:$16 sps:$4 sm:$0xff]  }
 0x169   : > { %v891_v60 = vadd.s32 127, %v890_v46  ;;  %v1051_v47 = vshll.u32 %v5082_v3, %v1036_v25  ;;  %v1052_v62 = vshrl.u32 %v5061_v11, %v4090_v13  ;;  %vm400_vm3 = vcmp.lt.s32.totalorder %v3636_v21, 0  ;;  %2078 = vmatprep.subr.bf16.mxu1 %v3199_v61  ;;  %v3202_v53 = vld [vmem:[#allocation2 + $0x68] ss:$16 sps:$4 sm:$0xff]   ;;  %v3205_v61 = vld [vmem:[#allocation2 + $0x8c] ss:$16 sps:$4 sm:$0xff]  }
 0x16a   : > { %vm712_vm4 = vcmp.lt.s32.totalorder %v3649_v34, 0  ;;  %v4123_v36 = vsub.s32 %v1186_v57, %v1189_v43  ;;  %v4127_v9 = vand.u32 8388607, %v5060_v27  ;;  %v1344_v29 = vadd.s32 1, %v2850_v32  ;;  %v3197_v57 = vld [vmem:[#allocation2 + $0x64] ss:$16 sps:$4 sm:$0xff]  }
 0x16b   : > { %v4135_v25 = vadd.f32 %v4132_v55, %v376_v33  ;;  %v888_v2 = vshrl.u32 %v4078_v44, %v886_v15  ;;  %v1053_v17 = vor.u32 %v1052_v62, %v1051_v47  ;;  %vm1054_vm5 = vcmp.lt.s32.totalorder %v4098_v30, 1  ;;  %1977 = vmatprep.subr.bf16.mxu0 %v3197_v57  ;;  %v3201_v33 = vld [vmem:[#allocation2 + $0x60] ss:$16 sps:$4 sm:$0xff]   ;;  %2079 = vmatpush1.bf16.msra.mxu1 %v3202_v53  ;;  %v3203_v43 = vld [vmem:[#allocation2 + $0x84] ss:$16 sps:$4 sm:$0xff]  }
 0x16c   : > { %vm1057_vm6 = vcmp.lt.s32.totalorder %v4098_v30, 4  ;;  %v1192_v32 = vsub.s32 0, %v4123_v36  ;;  %vm1056_vm7 = vcmp.lt.s32.totalorder %v4098_v30, 3  ;;  %v1062_v40 = vsel %vm1054_vm5, %v1041_v7, %v1044_v24  ;;  %1978 = vmatpush1.bf16.msra.mxu0 %v3201_v33  ;;  %2080 = vmatprep.subr.bf16.mxu1 %v3205_v61 }
 0x16d   : > { %v1063_v26 = vsel %vm1057_vm6, %v1050_v52, 920167782  ;;  %v887_v44 = vshll.u32 %v4055_v48, %v885_v22  ;;  %v892_v62 = vshll.u32 %v891_v60, 23  ;;  %vm1055_vm8 = vcmp.lt.s32.totalorder %v4098_v30, 2  ;;  %1979 = vmatprep.subr.bf16.mxu0 %v3203_v43  ;;  %v3213_v43 = vld [vmem:[#allocation2 + $0xa0] ss:$16 sps:$4 sm:$0xff]  }
 0x16e   : > { %v1064_v1 = vsel %vm1056_vm7, %v1047_v19, %v1063_v26  ;;  %v2843_v35 = vmin.u32 %v1192_v32, %v4123_v36  ;;  %v1059_v15 = vsel %vm1057_vm6, %v1047_v19, 2102212464  ;;  %v1066_v60 = vsel %vm1054_vm5, %v1044_v24, %v1047_v19  ;;  %v3223_v30 = vld [vmem:[#allocation2 + $0xec] ss:$16 sps:$4 sm:$0xff]  }
 0x16f   : > { %v1065_v46 = vsel %vm1055_vm8, %v1062_v40, %v1064_v1  ;;  %v1038_v48 = vshrl.u32 %v5065_v58, %v4090_v13  ;;  %v1067_v22 = vsel %vm1057_vm6, %v1053_v17, 1326507024  ;;  %v4166_v47 = vor.u32 %v888_v2, %v887_v44  ;;  %v3207_v13 = vld [vmem:[#allocation2 + $0x80] ss:$16 sps:$4 sm:$0xff]   ;;  %v3208_v2 = vld [vmem:[#allocation2 + $0x88] ss:$16 sps:$4 sm:$0xff]  }
 0x170   : > { %v4162_v54 = vmul.u32.u64.low %v4085_v59, %v1065_v46  ;;  %v4163_v51 = vmul.u32.u64.high %v4085_v59, %v1065_v46, %v4162_v54  ;;  %v1194_v57 = vclz %v2843_v35  ;;  %v1068_v19 = vsel %vm1056_vm7, %v1050_v52, %v1067_v22  ;;  %1980 = vmatpush1.bf16.msra.mxu0 %v3207_v13  ;;  %2081 = vmatpush1.bf16.msra.mxu1 %v3208_v2  ;;  %v3209_v35 = vld [vmem:[#allocation2 + $0xa4] ss:$16 sps:$4 sm:$0xff]   ;;  %v3211_v46 = vld [vmem:[#allocation2 + $0xac] ss:$16 sps:$4 sm:$0xff]  }
 0x171   : > { %vm1345_vm9 = vcmp.gt.s32.totalorder %v1344_v29, 0  ;;  %v1058_v17 = vsel %vm1054_vm5, %v1038_v48, %v1041_v7  ;;  %v1060_v32 = vsel %vm1056_vm7, %v1044_v24, %v1059_v15  ;;  %v1069_v40 = vsel %vm1055_vm8, %v1066_v60, %v1068_v19  ;;  %1981 = vmatprep.subr.bf16.mxu0 %v3209_v35  ;;  %2082 = vmatprep.subr.bf16.mxu1 %v3211_v46  ;;  %v3220_v35 = vld [vmem:[#allocation2 + $0xc8] ss:$16 sps:$4 sm:$0xff]  }
 0x172   : > { %v1346_v26 = vsel %vm1345_vm9, %v1344_v29, 0  ;;  %v4176_v44 = vor.u32 4788187, %v892_v62  ;;  %v2844_v1 = vadd.s32 4294967294, %v1194_v57  ;;  %v4187_v24 = vsel %vm400_vm3, %v482_v50, %v3944_v63  ;;  %v3214_v57 = vld [vmem:[#allocation2 + $0xa8] ss:$16 sps:$4 sm:$0xff]  }
 0x173   : > { %v4179_v52 = vmul.u32.u64.low %v4085_v59, %v1069_v40  ;;  %v4180_v33 = vmul.u32.u64.high %v4085_v59, %v1069_v40, %v4179_v52  ;;  %v5098_v7 = vxor.u32 2147483648, %v3950_v23  ;;  %v1348_v53 = vand.u32 31, %v1346_v26 }
 0x174   : > { %vm2845_vm10 = vcmp.lt.s32.totalorder %v2844_v1, 0  ;;  %v1061_v63 = vsel %vm1055_vm8, %v1058_v17, %v1060_v32  ;;  %v1080_v50 = vadd.s32 1, %v4163_v51  ;;  %v4203_v60 = vadd.s32 %v4058_v38, %v4051_v0  ;;  %1982 = vmatpush1.bf16.msra.mxu0 %v3213_v43  ;;  %v3215_v17 = vld [vmem:[#allocation2 + $0xc4] ss:$16 sps:$4 sm:$0xff]   ;;  %v3217_v32 = vld [vmem:[#allocation2 + $0xcc] ss:$16 sps:$4 sm:$0xff]   ;;  %2083 = vmatpush1.bf16.msra.mxu1 %v3214_v57 }
 0x175   : > { %v4194_v29 = vsel %vm712_vm4, %v5098_v7, %v3950_v23  ;;  %v1342_v23 = vor.u32 8388608, %v4127_v9  ;;  %v1349_v48 = vsub.s32 32, %v1348_v53  ;;  %v4208_v22 = vadd.f32 %v4132_v55, %v4115_v39  ;;  %1983 = vmatprep.subr.bf16.mxu0 %v3215_v17  ;;  %2084 = vmatprep.subr.bf16.mxu1 %v3217_v32 }
 0x176   : > { %5099 = vst [vmem:[#allocation14_spill] sm:$0xff] %v4194_v29  ;;  %v4212_v61 = vshrl.u32 %v1346_v26, 5  ;;  %v5064_v13 = vand.u32 2147483647, %v4135_v25  ;;  %v4216_v0 = vsel %vm2845_vm10, 0, %v2844_v1  ;;  %v1077_v38 = vmul.u32 %v4085_v59, %v1061_v63 }
 0x177   : > { %5100 = vst [vmem:[#allocation15_spill] sm:$0xff] %v4208_v22  ;;  %vm1079_vm11 = vc.u32 %v4180_v33, %v4162_v54  ;;  %v5101_v39 = vmov 2475754826   ;;  %v1351_v26 = vshll.u32 %v5065_v58, %v1348_v53  ;;  %v5102_v52 = vmov 2131351028  }
 0x178   : > { %v1352_v9 = vshrl.u32 %v5101_v39, %v1349_v48  ;;  %v1081_v40 = vsel %vm1079_vm11, %v1080_v50, %v4163_v51  ;;  %v1354_v2 = vshll.u32 %v5101_v39, %v1348_v53  ;;  %v1355_v7 = vshrl.u32 %v5102_v52, %v1349_v48  ;;  %v3219_v1 = vld [vmem:[#allocation2 + $0xc0] ss:$16 sps:$4 sm:$0xff]   ;;  %2085 = vmatpush1.bf16.msra.mxu1 %v3220_v35 }
 0x179   : > { %v1082_v59 = vadd.s32 %v1081_v40, %v1077_v38  ;;  %v1357_v63 = vshll.u32 %v5102_v52, %v1348_v53  ;;  %v5103_v46 = vmov 2102212464   ;;  %v4228_v15 = vshll.u32 %v1342_v23, 8  ;;  %1984 = vmatpush1.bf16.msra.mxu0 %v3219_v1  ;;  %v3221_v40 = vld [vmem:[#allocation2 + $0xe4] ss:$16 sps:$4 sm:$0xff]   ;;  %2086 = vmatprep.subr.bf16.mxu1 %v3223_v30 }
 0x17a   : > { %v1358_v27 = vshrl.u32 %v5103_v46, %v1349_v48  ;;  %v1202_v43 = vsub.s32 4294967266, %v4216_v0  ;;  %v1353_v51 = vor.u32 %v1352_v9, %v1351_v26  ;;  %v1356_v50 = vor.u32 %v1355_v7, %v1354_v2  ;;  %v3225_v9 = vld [vmem:[#allocation2 + $0xe0] ss:$16 sps:$4 sm:$0xff]   ;;  %v352_v2 = vpop.permute.xlu0 %351  ;;  %1985 = vmatprep.subr.bf16.mxu0 %v3221_v40 }
 0x17b   : > { %vm1366_vm12 = vcmp.lt.s32.totalorder %v4212_v61, 1  ;;  %v1083_v62 = vadd.s32 536870912, %v1082_v59  ;;  %v1360_v57 = vshll.u32 %v5103_v46, %v1348_v53  ;;  %v1361_v38 = vshrl.u32 %v5082_v3, %v1349_v48 }
 0x17c   : > { %v1359_v19 = vor.u32 %v1358_v27, %v1357_v63  ;;  %v1363_v23 = vshll.u32 %v5082_v3, %v1348_v53  ;;  %v1364_v17 = vshrl.u32 %v5061_v11, %v1349_v48  ;;  %vm1367_vm13 = vcmp.lt.s32.totalorder %v4212_v61, 2  ;;  %v3226_v53 = vld [vmem:[#allocation2 + $0xe8] ss:$16 sps:$4 sm:$0xff]  }
 0x17d   : > { %vm1369_vm14 = vcmp.lt.s32.totalorder %v4212_v61, 4  ;;  %v4238_v32 = vshrl.u32 %v1083_v62, 30  ;;  %v1362_v27 = vor.u32 %v1361_v38, %v1360_v57  ;;  %vm1368_vm15 = vcmp.lt.s32.totalorder %v4212_v61, 3  ;;  %1986 = vmatpush1.bf16.msra.mxu0 %v3225_v9  ;;  %2087 = vmatpush1.bf16.msra.mxu1 %v3226_v53 }
 0x17e   : > { %v1371_v26 = vsel %vm1369_vm14, %v1359_v19, 2102212464  ;;  %v1198_v7 = vsub.s32 32, %v4216_v0  ;;  %v1350_v1 = vshrl.u32 %v5065_v58, %v1349_v48  ;;  %v1365_v63 = vor.u32 %v1364_v17, %v1363_v23 }
 0x17f   : > { %5104 = vst [vmem:[#allocation16_spill] sm:$0xff] %v4238_v32  ;;  %v1374_v35 = vsel %vm1366_vm12, %v1353_v51, %v1356_v50  ;;  %v1203_v62 = vadd.s32 127, %v1202_v43  ;;  %v1085_v57 = vshll.u32 %v4238_v32, 30  ;;  %v1375_v38 = vsel %vm1369_vm14, %v1362_v27, 920167782 }
 0x180   : > { %v1378_v11 = vsel %vm1366_vm12, %v1356_v50, %v1359_v19  ;;  %v1370_v30 = vsel %vm1366_vm12, %v1350_v1, %v1353_v51  ;;  %v1372_v48 = vsel %vm1368_vm15, %v1356_v50, %v1371_v26  ;;  %v1376_v40 = vsel %vm1368_vm15, %v1359_v19, %v1375_v38 }
 0x181   : > { %v1379_v43 = vsel %vm1369_vm14, %v1365_v63, 1326507024  ;;  %v4260_v23 = vsub.s32 %v1082_v59, %v1085_v57  ;;  %v1377_v17 = vsel %vm1367_vm13, %v1374_v35, %v1376_v40  ;;  %v1233_v51 = vand.u32 2139095040, %v4135_v25 }
 0x182   : > { %v1380_v9 = vsel %vm1368_vm15, %v1362_v27, %v1379_v43  ;;  %v1200_v1 = vshrl.u32 %v4203_v60, %v1198_v7  ;;  %v4271_v19 = vmul.u32.u64.low %v4228_v15, %v1377_v17  ;;  %v4272_v26 = vmul.u32.u64.high %v4228_v15, %v1377_v17, %v4271_v19  ;;  %v362_v27 = vpop.permute.xlu0 %361 }
 0x183   : > { %v1381_v50 = vsel %vm1367_vm13, %v1378_v11, %v1380_v9  ;;  %v1088_v59 = vsub.s32 0, %v4260_v23  ;;  %v1234_v35 = vshrl.u32 %v1233_v51, 23  ;;  %v1199_v57 = vshll.u32 %v4123_v36, %v4216_v0 }
 0x184   : > { %v4277_v53 = vmul.u32.u64.low %v4228_v15, %v1381_v50  ;;  %v4278_v63 = vmul.u32.u64.high %v4228_v15, %v1381_v50, %v4277_v53  ;;  %v1204_v60 = vshll.u32 %v1203_v62, 23  ;;  %v1373_v11 = vsel %vm1367_vm13, %v1370_v30, %v1372_v48 }
 0x185   : > { %v1237_v7 = vand.u32 8388607, %v5064_v13  ;;  %v5105_v38 = vand.u32 2147483647, %v4176_v44  ;;  %v5106_v40 = vcvt.s32.f32 %v4166_v47  ;;  %v2839_v17 = vmin.u32 %v1088_v59, %v4260_v23 }
 0x186   : > { %v2846_v9 = vadd.s32 4294967169, %v1234_v35  ;;  %v5063_v51 = vand.u32 2147483647, %v4208_v22  ;;  %v4294_v50 = vor.u32 %v1200_v1, %v1199_v57  ;;  %v1392_v36 = vadd.s32 1, %v4272_v26 }
 0x187   : > { %v4290_v43 = vmul.f32 %v5106_v40, %v5105_v38  ;;  %v1545_v61 = vand.u32 2139095040, %v4208_v22  ;;  %v380_v0 = vmul.f32 %v4095_v49, %v362_v27  ;;  %v1090_v62 = vclz %v2839_v17 }
 0x188   : > { %v1389_v44 = vmul.u32 %v4228_v15, %v1373_v11  ;;  %vm1391_vm0 = vc.u32 %v4278_v63, %v4271_v19  ;;  %v1240_v47 = vadd.s32 1, %v2846_v9  ;;  %v4302_v30 = vor.u32 4788187, %v1204_v60 }
 0x189   : > { %v1393_v48 = vsel %vm1391_vm0, %v1392_v36, %v4272_v26  ;;  %v1238_v59 = vor.u32 8388608, %v1237_v7  ;;  %v378_v1 = vmul.f32 %v4095_v49, %v352_v2  ;;  %v2840_v53 = vadd.s32 4294967294, %v1090_v62 }
 0x18a   : > { %v1394_v35 = vadd.s32 %v1393_v48, %v1389_v44  ;;  %vm1241_vm2 = vcmp.gt.s32.totalorder %v1240_v47, 0  ;;  %v4308_v27 = vand.u32 8388607, %v5063_v51  ;;  %v1546_v11 = vshrl.u32 %v1545_v61, 23 }
 0x18b   : > { %v1242_v57 = vsel %vm1241_vm2, %v1240_v47, 0  ;;  %v4312_v38 = vadd.f32 %v4132_v55, %v380_v0  ;;  %v1078_v26 = vadd.s32 %v4162_v54, %v4180_v33  ;;  %vm2841_vm5 = vcmp.lt.s32.totalorder %v2840_v53, 0 }
 0x18c   : > { %v1395_v60 = vadd.s32 536870912, %v1394_v35  ;;  %v1244_v49 = vand.u32 31, %v1242_v57  ;;  %v1093_v40 = vsel %vm2841_vm5, 0, %v2840_v53  ;;  %v4318_v17 = vshll.u32 %v1238_v59, 8 }
 0x18d   : > { %v1098_v9 = vsub.s32 4294967266, %v1093_v40  ;;  %v4324_v0 = vadd.f32 %v4132_v55, %v378_v1  ;;  %v1094_v62 = vsub.s32 32, %v1093_v40  ;;  %v1243_v54 = vshrl.u32 %v1242_v57, 5 }
 0x18e   : > { %v4320_v36 = vshrl.u32 %v1395_v60, 30  ;;  %v1245_v33 = vsub.s32 32, %v1244_v49  ;;  %v2858_v44 = vadd.s32 4294967169, %v1546_v11  ;;  %v1247_v51 = vshll.u32 %v5065_v58, %v1244_v49 }
 0x18f   : > { %v1099_v47 = vadd.s32 127, %v1098_v9  ;;  %v1250_v59 = vshll.u32 %v5101_v39, %v1244_v49  ;;  %v1253_v13 = vshll.u32 %v5102_v52, %v1244_v49  ;;  %v1256_v57 = vshll.u32 %v5103_v46, %v1244_v49 }
 0x190   : > { %5107 = vst [vmem:[#allocation17_spill] sm:$0xff] %v4320_v36  ;;  %v1397_v48 = vshll.u32 %v4320_v36, 30  ;;  %v1248_v53 = vshrl.u32 %v5101_v39, %v1245_v33  ;;  %v1251_v60 = vshrl.u32 %v5102_v52, %v1245_v33  ;;  %v1254_v55 = vshrl.u32 %v5103_v46, %v1245_v33 }
 0x191   : > { %v1100_v1 = vshll.u32 %v1099_v47, 23  ;;  %v1257_v11 = vshrl.u32 %v5082_v3, %v1245_v33  ;;  %v1552_v2 = vadd.s32 1, %v2858_v44  ;;  %v1095_v58 = vshll.u32 %v4260_v23, %v1093_v40 }
 0x192   : > { %v4333_v15 = vsub.s32 %v1394_v35, %v1397_v48  ;;  %v1249_v9 = vor.u32 %v1248_v53, %v1247_v51  ;;  %v1252_v61 = vor.u32 %v1251_v60, %v1250_v59  ;;  %v1255_v7 = vor.u32 %v1254_v55, %v1253_v13 }
 0x193   : > { %v1096_v36 = vshrl.u32 %v1078_v26, %v1094_v62  ;;  %v1258_v32 = vor.u32 %v1257_v11, %v1256_v57  ;;  %v1101_v22 = vor.u32 4788187, %v1100_v1  ;;  %v5108_v31 = vmov 683565275  }
 0x194   : > { %v1400_v14 = vsub.s32 0, %v4333_v15  ;;  %v1246_v16 = vshrl.u32 %v5108_v31, %v1245_v33  ;;  %v1259_v35 = vshll.u32 %v5082_v3, %v1244_v49  ;;  %v5109_v47 = vmov 1326507024  }
 0x195   : > { %v1260_v48 = vshrl.u32 %v5109_v47, %v1245_v33  ;;  %vm1262_vm6 = vcmp.lt.s32.totalorder %v1243_v54, 1  ;;  %vm1264_vm7 = vcmp.lt.s32.totalorder %v1243_v54, 3  ;;  %vm1265_vm8 = vcmp.lt.s32.totalorder %v1243_v54, 4 }
 0x196   : > { %v2851_v29 = vmin.u32 %v1400_v14, %v4333_v15  ;;  %v1267_v51 = vsel %vm1265_vm8, %v1255_v7, 2102212464  ;;  %v1270_v23 = vsel %vm1262_vm6, %v1249_v9, %v1252_v61  ;;  %v1271_v26 = vsel %vm1265_vm8, %v1258_v32, 920167782 }
 0x197   : > { %v1261_v13 = vor.u32 %v1260_v48, %v1259_v35  ;;  %v1097_v40 = vor.u32 %v1096_v36, %v1095_v58  ;;  %vm1263_vm9 = vcmp.lt.s32.totalorder %v1243_v54, 2  ;;  %v1272_v44 = vsel %vm1264_vm7, %v1255_v7, %v1271_v26 }
 0x198   : > { %v1402_v62 = vclz %v2851_v29  ;;  %v1102_v59 = vand.u32 2147483647, %v1101_v22  ;;  %v1273_v49 = vsel %vm1263_vm9, %v1270_v23, %v1272_v44  ;;  %v1274_v33 = vsel %vm1262_vm6, %v1252_v61, %v1255_v7 }
 0x199   : > { %v1275_v53 = vsel %vm1265_vm8, %v1261_v13, 1326507024  ;;  %v1266_v60 = vsel %vm1262_vm6, %v1246_v16, %v1249_v9  ;;  %v1268_v55 = vsel %vm1264_vm7, %v1252_v61, %v1267_v51  ;;  %vm1553_vm10 = vcmp.gt.s32.totalorder %v1552_v2, 0 }
 0x19a   : > { %v2852_v14 = vadd.s32 4294967294, %v1402_v62  ;;  %v1276_v1 = vsel %vm1264_vm7, %v1258_v32, %v1275_v53  ;;  %v4352_v58 = vmul.u32.u64.low %v4318_v17, %v1273_v49  ;;  %v4353_v29 = vmul.u32.u64.high %v4318_v17, %v1273_v49, %v4352_v58 }
 0x19b   : > { %v1277_v57 = vsel %vm1263_vm9, %v1274_v33, %v1276_v1  ;;  %v5079_v36 = vand.u32 2147483647, %v4324_v0  ;;  %v1104_v16 = vcvt.s32.f32 %v1097_v40  ;;  %v1269_v61 = vsel %vm1263_vm9, %v1266_v60, %v1268_v55 }
 0x19c   : > { %vm2853_vm11 = vcmp.lt.s32.totalorder %v2852_v14, 0  ;;  %v4357_v22 = vmul.u32.u64.low %v4318_v17, %v1277_v57  ;;  %v4358_v7 = vmul.u32.u64.high %v4318_v17, %v1277_v57, %v4357_v22  ;;  %v1554_v32 = vsel %vm1553_vm10, %v1552_v2, 0 }
 0x19d   : > { %v1405_v11 = vsel %vm2853_vm11, 0, %v2852_v14  ;;  %v5110_v9 = vand.u32 2147483647, %v4302_v30  ;;  %v5111_v35 = vcvt.s32.f32 %v4294_v50  ;;  %v1390_v13 = vadd.s32 %v4271_v19, %v4278_v63 }
 0x19e   : > { %v1406_v51 = vsub.s32 32, %v1405_v11  ;;  %v1410_v23 = vsub.s32 4294967266, %v1405_v11  ;;  %v4370_v26 = vmul.f32 %v1104_v16, %v1102_v59  ;;  %v1288_v62 = vadd.s32 1, %v4353_v29 }
 0x19f   : > { %v4366_v48 = vmul.f32 %v5111_v35, %v5110_v9  ;;  %v1556_v40 = vand.u32 31, %v1554_v32  ;;  %v5112_v54 = vor.u32 8388608, %v4308_v27  ;;  %v1285_v30 = vmul.u32 %v4318_v17, %v1269_v61 }
 0x1a0   : > { %v1411_v2 = vadd.s32 127, %v1410_v23  ;;  %vm1287_vm12 = vc.u32 %v4358_v7, %v4352_v58  ;;  %v1441_v50 = vand.u32 2139095040, %v4324_v0  ;;  %v1408_v19 = vshrl.u32 %v1390_v13, %v1406_v51 }
 0x1a1   : > { %v4375_v44 = vshll.u32 %v5112_v54, 8  ;;  %v1289_v63 = vsel %vm1287_vm12, %v1288_v62, %v4353_v29  ;;  %v1557_v59 = vsub.s32 32, %v1556_v40  ;;  %v4384_v49 = vand.u32 8388607, %v5079_v36 }
 0x1a2   : > { %v1412_v33 = vshll.u32 %v1411_v2, 23  ;;  %v1290_v27 = vadd.s32 %v1289_v63, %v1285_v30  ;;  %v1559_v53 = vshll.u32 %v5108_v31, %v1556_v40  ;;  %v1562_v14 = vshll.u32 %v5101_v39, %v1556_v40 }
 0x1a3   : > { %v1560_v17 = vshrl.u32 %v5101_v39, %v1557_v59  ;;  %v1563_v60 = vshrl.u32 %v5102_v52, %v1557_v59  ;;  %v1565_v55 = vshll.u32 %v5102_v52, %v1556_v40  ;;  %v1566_v1 = vshrl.u32 %v5103_v46, %v1557_v59 }
 0x1a4   : > { %v1407_v57 = vshll.u32 %v4333_v15, %v1405_v11  ;;  %v1291_v29 = vadd.s32 536870912, %v1290_v27  ;;  %v1555_v22 = vshrl.u32 %v1554_v32, 5  ;;  %v1568_v16 = vshll.u32 %v5103_v46, %v1556_v40 }
 0x1a5   : > { %vm504_vm13 = vcmp.lt.s32.totalorder %v3654_v42, 0  ;;  %v1561_v61 = vor.u32 %v1560_v17, %v1559_v53  ;;  %v1564_v9 = vor.u32 %v1563_v60, %v1562_v14  ;;  %v1567_v35 = vor.u32 %v1566_v1, %v1565_v55 }
 0x1a6   : > { %v1569_v13 = vshrl.u32 %v5082_v3, %v1557_v59  ;;  %vm920_vm14 = vcmp.lt.s32.totalorder %v3794_v12, 0  ;;  %v1409_v51 = vor.u32 %v1408_v19, %v1407_v57  ;;  %v4397_v23 = vshrl.u32 %v1291_v29, 30 }
 0x1a7   : > { %v1571_v62 = vshll.u32 %v5082_v3, %v1556_v40  ;;  %v1572_v15 = vshrl.u32 %v5109_v47, %v1557_v59  ;;  %vm816_vm15 = vcmp.lt.s32.totalorder %v3899_v5, 0  ;;  %v1413_v11 = vor.u32 4788187, %v1412_v33 }
 0x1a8   : > { %5113 = vst [vmem:[#allocation18_spill] sm:$0xff] %v4397_v23  ;;  %v1558_v32 = vshrl.u32 %v5108_v31, %v1557_v59  ;;  %v1570_v54 = vor.u32 %v1569_v13, %v1568_v16  ;;  %v1442_v2 = vshrl.u32 %v1441_v50, 23  ;;  %v1293_v30 = vshll.u32 %v4397_v23, 30 }
 0x1a9   : > { %v1573_v63 = vor.u32 %v1572_v15, %v1571_v62  ;;  %vm1574_vm0 = vcmp.lt.s32.totalorder %v1555_v22, 1  ;;  %vm1577_vm2 = vcmp.lt.s32.totalorder %v1555_v22, 4  ;;  %vm1576_vm5 = vcmp.lt.s32.totalorder %v1555_v22, 3 }
 0x1aa   : > { %v1579_v19 = vsel %vm1577_vm2, %v1567_v35, 2102212464  ;;  %v1582_v53 = vsel %vm1574_vm0, %v1561_v61, %v1564_v9  ;;  %v1583_v14 = vsel %vm1577_vm2, %v1570_v54, 920167782  ;;  %v1416_v17 = vcvt.s32.f32 %v1409_v51 }
 0x1ab   : > { %v4404_v40 = vsub.s32 %v1290_v27, %v1293_v30  ;;  %vm1575_vm6 = vcmp.lt.s32.totalorder %v1555_v22, 2  ;;  %v1584_v60 = vsel %vm1576_vm5, %v1567_v35, %v1583_v14  ;;  %v1414_v55 = vand.u32 2147483647, %v1413_v11 }
 0x1ac   : > { %v1585_v33 = vsel %vm1575_vm6, %v1582_v53, %v1584_v60  ;;  %v1586_v59 = vsel %vm1574_vm0, %v1564_v9, %v1567_v35  ;;  %v1587_v1 = vsel %vm1577_vm2, %v1573_v63, 1326507024  ;;  %v1578_v57 = vsel %vm1574_vm0, %v1558_v32, %v1561_v61 }
 0x1ad   : > { %v1296_v50 = vsub.s32 0, %v4404_v40  ;;  %v1580_v29 = vsel %vm1576_vm5, %v1564_v9, %v1579_v19  ;;  %v1588_v16 = vsel %vm1576_vm5, %v1570_v54, %v1587_v1  ;;  %v2854_v27 = vadd.s32 4294967169, %v1442_v2 }
 0x1ae   : > { %v1589_v13 = vsel %vm1575_vm6, %v1586_v59, %v1588_v16  ;;  %v4410_v62 = vmul.u32.u64.low %v4375_v44, %v1585_v33  ;;  %v4411_v15 = vmul.u32.u64.high %v4375_v44, %v1585_v33, %v4410_v62  ;;  %v5114_v51 = vxor.u32 2147483648, %v4074_v56 }
 0x1af   : > { %v2847_v11 = vmin.u32 %v1296_v50, %v4404_v40  ;;  %v4423_v61 = vmul.u32.u64.low %v4375_v44, %v1589_v13  ;;  %v4424_v9 = vmul.u32.u64.high %v4375_v44, %v1589_v13, %v4423_v61  ;;  %v5115_v32 = vxor.u32 2147483648, %v4088_v8 }
 0x1b0   : > { %v4419_v35 = vsel %vm504_vm13, %v5114_v51, %v4074_v56  ;;  %v4433_v2 = vmul.f32 %v1416_v17, %v1414_v55  ;;  %v1581_v30 = vsel %vm1575_vm6, %v1578_v57, %v1580_v29  ;;  %v1448_v63 = vadd.s32 1, %v2854_v27  ;;  %v3227_v56 = vld [vmem:[#allocation5 + $0x40] sm:$0xff]  }
 0x1b1   : > { %v4431_v54 = vsel %vm920_vm14, %v5115_v32, %v4088_v8  ;;  %v5116_v19 = vxor.u32 2147483648, %v4290_v43  ;;  %v1298_v60 = vclz %v2847_v11  ;;  %v1446_v33 = vor.u32 8388608, %v4384_v49  ;;  %v3229_v8 = vld [vmem:[#allocation5 + $0xc0] sm:$0xff]   ;;  %2935 = vmatprep.subr.bf16.mxu0 %v3227_v56 }
 0x1b2   : > { %v1600_v22 = vadd.s32 1, %v4411_v15  ;;  %vm1449_vm7 = vcmp.gt.s32.totalorder %v1448_v63, 0  ;;  %v1649_v55 = vand.u32 2139095040, %v4312_v38  ;;  %v1597_v1 = vmul.u32 %v4375_v44, %v1581_v30  ;;  %2993 = vmatprep.subr.bf16.mxu1 %v3229_v8 }
 0x1b3   : > { %v4441_v53 = vsel %vm816_vm15, %v5116_v19, %v4290_v43  ;;  %v2848_v59 = vadd.s32 4294967294, %v1298_v60  ;;  %vm1599_vm8 = vc.u32 %v4424_v9, %v4410_v62  ;;  %v1450_v43 = vsel %vm1449_vm7, %v1448_v63, 0 }
 0x1b4   : > { %v1286_v49 = vadd.s32 %v4352_v58, %v4358_v7  ;;  %v1601_v57 = vsel %vm1599_vm8, %v1600_v22, %v4411_v15  ;;  %v1452_v29 = vand.u32 31, %v1450_v43  ;;  %v4455_v13 = vshll.u32 %v1446_v33, 8 }
 0x1b5   : > { %vm2849_vm9 = vcmp.lt.s32.totalorder %v2848_v59, 0  ;;  %v1602_v16 = vadd.s32 %v1601_v57, %v1597_v1  ;;  %v1650_v11 = vshrl.u32 %v1649_v55, 23  ;;  %v1451_v56 = vshrl.u32 %v1450_v43, 5 }
 0x1b6   : > { %v1301_v44 = vsel %vm2849_vm9, 0, %v2848_v59  ;;  %v1453_v51 = vsub.s32 32, %v1452_v29  ;;  %v1455_v58 = vshll.u32 %v5108_v31, %v1452_v29  ;;  %v1458_v15 = vshll.u32 %v5101_v39, %v1452_v29 }
 0x1b7   : > { %v1302_v32 = vsub.s32 32, %v1301_v44  ;;  %v1306_v30 = vsub.s32 4294967266, %v1301_v44  ;;  %v1603_v63 = vadd.s32 536870912, %v1602_v16  ;;  %v1461_v8 = vshll.u32 %v5102_v52, %v1452_v29 }
 0x1b8   : > { %v1456_v7 = vshrl.u32 %v5101_v39, %v1453_v51  ;;  %v1459_v19 = vshrl.u32 %v5102_v52, %v1453_v51  ;;  %v1462_v22 = vshrl.u32 %v5103_v46, %v1453_v51  ;;  %v1464_v1 = vshll.u32 %v5103_v46, %v1452_v29 }
 0x1b9   : > { %v1307_v60 = vadd.s32 127, %v1306_v30  ;;  %v4463_v33 = vshrl.u32 %v1603_v63, 30  ;;  %v1304_v55 = vshrl.u32 %v1286_v49, %v1302_v32  ;;  %v1465_v43 = vshrl.u32 %v5082_v3, %v1453_v51 }
 0x1ba   : > { %v1457_v59 = vor.u32 %v1456_v7, %v1455_v58  ;;  %v1460_v50 = vor.u32 %v1459_v19, %v1458_v15  ;;  %v1463_v17 = vor.u32 %v1462_v22, %v1461_v8  ;;  %v1303_v14 = vshll.u32 %v4404_v40, %v1301_v44 }
 0x1bb   : > { %5117 = vst [vmem:[#allocation19_spill] sm:$0xff] %v4463_v33  ;;  %v1308_v57 = vshll.u32 %v1307_v60, 23  ;;  %v1605_v36 = vshll.u32 %v4463_v33, 30  ;;  %v1466_v30 = vor.u32 %v1465_v43, %v1464_v1  ;;  %v1467_v63 = vshll.u32 %v5082_v3, %v1452_v29 }
 0x1bc   : > { %v1468_v61 = vshrl.u32 %v5109_v47, %v1453_v51  ;;  %v1454_v49 = vshrl.u32 %v5108_v31, %v1453_v51  ;;  %v2862_v32 = vadd.s32 4294967169, %v1650_v11  ;;  %v5118_v58 = vand.u32 2147483647, %v4312_v38 }
 0x1bd   : > { %v4473_v27 = vsub.s32 %v1602_v16, %v1605_v36  ;;  %v1305_v60 = vor.u32 %v1304_v55, %v1303_v14  ;;  %vm1470_vm10 = vcmp.lt.s32.totalorder %v1451_v56, 1  ;;  %vm1473_vm11 = vcmp.lt.s32.totalorder %v1451_v56, 4 }
 0x1be   : > { %v1653_v7 = vand.u32 8388607, %v5118_v58  ;;  %v1469_v23 = vor.u32 %v1468_v61, %v1467_v63  ;;  %v1309_v15 = vor.u32 4788187, %v1308_v57  ;;  %v1475_v44 = vsel %vm1473_vm11, %v1463_v17, 2102212464 }
 0x1bf   : > { %v1608_v40 = vsub.s32 0, %v4473_v27  ;;  %v1478_v19 = vsel %vm1470_vm10, %v1457_v59, %v1460_v50  ;;  %vm1472_vm12 = vcmp.lt.s32.totalorder %v1451_v56, 3  ;;  %v1479_v29 = vsel %vm1473_vm11, %v1466_v30, 920167782 }
 0x1c0   : > { %v1482_v8 = vsel %vm1470_vm10, %v1460_v50, %v1463_v17  ;;  %v1483_v36 = vsel %vm1473_vm11, %v1469_v23, 1326507024  ;;  %vm1471_vm0 = vcmp.lt.s32.totalorder %v1451_v56, 2  ;;  %v1474_v51 = vsel %vm1470_vm10, %v1454_v49, %v1457_v59 }
 0x1c1   : > { %v2859_v16 = vmin.u32 %v1608_v40, %v4473_v27  ;;  %v1480_v11 = vsel %vm1472_vm12, %v1463_v17, %v1479_v29  ;;  %v1476_v22 = vsel %vm1472_vm12, %v1460_v50, %v1475_v44  ;;  %v1484_v14 = vsel %vm1472_vm12, %v1466_v30, %v1483_v36 }
 0x1c2   : > { %v1481_v1 = vsel %vm1471_vm0, %v1478_v19, %v1480_v11  ;;  %v1656_v61 = vadd.s32 1, %v2862_v32  ;;  %v1310_v55 = vand.u32 2147483647, %v1309_v15  ;;  %v1485_v57 = vsel %vm1471_vm0, %v1482_v8, %v1484_v14 }
 0x1c3   : > { %v1610_v43 = vclz %v2859_v16  ;;  %v1654_v63 = vor.u32 8388608, %v1653_v7  ;;  %v4481_v58 = vmul.u32.u64.low %v4455_v13, %v1485_v57  ;;  %v4482_v3 = vmul.u32.u64.high %v4455_v13, %v1485_v57, %v4481_v58 }
 0x1c4   : > { %v4485_v33 = vmul.u32.u64.low %v4455_v13, %v1481_v1  ;;  %v4486_v23 = vmul.u32.u64.high %v4455_v13, %v1481_v1, %v4485_v33  ;;  %v1312_v56 = vcvt.s32.f32 %v1305_v60  ;;  %v1477_v17 = vsel %vm1471_vm0, %v1474_v51, %v1476_v22 }
 0x1c5   : > { %v2860_v59 = vadd.s32 4294967294, %v1610_v43  ;;  %vm1657_vm2 = vcmp.gt.s32.totalorder %v1656_v61, 0  ;;  %v1598_v50 = vadd.s32 %v4410_v62, %v4424_v9  ;;  %v5119_v49 = vand.u32 2147483647, %v3636_v21 }
 0x1c6   : > { %v1658_v30 = vsel %vm1657_vm2, %v1656_v61, 0  ;;  %v5122_v7 = vsub.s32 4, %v3775_v28  ;;  %v4504_v60 = vmul.f32 %v1312_v56, %v1310_v55  ;;  %v1493_v44 = vmul.u32 %v4455_v13, %v1477_v17 }
 0x1c7   : > { %vm4493_vm5 = vcmp.le.f32.partialorder %v5119_v49, 0.7853982  ;;  %vm2861_vm6 = vcmp.lt.s32.totalorder %v2860_v59, 0  ;;  %v1660_v40 = vand.u32 31, %v1658_v30  ;;  %vm1495_vm7 = vc.u32 %v4482_v3, %v4485_v33 }
 0x1c8   : > { %v4502_v15 = vsel %vm400_vm3, %v5122_v7, %v3775_v28  ;;  %v486_v62 = vsel %vm4493_vm5, %v3636_v21, %v4187_v24  ;;  %v1613_v9 = vsel %vm2861_vm6, 0, %v2860_v59  ;;  %v1496_v19 = vadd.s32 1, %v4486_v23 }
 0x1c9   : > { %v1618_v29 = vsub.s32 4294967266, %v1613_v9  ;;  %v1661_v28 = vsub.s32 32, %v1660_v40  ;;  %v4514_v8 = vshll.u32 %v1654_v63, 8  ;;  %v487_v36 = vsel %vm4493_vm5, 0, %v4502_v15 }
 0x1ca   : > { %v1614_v16 = vsub.s32 32, %v1613_v9  ;;  %v1497_v51 = vsel %vm1495_vm7, %v1496_v19, %v4486_v23  ;;  %v1659_v24 = vshrl.u32 %v1658_v30, 5  ;;  %3259 = vcosq.f32 %v486_v62 }
 0x1cb   : > { %v1498_v11 = vadd.s32 %v1497_v51, %v1493_v44  ;;  %v1663_v13 = vshll.u32 %v5108_v31, %v1660_v40  ;;  %v1666_v22 = vshll.u32 %v5101_v39, %v1660_v40  ;;  %v1669_v1 = vshll.u32 %v5102_v52, %v1660_v40 }
 0x1cc   : > { %v1619_v14 = vadd.s32 127, %v1618_v29  ;;  %v1664_v61 = vshrl.u32 %v5101_v39, %v1661_v28  ;;  %v1667_v55 = vshrl.u32 %v5102_v52, %v1661_v28  ;;  %v1670_v43 = vshrl.u32 %v5103_v46, %v1661_v28 }
 0x1cd   : > { %v1499_v57 = vadd.s32 536870912, %v1498_v11  ;;  %v1672_v63 = vshll.u32 %v5103_v46, %v1660_v40  ;;  %v5123_v58 = vmov 920167782   ;;  %3261 = vsinq.f32 %v486_v62 }
 0x1ce   : > { %v1673_v23 = vshrl.u32 %v5123_v58, %v1661_v28  ;;  %v1615_v56 = vshll.u32 %v4473_v27, %v1613_v9  ;;  %v1665_v59 = vor.u32 %v1664_v61, %v1663_v13  ;;  %v1668_v17 = vor.u32 %v1667_v55, %v1666_v22 }
 0x1cf   : > { %v1671_v30 = vor.u32 %v1670_v43, %v1669_v1  ;;  %vm1128_vm3 = vcmp.lt.s32.totalorder %v3903_v6, 0  ;;  %vm1024_vm8 = vcmp.lt.s32.totalorder %v3962_v18, 0  ;;  %v1616_v39 = vshrl.u32 %v1598_v50, %v1614_v16 }
 0x1d0   : > { %v4531_v49 = vshrl.u32 %v1499_v57, 30  ;;  %v1662_v52 = vshrl.u32 %v5108_v31, %v1661_v28  ;;  %v1674_v32 = vor.u32 %v1673_v23, %v1672_v63  ;;  %vm1336_vm9 = vcmp.lt.s32.totalorder %v3983_v45, 0 }
 0x1d1   : > { %v1620_v46 = vshll.u32 %v1619_v14, 23  ;;  %v1675_v7 = vshll.u32 %v5123_v58, %v1660_v40  ;;  %v1676_v27 = vshrl.u32 %v5109_v47, %v1661_v28  ;;  %vm1678_vm10 = vcmp.lt.s32.totalorder %v1659_v24, 1 }
 0x1d2   : > { %vm1232_vm11 = vcmp.lt.s32.totalorder %v4135_v25, 0  ;;  %v1501_v15 = vshll.u32 %v4531_v49, 30  ;;  %vm1680_vm12 = vcmp.lt.s32.totalorder %v1659_v24, 3  ;;  %vm1681_vm0 = vcmp.lt.s32.totalorder %v1659_v24, 4 }
 0x1d3   : > { %v1682_v50 = vsel %vm1678_vm10, %v1662_v52, %v1665_v59  ;;  %v1677_v62 = vor.u32 %v1676_v27, %v1675_v7  ;;  %v1683_v9 = vsel %vm1681_vm0, %v1671_v30, 2102212464  ;;  %v1686_v31 = vsel %vm1678_vm10, %v1665_v59, %v1668_v17 }
 0x1d4   : > { %v1687_v44 = vsel %vm1681_vm0, %v1674_v32, 920167782  ;;  %v4541_v19 = vsub.s32 %v1498_v11, %v1501_v15  ;;  %vm1679_vm2 = vcmp.lt.s32.totalorder %v1659_v24, 2  ;;  %v1684_v40 = vsel %vm1680_vm12, %v1668_v17, %v1683_v9  ;;  %v4545_v29 = vpop.eup %3259 }
 0x1d5   : > { %v1688_v47 = vsel %vm1680_vm12, %v1671_v30, %v1687_v44  ;;  %v1685_v28 = vsel %vm1679_vm2, %v1682_v50, %v1684_v40  ;;  %v1690_v51 = vsel %vm1678_vm10, %v1668_v17, %v1671_v30  ;;  %v1691_v13 = vsel %vm1681_vm0, %v1677_v62, 1326507024 }
 0x1d6   : > { %v1689_v16 = vsel %vm1679_vm2, %v1686_v31, %v1688_v47  ;;  %v1314_v22 = vxor.u32 2147483648, %v4504_v60  ;;  %v1621_v1 = vor.u32 4788187, %v1620_v46  ;;  %v1504_v14 = vsub.s32 0, %v4541_v19 }
 0x1d7   : > { %v1692_v11 = vsel %vm1680_vm12, %v1674_v32, %v1691_v13  ;;  %v1617_v61 = vor.u32 %v1616_v39, %v1615_v56  ;;  %v4552_v43 = vmul.u32.u64.low %v4514_v8, %v1689_v16  ;;  %v4553_v57 = vmul.u32.u64.high %v4514_v8, %v1689_v16, %v4552_v43  ;;  %v3262_v63 = vpop.eup %3261 }
 0x1d8   : > { %v1693_v55 = vsel %vm1679_vm2, %v1690_v51, %v1692_v11  ;;  %v2855_v58 = vmin.u32 %v1504_v14, %v4541_v19  ;;  %v491_v17 = vadd.s32 3, %v487_v36  ;;  %v5124_v30 = vxor.u32 2147483648, %v4366_v48 }
 0x1d9   : > { %v4557_v23 = vmul.u32.u64.low %v4514_v8, %v1693_v55  ;;  %v4558_v59 = vmul.u32.u64.high %v4514_v8, %v1693_v55, %v4557_v23  ;;  %v5125_v56 = vxor.u32 2147483648, %v4370_v26  ;;  %v5126_v52 = vand.u32 2147483647, %v3654_v42 }
 0x1da   : > { %v4565_v24 = vsel %vm1128_vm3, %v5124_v30, %v4366_v48  ;;  %v588_v36 = vsub.s32 4, %v3888_v4  ;;  %v5129_v46 = vxor.u32 2147483648, %v4433_v2  ;;  %v1622_v7 = vand.u32 2147483647, %v1621_v1 }
 0x1db   : > { %v4572_v39 = vsel %vm1024_vm8, %v5125_v56, %v4370_v26  ;;  %vm4576_vm5 = vcmp.le.f32.partialorder %v5126_v52, 0.7853982  ;;  %v1506_v27 = vclz %v2855_v58  ;;  %v4595_v15 = vsel %vm1232_vm11, %v1314_v22, %v4504_v60 }
 0x1dc   : > { %v4586_v48 = vsel %vm1336_vm9, %v5129_v46, %v4433_v2  ;;  %v590_v26 = vsel %vm4576_vm5, %v3654_v42, %v4419_v35  ;;  %v1624_v50 = vcvt.s32.f32 %v1617_v61  ;;  %v1701_v62 = vmul.u32 %v4514_v8, %v1685_v28  ;;  %v5136_v46 = vld [vmem:[#allocation14_spill] sm:$0xff] }
 0x1dd   : > { %v1704_v9 = vadd.s32 1, %v4553_v57  ;;  %v2856_v31 = vadd.s32 4294967294, %v1506_v27  ;;  %v4600_v2 = vadd.s32 %v4552_v43, %v4558_v59  ;;  %vm1703_vm6 = vc.u32 %v4558_v59, %v4552_v43 }
 0x1de   : > { %v492_v44 = vand.u32 3, %v491_v17  ;;  %v1494_v35 = vadd.s32 %v4485_v33, %v4482_v3  ;;  %v589_v60 = vsel %vm504_vm13, %v588_v36, %v3888_v4  ;;  %3263 = vcosq.f32 %v590_v26 }
 0x1df   : > { %v1705_v40 = vsel %vm1703_vm6, %v1704_v9, %v4553_v57  ;;  %v4609_v8 = vmul.f32 %v1624_v50, %v1622_v7  ;;  %vm2857_vm7 = vcmp.lt.s32.totalorder %v2856_v31, 0  ;;  %v591_v28 = vsel %vm4576_vm5, 0, %v589_v60 }
 0x1e0   : > { %v1706_v47 = vadd.s32 %v1705_v40, %v1701_v62  ;;  %v1509_v16 = vsel %vm2857_vm7, 0, %v2856_v31  ;;  %v495_v51 = vxor.u32 2147483648, %v3262_v63  ;;  %v498_v13 = vxor.u32 2147483648, %v4545_v29 }
 0x1e1   : > { %3265 = vsinq.f32 %v590_v26  ;;  %v1514_v3 = vsub.s32 4294967266, %v1509_v16  ;;  %vm490_vm10 = vweird.f32 %v3636_v21  ;;  %vm494_vm12 = vcmp.eq.s32.totalorder %v492_v44, 0 }
 0x1e2   : > { %v1707_v33 = vadd.s32 536870912, %v1706_v47  ;;  %v5130_v4 = vand.u32 2147483647, %v3633_v20  ;;  %vm497_vm0 = vcmp.eq.s32.totalorder %v492_v44, 2  ;;  %v595_v1 = vadd.s32 3, %v591_v28 }
 0x1e3   : > { %v692_v14 = vsub.s32 4, %v3739_v41  ;;  %v1510_v61 = vsub.s32 32, %v1509_v16  ;;  %v1515_v55 = vadd.s32 127, %v1514_v3  ;;  %v1626_v57 = vxor.u32 2147483648, %v4609_v8 }
 0x1e4   : > { %vm4617_vm13 = vcmp.le.f32.partialorder %v5130_v4, 0.7853982  ;;  %v4626_v43 = vshrl.u32 %v1707_v33, 30  ;;  %v496_v58 = vsel %vm494_vm12, %v4545_v29, %v495_v51  ;;  %v499_v23 = vsel %vm497_vm0, %v498_v13, %v3262_v63  ;;  %v5137_v13 = vld [vmem:[#allocation12_spill] sm:$0xff]  ;;  %v3230_v29 = vld [vmem:[#allocation5 + $0x80] sm:$0xff]  }
 0x1e5   : > { %v694_v11 = vsel %vm4617_vm13, %v3633_v20, %v3941_v10  ;;  %v693_v59 = vsel %vm608_vm1, %v692_v14, %v3739_v41  ;;  %v1516_v17 = vshll.u32 %v1515_v55, 23  ;;  %vm493_vm2 = vcmp.lt.s32.totalorder %v492_v44, 2 }
 0x1e6   : > { %3267 = vcosq.f32 %v694_v11  ;;  %v1709_v30 = vshll.u32 %v4626_v43, 30  ;;  %v695_v10 = vsel %vm4617_vm13, 0, %v693_v59  ;;  %vm594_vm5 = vweird.f32 %v3654_v42  ;;  %v3231_v42 = vld [vmem:[#allocation5 + $0x48] sm:$0xff]  }
 0x1e7   : > { %v596_v56 = vand.u32 3, %v595_v1  ;;  %3269 = vsinq.f32 %v694_v11  ;;  %v5133_v52 = vand.u32 2147483647, %v3649_v34  ;;  %v796_v63 = vsub.s32 4, %v3808_v37 }
 0x1e8   : > { %v1512_v41 = vshrl.u32 %v1494_v35, %v1510_v61  ;;  %v4644_v32 = vsub.s32 %v1706_v47, %v1709_v30  ;;  %v500_v36 = vsel %vm493_vm2, %v496_v58, %v499_v23  ;;  %v3264_v27 = vpop.eup %3263  ;;  %v1511_v26 = vshll.u32 %v4541_v19, %v1509_v16 }
 0x1e9   : > { %vm4639_vm6 = vcmp.le.f32.partialorder %v5133_v52, 0.7853982  ;;  %v699_v50 = vadd.s32 3, %v695_v10  ;;  %v797_v62 = vsel %vm712_vm4, %v796_v63, %v3808_v37  ;;  %v1517_v9 = vor.u32 4788187, %v1516_v17  ;;  %v3228_v52 = vld [vmem:[#allocation5] sm:$0xff]  }
 0x1ea   : > { %v798_v7 = vsel %vm4639_vm6, %v3649_v34, %v5136_v46  ;;  %v1712_v31 = vsub.s32 0, %v4644_v32  ;;  %v602_v44 = vxor.u32 2147483648, %v3264_v27  ;;  %v799_v35 = vsel %vm4639_vm6, 0, %v797_v62 }
 0x1eb   : > { %3271 = vcosq.f32 %v798_v7  ;;  %v3266_v40 = vpop.eup %3265  ;;  %v501_v60 = vsel %vm490_vm10, nan, %v500_v36  ;;  %vm597_vm1 = vcmp.lt.s32.totalorder %v596_v56, 2  ;;  %vm601_vm7 = vcmp.eq.s32.totalorder %v596_v56, 2 }
 0x1ec   : > { %3273 = vsinq.f32 %v798_v7  ;;  %v1513_v19 = vor.u32 %v1512_v41, %v1511_v26  ;;  %v2863_v47 = vmin.u32 %v1712_v31, %v4644_v32  ;;  %v599_v28 = vxor.u32 2147483648, %v3266_v40  ;;  %v3233_v41 = vld [vmem:[#allocation5 + $0xc8] sm:$0xff]  }
 0x1ed   : > { %v603_v37 = vsel %vm601_vm7, %v602_v44, %v3266_v40  ;;  %vm598_vm4 = vcmp.eq.s32.totalorder %v596_v56, 0  ;;  %v700_v16 = vand.u32 3, %v699_v50  ;;  %v803_v51 = vadd.s32 3, %v799_v35 }
 0x1ee   : > { %v900_v3 = vsub.s32 4, %v5137_v13  ;;  %v1518_v4 = vand.u32 2147483647, %v1517_v9  ;;  %v1714_v22 = vclz %v2863_v47  ;;  %v600_v1 = vsel %vm598_vm4, %v3264_v27, %v599_v28  ;;  %v3232_v47 = vld [vmem:[#allocation5 + $0x8] sm:$0xff]  }
 0x1ef   : > { %v5138_v21 = vand.u32 2147483647, %v3899_v5  ;;  %v604_v11 = vsel %vm597_vm1, %v600_v1, %v603_v37  ;;  %v1520_v23 = vcvt.s32.f32 %v1513_v19  ;;  %vm698_vm12 = vweird.f32 %v3633_v20  ;;  %v3234_v28 = vld [vmem:[#allocation5 + $0x88] sm:$0xff]   ;;  %v5143_v37 = vld [vmem:[#allocation15_spill] sm:$0xff] }
 0x1f0   : > { %v3268_v33 = vpop.eup %3267  ;;  %v901_v55 = vsel %vm816_vm15, %v900_v3, %v5137_v13  ;;  %v2864_v59 = vadd.s32 4294967294, %v1714_v22  ;;  %v605_v17 = vsel %vm594_vm5, nan, %v604_v11  ;;  %v804_v30 = vand.u32 3, %v803_v51 }
 0x1f1   : > { %vm4663_vm10 = vcmp.le.f32.partialorder %v5138_v21, 0.7853982  ;;  %v706_v61 = vxor.u32 2147483648, %v3268_v33  ;;  %v3270_v10 = vpop.eup %3269  ;;  %v1782_v56 = vpack.c.bf16 %v605_v17, %v501_v60  ;;  %vm701_vm13 = vcmp.lt.s32.totalorder %v700_v16, 2  ;;  %v5142_v60 = vld [vmem:[#allocation11_spill] sm:$0xff] }
 0x1f2   : > { %v902_v58 = vsel %vm4663_vm10, %v3899_v5, %v4441_v53  ;;  %vm702_vm0 = vcmp.eq.s32.totalorder %v700_v16, 0  ;;  %vm705_vm2 = vcmp.eq.s32.totalorder %v700_v16, 2  ;;  %vm802_vm15 = vweird.f32 %v3649_v34 }
 0x1f3   : > { %vm2865_vm6 = vcmp.lt.s32.totalorder %v2864_v59, 0  ;;  %v703_v63 = vxor.u32 2147483648, %v3270_v10  ;;  %v903_v53 = vsel %vm4663_vm10, 0, %v901_v55  ;;  %3275 = vcosq.f32 %v902_v58  ;;  %2004 = vmatmul.mubr.bf16.vlgmr.msra.gmra.mrb[0].mxu0 %v1782_v56  ;;  %2105 = vmatmul.mubr.bf16.vlgmr.msra.gmra.mrb[0].mxu1 %v1782_v56 }
 0x1f4   : > { %v4681_v46 = vmul.f32 %v1520_v23, %v1518_v4  ;;  %v1717_v7 = vsel %vm2865_vm6, 0, %v2864_v59  ;;  %v707_v27 = vsel %vm705_vm2, %v706_v61, %v3270_v10  ;;  %3277 = vsinq.f32 %v902_v58  ;;  %2936 = vmatpush3.bf16.msra.mxu0 %v3228_v52  ;;  %2994 = vmatpush3.bf16.msra.mxu1 %v3230_v29  ;;  %v3235_v4 = vld [vmem:[#allocation5 + $0x50] sm:$0xff]  }
 0x1f5   : > { %v3272_v36 = vpop.eup %3271  ;;  %v1718_v26 = vsub.s32 32, %v1717_v7  ;;  %v1722_v50 = vsub.s32 4294967266, %v1717_v7  ;;  %v5141_v62 = vmov 0   ;;  %v704_v9 = vsel %vm702_vm0, %v3268_v33, %v703_v63  ;;  %2937 = vmatprep.subr.bf16.mxu0 %v3231_v42  ;;  %2995 = vmatprep.subr.bf16.mxu1 %v3233_v41  ;;  %v3236_v52 = vld [vmem:[#allocation5 + $0x10] sm:$0xff]   ;;  %v5150_v42 = vld [vmem:[#allocation16_spill] sm:$0xff] }
 0x1f6   : > { %2013 = vmatprep.mubr.bf16.mxu0 %v5141_v62  ;;  %2114 = vmatprep.mubr.bf16.mxu1 %v5141_v62  ;;  %vm809_vm5 = vcmp.eq.s32.totalorder %v804_v30, 2  ;;  %v3274_v31 = vpop.eup %3273  ;;  %v1719_v44 = vshll.u32 %v4644_v32, %v1717_v7  ;;  %v810_v35 = vxor.u32 2147483648, %v3272_v36  ;;  %v907_v40 = vadd.s32 3, %v903_v53  ;;  %v3237_v32 = vld [vmem:[#allocation5 + $0xd0] sm:$0xff]   ;;  %v3239_v7 = vld [vmem:[#allocation5 + $0x58] sm:$0xff]  }
 0x1f7   : > { %v1004_v19 = vsub.s32 4, %v5142_v60  ;;  %vm1544_vm1 = vcmp.lt.s32.totalorder %v5143_v37, 0  ;;  %v1720_v51 = vshrl.u32 %v4600_v2, %v1718_v26  ;;  %v1723_v13 = vadd.s32 127, %v1722_v50  ;;  %v3238_v29 = vld [vmem:[#allocation5 + $0x90] sm:$0xff]  }
 0x1f8   : > { %v708_v3 = vsel %vm701_vm13, %v704_v9, %v707_v27  ;;  %v807_v33 = vxor.u32 2147483648, %v3274_v31  ;;  %vm805_vm7 = vcmp.lt.s32.totalorder %v804_v30, 2  ;;  %vm806_vm4 = vcmp.eq.s32.totalorder %v804_v30, 0  ;;  %2938 = vmatpush3.bf16.msra.mxu0 %v3232_v47  ;;  %2996 = vmatpush3.bf16.msra.mxu1 %v3234_v28  ;;  %v3241_v27 = vld [vmem:[#allocation5 + $0xd8] sm:$0xff]  }
 0x1f9   : > { %v811_v22 = vsel %vm809_vm5, %v810_v35, %v3274_v31  ;;  %v5144_v1 = vand.u32 2147483647, %v3794_v12  ;;  %v1721_v14 = vor.u32 %v1720_v51, %v1719_v44  ;;  %v1724_v2 = vshll.u32 %v1723_v13, 23  ;;  %2939 = vmatprep.subr.bf16.mxu0 %v3235_v4  ;;  %2997 = vmatprep.subr.bf16.mxu1 %v3237_v32 }
 0x1fa   : > { %v808_v11 = vsel %vm806_vm4, %v3272_v36, %v807_v33  ;;  %v1005_v16 = vsel %vm920_vm14, %v1004_v19, %v5142_v60  ;;  %vm1440_vm13 = vcmp.lt.s32.totalorder %v4324_v0, 0  ;;  %v709_v61 = vsel %vm698_vm12, nan, %v708_v3  ;;  %v3240_v60 = vld [vmem:[#allocation5 + $0x18] sm:$0xff]   ;;  %v3243_v3 = vld [vmem:[#allocation5 + $0x60] sm:$0xff]  }
 0x1fb   : > { %vm4694_vm10 = vcmp.le.f32.partialorder %v5144_v1, 0.7853982  ;;  %v812_v55 = vsel %vm805_vm7, %v808_v11, %v811_v22  ;;  %v908_v58 = vand.u32 3, %v907_v40  ;;  %v1725_v59 = vor.u32 4788187, %v1724_v2  ;;  %v3242_v19 = vld [vmem:[#allocation5 + $0x98] sm:$0xff]  }
 0x1fc   : > { %v1006_v23 = vsel %vm4694_vm10, %v3794_v12, %v4431_v54  ;;  %v813_v17 = vsel %vm802_vm15, nan, %v812_v55  ;;  %v1007_v30 = vsel %vm4694_vm10, 0, %v1005_v16  ;;  %v1522_v20 = vxor.u32 2147483648, %v4681_v46  ;;  %2940 = vmatpush3.bf16.msra.mxu0 %v3236_v52  ;;  %2998 = vmatpush3.bf16.msra.mxu1 %v3238_v29  ;;  %v3245_v33 = vld [vmem:[#allocation5 + $0xe0] sm:$0xff]  }
 0x1fd   : > { %3279 = vcosq.f32 %v1006_v23  ;;  %v1783_v10 = vpack.c.bf16 %v813_v17, %v709_v61  ;;  %v5147_v56 = vand.u32 2147483647, %v3962_v18  ;;  %v3276_v34 = vpop.eup %3275  ;;  %v1726_v63 = vand.u32 2147483647, %v1725_v59  ;;  %2941 = vmatprep.subr.bf16.mxu0 %v3239_v7  ;;  %2999 = vmatprep.subr.bf16.mxu1 %v3241_v27  ;;  %v3246_v61 = vld [vmem:[#allocation5 + $0xa0] sm:$0xff]   ;;  %v3251_v27 = vld [vmem:[#allocation5 + $0x70] sm:$0xff]  }
 0x1fe   : > { %3281 = vsinq.f32 %v1006_v23  ;;  %v1728_v53 = vcvt.s32.f32 %v1721_v14  ;;  %v1108_v41 = vsub.s32 4, %v5150_v42  ;;  %v3278_v26 = vpop.eup %3277  ;;  %vm913_vm12 = vcmp.eq.s32.totalorder %v908_v58, 2  ;;  %v5158_v23 = vld [vmem:[#allocation18_spill] sm:$0xff] }
 0x1ff   : > { %vm4715_vm14 = vcmp.le.f32.partialorder %v5147_v56, 0.7853982  ;;  %2014 = vmatmul.mubr.bf16.gmra.mrb[4].mxu0 %v1783_v10  ;;  %2115 = vmatmul.mubr.bf16.gmra.mrb[4].mxu1 %v1783_v10  ;;  %v914_v50 = vxor.u32 2147483648, %v3276_v34  ;;  %v1011_v9 = vadd.s32 3, %v1007_v30  ;;  %v911_v44 = vxor.u32 2147483648, %v3278_v26  ;;  %v3247_v30 = vld [vmem:[#allocation5 + $0x68] sm:$0xff]  }
 0x200   : > { %v1110_v36 = vsel %vm4715_vm14, %v3962_v18, %v4572_v39  ;;  %v4724_v31 = vmul.f32 %v1728_v53, %v1726_v63  ;;  %2023 = vmatprep.mubr.bf16.mxu0 %v5141_v62  ;;  %2124 = vmatprep.mubr.bf16.mxu1 %v5141_v62  ;;  %v1109_v39 = vsel %vm1024_vm8, %v1108_v41, %v5150_v42  ;;  %vm906_vm0 = vweird.f32 %v3899_v5  ;;  %v3248_v5 = vld [vmem:[#allocation5 + $0x28] sm:$0xff]  }
 0x201   : > { %3283 = vcosq.f32 %v1110_v36  ;;  %v4736_v35 = vsel %vm1544_vm1, %v1626_v57, %v4609_v8  ;;  %vm910_vm2 = vcmp.eq.s32.totalorder %v908_v58, 0  ;;  %v915_v40 = vsel %vm913_vm12, %v914_v50, %v3278_v26  ;;  %v5154_v8 = vld [vmem:[#allocation13_spill] sm:$0xff]  ;;  %2942 = vmatpush3.bf16.msra.mxu0 %v3240_v60  ;;  %3000 = vmatpush3.bf16.msra.mxu1 %v3242_v19  ;;  %v3250_v53 = vld [vmem:[#allocation5 + $0xa8] sm:$0xff]   ;;  %v3253_v26 = vld [vmem:[#allocation5 + $0xf0] sm:$0xff]  }
 0x202   : > { %3285 = vsinq.f32 %v1110_v36  ;;  %v912_v47 = vsel %vm910_vm2, %v3276_v34, %v911_v44  ;;  %v1111_v28 = vsel %vm4715_vm14, 0, %v1109_v39  ;;  %v5151_v51 = vand.u32 2147483647, %v3903_v6  ;;  %2943 = vmatprep.subr.bf16.mxu0 %v3243_v3  ;;  %3001 = vmatprep.subr.bf16.mxu1 %v3245_v33  ;;  %v3252_v3 = vld [vmem:[#allocation5 + $0x30] sm:$0xff]  }
 0x203   : > { %v1212_v57 = vsub.s32 4, %v5154_v8  ;;  %vm909_vm15 = vcmp.lt.s32.totalorder %v908_v58, 2  ;;  %v1012_v4 = vand.u32 3, %v1011_v9  ;;  %v1115_v32 = vadd.s32 3, %v1111_v28 }
 0x204   : > { %vm4743_vm8 = vcmp.le.f32.partialorder %v5151_v51, 0.7853982  ;;  %v4755_v1 = vsel %vm1440_vm13, %v1522_v20, %v4681_v46  ;;  %v916_v21 = vsel %vm909_vm15, %v912_v47, %v915_v40  ;;  %v5155_v16 = vand.u32 2147483647, %v4135_v25  ;;  %v3244_v46 = vld [vmem:[#allocation5 + $0x20] sm:$0xff]   ;;  %v3249_v20 = vld [vmem:[#allocation5 + $0xe8] sm:$0xff]  }
 0x205   : > { %v1214_v22 = vsel %vm4743_vm8, %v3903_v6, %v4565_v24  ;;  %v1213_v14 = vsel %vm1128_vm3, %v1212_v57, %v5154_v8  ;;  %v4760_v2 = vand.u32 3, %v1115_v32  ;;  %vm1010_vm3 = vweird.f32 %v3794_v12  ;;  %2944 = vmatpush3.bf16.msra.mxu0 %v3244_v46  ;;  %3002 = vmatpush3.bf16.msra.mxu1 %v3246_v61  ;;  %v5162_v47 = vld [vmem:[#allocation17_spill] sm:$0xff]  ;;  %v3254_v12 = vld [vmem:[#allocation5 + $0xb0] sm:$0xff]  }
 0x206   : > { %3287 = vcosq.f32 %v1214_v22  ;;  %v1215_v11 = vsel %vm4743_vm8, 0, %v1213_v14  ;;  %vm4766_vm6 = vcmp.le.f32.partialorder %v5155_v16, 0.7853982  ;;  %v1316_v59 = vsub.s32 4, %v5158_v23  ;;  %2945 = vmatprep.subr.bf16.mxu0 %v3247_v30  ;;  %3003 = vmatprep.subr.bf16.mxu1 %v3249_v20 }
 0x207   : > { %3289 = vsinq.f32 %v1214_v22  ;;  %v3280_v55 = vpop.eup %3279  ;;  %v1219_v58 = vadd.s32 3, %v1215_v11  ;;  %v1318_v17 = vsel %vm4766_vm6, %v4135_v25, %v4595_v15  ;;  %vm1013_vm5 = vcmp.lt.s32.totalorder %v1012_v4, 2 }
 0x208   : > { %v3282_v10 = vpop.eup %3281  ;;  %vm1014_vm7 = vcmp.eq.s32.totalorder %v1012_v4, 0  ;;  %vm1017_vm4 = vcmp.eq.s32.totalorder %v1012_v4, 2  ;;  %v1018_v56 = vxor.u32 2147483648, %v3280_v55  ;;  %v917_v54 = vsel %vm906_vm0, nan, %v916_v21 }
 0x209   : > { %v1015_v52 = vxor.u32 2147483648, %v3282_v10  ;;  %v1317_v29 = vsel %vm1232_vm11, %v1316_v59, %v5158_v23  ;;  %3291 = vcosq.f32 %v1318_v17  ;;  %vm1114_vm10 = vweird.f32 %v3962_v18  ;;  %2946 = vmatpush3.bf16.msra.mxu0 %v3248_v5  ;;  %3004 = vmatpush3.bf16.msra.mxu1 %v3250_v53 }
 0x20a   : > { %v1019_v15 = vsel %vm1017_vm4, %v1018_v56, %v3282_v10  ;;  %vm1118_vm14 = vcmp.eq.s32.totalorder %v4760_v2, 0  ;;  %v1319_v63 = vsel %vm4766_vm6, 0, %v1317_v29  ;;  %3293 = vsinq.f32 %v1318_v17  ;;  %2947 = vmatprep.subr.bf16.mxu0 %v3251_v27  ;;  %3005 = vmatprep.subr.bf16.mxu1 %v3253_v26 }
 0x20b   : > { %v3284_v34 = vpop.eup %3283  ;;  %v1016_v41 = vsel %vm1014_vm7, %v3280_v55, %v1015_v52  ;;  %vm1121_vm11 = vcmp.eq.s32.totalorder %v4760_v2, 2  ;;  %v1220_v7 = vand.u32 3, %v1219_v58  ;;  %v1323_v44 = vadd.s32 3, %v1319_v63 }
 0x20c   : > { %v3286_v42 = vpop.eup %3285  ;;  %v1122_v36 = vxor.u32 2147483648, %v3284_v34  ;;  %v1020_v50 = vsel %vm1013_vm5, %v1016_v41, %v1019_v15  ;;  %v5159_v39 = vand.u32 2147483647, %v3983_v45  ;;  %vm1648_vm0 = vcmp.lt.s32.totalorder %v4312_v38, 0 }
 0x20d   : > { %v1119_v9 = vxor.u32 2147483648, %v3286_v42  ;;  %v1021_v60 = vsel %vm1010_vm3, nan, %v1020_v50  ;;  %v1420_v28 = vsub.s32 4, %v5162_v47  ;;  %v1730_v13 = vxor.u32 2147483648, %v4724_v31  ;;  %2948 = vmatpush3.bf16.msra.mxu0 %v3252_v3  ;;  %3006 = vmatpush3.bf16.msra.mxu1 %v3254_v12 }
 0x20e   : > { %vm4790_vm12 = vcmp.le.f32.partialorder %v5159_v39, 0.7853982  ;;  %v1123_v19 = vsel %vm1121_vm11, %v1122_v36, %v3286_v42  ;;  %v1784_v8 = vpack.c.bf16 %v1021_v60, %v917_v54  ;;  %vm1117_vm2 = vcmp.lt.s32.totalorder %v4760_v2, 2 }
 0x20f   : > { %v1422_v51 = vsel %vm4790_vm12, %v3983_v45, %v4586_v48  ;;  %v1120_v57 = vsel %vm1118_vm14, %v3284_v34, %v1119_v9  ;;  %vm1218_vm8 = vweird.f32 %v3903_v6  ;;  %v1421_v48 = vsel %vm1336_vm9, %v1420_v28, %v5162_v47  ;;  %v5169_v6 = vld [vmem:[#allocation19_spill] sm:$0xff] }
 0x210   : > { %3295 = vcosq.f32 %v1422_v51  ;;  %v3288_v33 = vpop.eup %3287  ;;  %2024 = vmatmul.mubr.bf16.gmra.mrb[8].mxu0 %v1784_v8  ;;  %2125 = vmatmul.mubr.bf16.gmra.mrb[8].mxu1 %v1784_v8  ;;  %v1124_v32 = vsel %vm1117_vm2, %v1120_v57, %v1123_v19  ;;  %vm1222_vm15 = vcmp.eq.s32.totalorder %v1220_v7, 0  ;;  %vm1225_vm6 = vcmp.eq.s32.totalorder %v1220_v7, 2 }
 0x211   : > { %3297 = vsinq.f32 %v1422_v51  ;;  %v3290_v4 = vpop.eup %3289  ;;  %v1226_v22 = vxor.u32 2147483648, %v3288_v33  ;;  %2033 = vmatprep.mubr.bf16.mxu0 %v5141_v62  ;;  %2134 = vmatprep.mubr.bf16.mxu1 %v5141_v62  ;;  %v1324_v14 = vand.u32 3, %v1323_v44  ;;  %v1423_v2 = vsel %vm4790_vm12, 0, %v1421_v48 }
 0x212   : > { %v1223_v21 = vxor.u32 2147483648, %v3290_v4  ;;  %v5163_v11 = vand.u32 2147483647, %v4324_v0  ;;  %v1427_v46 = vadd.s32 3, %v1423_v2  ;;  %v1524_v61 = vsub.s32 4, %v4531_v49 }
 0x213   : > { %v1227_v24 = vsel %vm1225_vm6, %v1226_v22, %v3290_v4  ;;  %v3292_v58 = vpop.eup %3291  ;;  %v1125_v23 = vsel %vm1114_vm10, nan, %v1124_v32  ;;  %vm1221_vm3 = vcmp.lt.s32.totalorder %v1220_v7, 2  ;;  %vm1329_vm5 = vcmp.eq.s32.totalorder %v1324_v14, 2 }
 0x214   : > { %vm4816_vm9 = vcmp.le.f32.partialorder %v5163_v11, 0.7853982  ;;  %v1224_v59 = vsel %vm1222_vm15, %v3288_v33, %v1223_v21  ;;  %v3294_v17 = vpop.eup %3293  ;;  %v1330_v20 = vxor.u32 2147483648, %v3292_v58  ;;  %v1428_v10 = vand.u32 3, %v1427_v46 }
 0x215   : > { %v1526_v55 = vsel %vm4816_vm9, %v4324_v0, %v4755_v1  ;;  %v1228_v30 = vsel %vm1221_vm3, %v1224_v59, %v1227_v24  ;;  %v1525_v56 = vsel %vm1440_vm13, %v1524_v61, %v4531_v49  ;;  %v1327_v54 = vxor.u32 2147483648, %v3294_v17 }
 0x216   : > { %3299 = vcosq.f32 %v1526_v55  ;;  %v1229_v1 = vsel %vm1218_vm8, nan, %v1228_v30  ;;  %v1731_v18 = vsel %vm1648_vm0, %v1730_v13, %v4724_v31  ;;  %vm1326_vm7 = vcmp.eq.s32.totalorder %v1324_v14, 0 }
 0x217   : > { %3301 = vsinq.f32 %v1526_v55  ;;  %v1785_v52 = vpack.c.bf16 %v1229_v1, %v1125_v23  ;;  %v1331_v29 = vsel %vm1329_vm5, %v1330_v20, %v3294_v17  ;;  %v1328_v34 = vsel %vm1326_vm7, %v3292_v58, %v1327_v54  ;;  %v3255_v54 = vld [vmem:[#allocation5 + $0x78] sm:$0xff]  }
 0x218   : > { %v1527_v15 = vsel %vm4816_vm9, 0, %v1525_v56  ;;  %v5166_v63 = vand.u32 2147483647, %v5143_v37  ;;  %v1628_v5 = vsub.s32 4, %v5169_v6  ;;  %vm1322_vm4 = vweird.f32 %v4135_v25  ;;  %2949 = vmatprep.subr.bf16.mxu0 %v3255_v54 }
 0x219   : > { %2034 = vmatmul.mubr.bf16.gmra.mrb[12].mxu0 %v1785_v52  ;;  %2135 = vmatmul.mubr.bf16.gmra.mrb[12].mxu1 %v1785_v52  ;;  %vm1325_vm10 = vcmp.lt.s32.totalorder %v1324_v14, 2  ;;  %vm1429_vm14 = vcmp.lt.s32.totalorder %v1428_v10, 2  ;;  %vm1433_vm11 = vcmp.eq.s32.totalorder %v1428_v10, 2  ;;  %v1531_v26 = vadd.s32 3, %v1527_v15  ;;  %v3257_v52 = vld [vmem:[#allocation5 + $0xf8] sm:$0xff]  }
 0x21a   : > { %vm4840_vm13 = vcmp.le.f32.partialorder %v5166_v63, 0.7853982  ;;  %v3296_v53 = vpop.eup %3295  ;;  %2043 = vmatprep.mubr.bf16.mxu0 %v5141_v62  ;;  %2144 = vmatprep.mubr.bf16.mxu1 %v5141_v62  ;;  %v1332_v41 = vsel %vm1325_vm10, %v1328_v34, %v1331_v29  ;;  %v1629_v7 = vsel %vm1544_vm1, %v1628_v5, %v5169_v6  ;;  %v1732_v50 = vsub.s32 4, %v4626_v43  ;;  %v3258_v29 = vld [vmem:[#allocation5 + $0xb8] sm:$0xff]  }
 0x21b   : > { %v1630_v31 = vsel %vm4840_vm13, %v5143_v37, %v4736_v35  ;;  %v3298_v42 = vpop.eup %3297  ;;  %v1434_v36 = vxor.u32 2147483648, %v3296_v53  ;;  %vm1430_vm12 = vcmp.eq.s32.totalorder %v1428_v10, 0  ;;  %v1631_v35 = vsel %vm4840_vm13, 0, %v1629_v7  ;;  %3007 = vmatprep.subr.bf16.mxu1 %v3257_v52 }
 0x21c   : > { %v1431_v27 = vxor.u32 2147483648, %v3298_v42  ;;  %3303 = vcosq.f32 %v1630_v31  ;;  %v5170_v44 = vand.u32 2147483647, %v4312_v38  ;;  %v1333_v40 = vsel %vm1322_vm4, nan, %v1332_v41  ;;  %3008 = vmatpush3.bf16.msra.mxu1 %v3258_v29 }
 0x21d   : > { %v1435_v9 = vsel %vm1433_vm11, %v1434_v36, %v3298_v42  ;;  %3305 = vsinq.f32 %v1630_v31  ;;  %v1733_v19 = vsel %vm1648_vm0, %v1732_v50, %v4626_v43  ;;  %vm1426_vm1 = vweird.f32 %v3983_v45 }
 0x21e   : > { %vm4860_vm2 = vcmp.le.f32.partialorder %v5170_v44, 0.7853982  ;;  %v1432_v60 = vsel %vm1430_vm12, %v3296_v53, %v1431_v27  ;;  %v1532_v8 = vand.u32 3, %v1531_v26  ;;  %v1635_v57 = vadd.s32 3, %v1631_v35 }
 0x21f   : > { %v1436_v28 = vsel %vm1429_vm14, %v1432_v60, %v1435_v9  ;;  %v1734_v51 = vsel %vm4860_vm2, %v4312_v38, %v1731_v18  ;;  %v1735_v33 = vsel %vm4860_vm2, 0, %v1733_v19  ;;  %vm1530_vm9 = vweird.f32 %v4324_v0  ;;  %v3256_v18 = vld [vmem:[#allocation5 + $0x38] sm:$0xff]  }
 0x220   : > { %v3300_v47 = vpop.eup %3299  ;;  %v1437_v13 = vsel %vm1426_vm1, nan, %v1436_v28  ;;  %3307 = vcosq.f32 %v1734_v51  ;;  %vm1534_vm0 = vcmp.eq.s32.totalorder %v1532_v8, 0  ;;  %vm1537_vm8 = vcmp.eq.s32.totalorder %v1532_v8, 2  ;;  %2950 = vmatpush3.bf16.msra.mxu0 %v3256_v18 }
 0x221   : > { %v3302_v25 = vpop.eup %3301  ;;  %v1786_v3 = vpack.c.bf16 %v1437_v13, %v1333_v40  ;;  %v1538_v12 = vxor.u32 2147483648, %v3300_v47  ;;  %3309 = vsinq.f32 %v1734_v51  ;;  %v1636_v45 = vand.u32 3, %v1635_v57 }
 0x222   : > { %v1535_v43 = vxor.u32 2147483648, %v3302_v25  ;;  %v1739_v48 = vadd.s32 3, %v1735_v33  ;;  %vm1533_vm15 = vcmp.lt.s32.totalorder %v1532_v8, 2  ;;  %vm1634_vm7 = vweird.f32 %v5143_v37 }
 0x223   : > { %2044 = vmatmul.mubr.bf16.gmra.mrb[16].mxu0 %v1786_v3  ;;  %2145 = vmatmul.mubr.bf16.gmra.mrb[16].mxu1 %v1786_v3  ;;  %v1539_v32 = vsel %vm1537_vm8, %v1538_v12, %v3302_v25  ;;  %vm1641_vm6 = vcmp.eq.s32.totalorder %v1636_v45, 2  ;;  %vm1638_vm3 = vcmp.eq.s32.totalorder %v1636_v45, 0  ;;  %vm1637_vm5 = vcmp.lt.s32.totalorder %v1636_v45, 2 }
 0x224   : > { %2053 = vmatprep.mubr.bf16.mxu0 %v5141_v62  ;;  %2154 = vmatprep.mubr.bf16.mxu1 %v5141_v62  ;;  %v1536_v4 = vsel %vm1534_vm0, %v3300_v47, %v1535_v43  ;;  %v1740_v11 = vand.u32 3, %v1739_v48  ;;  %vm1738_vm14 = vweird.f32 %v4312_v38  ;;  %v1791_v34 = vlaneseq  ;;  %v1789_v38 = vld [vmem:[%s5037_s3] sm:$0xf] }
 0x225   : > { %v1540_v2 = vsel %vm1533_vm15, %v1536_v4, %v1539_v32 }
 0x226   : > { %v3304_v22 = vpop.eup %3303  ;;  %v1541_v55 = vsel %vm1530_vm9, nan, %v1540_v2  ;;  %vm1745_vm13 = vcmp.eq.s32.totalorder %v1740_v11, 2  ;;  %vm1742_vm4 = vcmp.eq.s32.totalorder %v1740_v11, 0  ;;  %vm1741_vm10 = vcmp.lt.s32.totalorder %v1740_v11, 2 }
 0x227   : > { %v1642_v21 = vxor.u32 2147483648, %v3304_v22  ;;  %v3306_v14 = vpop.eup %3305  ;;  %v1792_v15 = vshrl.u32 %v1791_v34, 7 }
 0x228   : > { %v1639_v16 = vxor.u32 2147483648, %v3306_v14 }
 0x229   : > { %v1643_v24 = vsel %vm1641_vm6, %v1642_v21, %v3306_v14  ;;  %v1793_v63 = vsub.s32 0, %v1792_v15  ;;  %v1801_v49 = vsub.s32 2, %v1792_v15  ;;  %v1805_v6 = vsub.s32 3, %v1792_v15 }
 0x22a   : > { %v3308_v46 = vpop.eup %3307  ;;  %v1640_v58 = vsel %vm1638_vm3, %v3304_v22, %v1639_v16 }
 0x22b   : > { %v3310_v61 = vpop.eup %3309  ;;  %v1746_v23 = vxor.u32 2147483648, %v3308_v46  ;;  %v1644_v59 = vsel %vm1637_vm5, %v1640_v58, %v1643_v24  ;;  %v4886_v5 = vrot.slane %v1789_v38, %v1793_v63  ;;  %v4888_v53 = vrot.slane %v1789_v38, %v1801_v49 }
 0x22c   : > { %v1743_v17 = vxor.u32 2147483648, %v3310_v61  ;;  %v1645_v30 = vsel %vm1634_vm7, nan, %v1644_v59  ;;  %v4892_v42 = vrot.slane %v1789_v38, %v1805_v6 }
 0x22d   : > { %v1747_v20 = vsel %vm1745_vm13, %v1746_v23, %v3310_v61  ;;  %v1787_v10 = vpack.c.bf16 %v1645_v30, %v1541_v55 }
 0x22e   : > { %v1744_v56 = vsel %vm1742_vm4, %v3308_v46, %v1743_v17 }
 0x22f   : > { %v1748_v1 = vsel %vm1741_vm10, %v1744_v56, %v1747_v20  ;;  %2054 = vmatmul.mubr.bf16.gmra.mrb[20].mxu0 %v1787_v10  ;;  %2155 = vmatmul.mubr.bf16.gmra.mrb[20].mxu1 %v1787_v10 }
 0x230   : > { %2063 = vmatprep.mubr.bf16.mxu0 %v5141_v62  ;;  %2164 = vmatprep.mubr.bf16.mxu1 %v5141_v62  ;;  %v1749_v0 = vsel %vm1738_vm14, nan, %v1748_v1  ;;  %v1797_v62 = vsub.s32 1, %v1792_v15 }
 0x231   : > { %v1788_v37 = vpack.c.bf16 %v1749_v0, %v1749_v0 }
 0x232   : > { %v4890_v31 = vrot.slane %v1789_v38, %v1797_v62 }
 0x237   : > { %2064 = vmatmul.mubr.bf16.gmra.mrb[24].mxu0 %v1788_v37  ;;  %2165 = vmatmul.mubr.bf16.gmra.mrb[24].mxu1 %v1788_v37 }
 0x2c6   : > { %v2005_v41 = vpop.f32.mrb[0].mxu0  ;;  %v2106_v36 = vpop.f32.mrb[0].mxu1 }
 0x2c7   : > { %v2006_v7 = vadd.f32 %v2005_v41, %v4886_v5  ;;  %v2107_v27 = vadd.f32 %v2106_v36, %v4888_v53  ;;  %v2007_v26 = vpop.f32.mrb[1].mxu0  ;;  %v2108_v50 = vpop.f32.mrb[1].mxu1 }
 0x2c8   : > { %v2008_v9 = vadd.f32 %v2007_v26, %v4890_v31  ;;  %v2109_v35 = vadd.f32 %v2108_v50, %v4892_v42  ;;  %v2009_v44 = vpop.f32.mrb[2].mxu0  ;;  %v2110_v39 = vpop.f32.mrb[2].mxu1 }
 0x2c9   : > { %v2010_v40 = vadd.f32 %v2009_v44, %v4886_v5  ;;  %v2111_v60 = vadd.f32 %v2110_v39, %v4888_v53  ;;  %v2011_v19 = vpop.f32.mrb[3].mxu0  ;;  %v2112_v47 = vpop.f32.mrb[3].mxu1  ;;  %v2173_v13 = vmax.f32 %v2006_v7, 0.0  ;;  %v2175_v8 = vmax.f32 %v2107_v27, 0.0 }
 0x2ca   : > { %v2012_v28 = vadd.f32 %v2011_v19, %v4890_v31  ;;  %v2113_v51 = vadd.f32 %v2112_v47, %v4892_v42  ;;  %v2174_v3 = vmax.f32 %v2008_v9, 0.0  ;;  %v2176_v12 = vmax.f32 %v2109_v35, 0.0 }
 0x2cb   : > { %v2177_v57 = vmax.f32 %v2010_v40, 0.0  ;;  %v2179_v25 = vmax.f32 %v2111_v60, 0.0 }
 0x2cc   : > { %v2178_v33 = vmax.f32 %v2012_v28, 0.0  ;;  %v2180_v43 = vmax.f32 %v2113_v51, 0.0 }
 0x2cd   : > { %v2289_v45 = vpack.c.bf16 %v2177_v57, %v2173_v13  ;;  %v2291_v48 = vpack.c.bf16 %v2179_v25, %v2175_v8 }
 0x2ce   : > { %v2290_v4 = vpack.c.bf16 %v2178_v33, %v2174_v3  ;;  %v2292_v32 = vpack.c.bf16 %v2180_v43, %v2176_v12 }
 0x2d0   : > { %2548 = vmatprep.mubr.bf16.mxu0 %v2290_v4  ;;  %2636 = vmatprep.mubr.bf16.mxu1 %v2292_v32 }
 0x2d1   : > { %2549 = vmatmul.mubr.bf16.vlgmr.msra.gmra.mrb[28].mxu0 %v2289_v45  ;;  %2637 = vmatmul.mubr.bf16.vlgmr.msra.gmra.mrb[28].mxu1 %v2291_v48 }
 0x2d2   : > { %v2015_v22 = vpop.f32.mrb[4].mxu0  ;;  %v2116_v21 = vpop.f32.mrb[4].mxu1 }
 0x2d3   : > { %v2016_v14 = vadd.f32 %v2015_v22, %v4886_v5  ;;  %v2117_v2 = vadd.f32 %v2116_v21, %v4888_v53  ;;  %v2017_v11 = vpop.f32.mrb[5].mxu0  ;;  %v2118_v16 = vpop.f32.mrb[5].mxu1 }
 0x2d4   : > { %v2018_v24 = vadd.f32 %v2017_v11, %v4890_v31  ;;  %v2119_v46 = vadd.f32 %v2118_v16, %v4892_v42  ;;  %v2019_v61 = vpop.f32.mrb[6].mxu0  ;;  %v2120_v55 = vpop.f32.mrb[6].mxu1 }
 0x2d5   : > { %v2020_v58 = vadd.f32 %v2019_v61, %v4886_v5  ;;  %v2121_v23 = vadd.f32 %v2120_v55, %v4888_v53  ;;  %v2021_v59 = vpop.f32.mrb[7].mxu0  ;;  %v2122_v17 = vpop.f32.mrb[7].mxu1  ;;  %v2181_v10 = vmax.f32 %v2016_v14, 0.0  ;;  %v2183_v56 = vmax.f32 %v2117_v2, 0.0 }
 0x2d6   : > { %v2022_v30 = vadd.f32 %v2021_v59, %v4890_v31  ;;  %v2123_v20 = vadd.f32 %v2122_v17, %v4892_v42  ;;  %v2182_v37 = vmax.f32 %v2018_v24, 0.0  ;;  %v2184_v54 = vmax.f32 %v2119_v46, 0.0 }
 0x2d7   : > { %v2185_v1 = vmax.f32 %v2020_v58, 0.0  ;;  %v2187_v0 = vmax.f32 %v2121_v23, 0.0 }
 0x2d8   : > { %v2186_v18 = vmax.f32 %v2022_v30, 0.0  ;;  %v2188_v52 = vmax.f32 %v2123_v20, 0.0 }
 0x2d9   : > { %v2293_v29 = vpack.c.bf16 %v2185_v1, %v2181_v10  ;;  %v2295_v34 = vpack.c.bf16 %v2187_v0, %v2183_v56 }
 0x2da   : > { %v2294_v15 = vpack.c.bf16 %v2186_v18, %v2182_v37  ;;  %v2296_v63 = vpack.c.bf16 %v2188_v52, %v2184_v54 }
 0x2dc   : > { %2556 = vmatprep.mubr.bf16.mxu0 %v2294_v15  ;;  %2644 = vmatprep.mubr.bf16.mxu1 %v2296_v63 }
 0x2dd   : > { %2557 = vmatmul.mubr.bf16.gmra.mrb[32].mxu0 %v2293_v29  ;;  %2645 = vmatmul.mubr.bf16.gmra.mrb[32].mxu1 %v2295_v34 }
 0x2e3   : > { %v2025_v49 = vpop.f32.mrb[8].mxu0  ;;  %v2126_v38 = vpop.f32.mrb[8].mxu1 }
 0x2e4   : > { %v2026_v62 = vadd.f32 %v2025_v49, %v4886_v5  ;;  %v2127_v6 = vadd.f32 %v2126_v38, %v4888_v53  ;;  %v2027_v41 = vpop.f32.mrb[9].mxu0  ;;  %v2128_v36 = vpop.f32.mrb[9].mxu1 }
 0x2e5   : > { %v2028_v7 = vadd.f32 %v2027_v41, %v4890_v31  ;;  %v2129_v27 = vadd.f32 %v2128_v36, %v4892_v42  ;;  %v2029_v26 = vpop.f32.mrb[10].mxu0  ;;  %v2130_v50 = vpop.f32.mrb[10].mxu1 }
 0x2e6   : > { %v2030_v9 = vadd.f32 %v2029_v26, %v4886_v5  ;;  %v2131_v35 = vadd.f32 %v2130_v50, %v4888_v53  ;;  %v2031_v44 = vpop.f32.mrb[11].mxu0  ;;  %v2132_v39 = vpop.f32.mrb[11].mxu1  ;;  %v2189_v19 = vmax.f32 %v2026_v62, 0.0  ;;  %v2191_v47 = vmax.f32 %v2127_v6, 0.0 }
 0x2e7   : > { %v2032_v40 = vadd.f32 %v2031_v44, %v4890_v31  ;;  %v2133_v60 = vadd.f32 %v2132_v39, %v4892_v42  ;;  %v2190_v13 = vmax.f32 %v2028_v7, 0.0  ;;  %v2192_v8 = vmax.f32 %v2129_v27, 0.0 }
 0x2e8   : > { %v2193_v28 = vmax.f32 %v2030_v9, 0.0  ;;  %v2195_v51 = vmax.f32 %v2131_v35, 0.0 }
 0x2e9   : > { %v2194_v57 = vmax.f32 %v2032_v40, 0.0  ;;  %v2196_v25 = vmax.f32 %v2133_v60, 0.0 }
 0x2ea   : > { %v2297_v3 = vpack.c.bf16 %v2193_v28, %v2189_v19  ;;  %v2299_v12 = vpack.c.bf16 %v2195_v51, %v2191_v47 }
 0x2eb   : > { %v2298_v33 = vpack.c.bf16 %v2194_v57, %v2190_v13  ;;  %v2300_v43 = vpack.c.bf16 %v2196_v25, %v2192_v8 }
 0x2ec   : > { %v2035_v45 = vpop.f32.mrb[12].mxu0  ;;  %v2136_v48 = vpop.f32.mrb[12].mxu1 }
 0x2ed   : > { %v2036_v4 = vadd.f32 %v2035_v45, %v4886_v5  ;;  %v2137_v32 = vadd.f32 %v2136_v48, %v4888_v53  ;;  %v2037_v22 = vpop.f32.mrb[13].mxu0  ;;  %v2138_v21 = vpop.f32.mrb[13].mxu1  ;;  %2564 = vmatprep.mubr.bf16.mxu0 %v2298_v33  ;;  %2652 = vmatprep.mubr.bf16.mxu1 %v2300_v43 }
 0x2ee   : > { %v2038_v14 = vadd.f32 %v2037_v22, %v4890_v31  ;;  %v2139_v2 = vadd.f32 %v2138_v21, %v4892_v42  ;;  %v2039_v11 = vpop.f32.mrb[14].mxu0  ;;  %v2140_v16 = vpop.f32.mrb[14].mxu1  ;;  %2565 = vmatmul.mubr.bf16.gmra.mrb[36].mxu0 %v2297_v3  ;;  %2653 = vmatmul.mubr.bf16.gmra.mrb[36].mxu1 %v2299_v12 }
 0x2ef   : > { %v2040_v24 = vadd.f32 %v2039_v11, %v4886_v5  ;;  %v2141_v46 = vadd.f32 %v2140_v16, %v4888_v53  ;;  %v2041_v61 = vpop.f32.mrb[15].mxu0  ;;  %v2142_v55 = vpop.f32.mrb[15].mxu1  ;;  %v2197_v59 = vmax.f32 %v2036_v4, 0.0  ;;  %v2199_v17 = vmax.f32 %v2137_v32, 0.0 }
 0x2f0   : > { %v2042_v58 = vadd.f32 %v2041_v61, %v4890_v31  ;;  %v2143_v23 = vadd.f32 %v2142_v55, %v4892_v42  ;;  %v2198_v10 = vmax.f32 %v2038_v14, 0.0  ;;  %v2200_v56 = vmax.f32 %v2139_v2, 0.0 }
 0x2f1   : > { %v2201_v30 = vmax.f32 %v2040_v24, 0.0  ;;  %v2203_v20 = vmax.f32 %v2141_v46, 0.0 }
 0x2f2   : > { %v2202_v1 = vmax.f32 %v2042_v58, 0.0  ;;  %v2204_v0 = vmax.f32 %v2143_v23, 0.0 }
 0x2f3   : > { %v2301_v37 = vpack.c.bf16 %v2201_v30, %v2197_v59  ;;  %v2303_v54 = vpack.c.bf16 %v2203_v20, %v2199_v17 }
 0x2f4   : > { %v2302_v18 = vpack.c.bf16 %v2202_v1, %v2198_v10  ;;  %v2304_v52 = vpack.c.bf16 %v2204_v0, %v2200_v56 }
 0x2f6   : > { %v2045_v29 = vpop.f32.mrb[16].mxu0  ;;  %v2146_v34 = vpop.f32.mrb[16].mxu1  ;;  %2572 = vmatprep.mubr.bf16.mxu0 %v2302_v18  ;;  %2660 = vmatprep.mubr.bf16.mxu1 %v2304_v52 }
 0x2f7   : > { %v2046_v15 = vadd.f32 %v2045_v29, %v4886_v5  ;;  %v2147_v63 = vadd.f32 %v2146_v34, %v4888_v53  ;;  %v2047_v49 = vpop.f32.mrb[17].mxu0  ;;  %v2148_v38 = vpop.f32.mrb[17].mxu1  ;;  %2573 = vmatmul.mubr.bf16.gmra.mrb[40].mxu0 %v2301_v37  ;;  %2661 = vmatmul.mubr.bf16.gmra.mrb[40].mxu1 %v2303_v54 }
 0x2f8   : > { %v2048_v62 = vadd.f32 %v2047_v49, %v4890_v31  ;;  %v2149_v6 = vadd.f32 %v2148_v38, %v4892_v42  ;;  %v2049_v41 = vpop.f32.mrb[18].mxu0  ;;  %v2150_v36 = vpop.f32.mrb[18].mxu1 }
 0x2f9   : > { %v2050_v7 = vadd.f32 %v2049_v41, %v4886_v5  ;;  %v2151_v27 = vadd.f32 %v2150_v36, %v4888_v53  ;;  %v2051_v26 = vpop.f32.mrb[19].mxu0  ;;  %v2152_v50 = vpop.f32.mrb[19].mxu1  ;;  %v2205_v44 = vmax.f32 %v2046_v15, 0.0  ;;  %v2207_v39 = vmax.f32 %v2147_v63, 0.0 }
 0x2fa   : > { %v2052_v9 = vadd.f32 %v2051_v26, %v4890_v31  ;;  %v2153_v35 = vadd.f32 %v2152_v50, %v4892_v42  ;;  %v2206_v19 = vmax.f32 %v2048_v62, 0.0  ;;  %v2208_v47 = vmax.f32 %v2149_v6, 0.0 }
 0x2fb   : > { %v2209_v40 = vmax.f32 %v2050_v7, 0.0  ;;  %v2211_v60 = vmax.f32 %v2151_v27, 0.0 }
 0x2fc   : > { %v2210_v28 = vmax.f32 %v2052_v9, 0.0  ;;  %v2212_v51 = vmax.f32 %v2153_v35, 0.0  ;;  %v4950_v9 = vld [vmem:[%s5039_s5] ss:$0 sm:$0xff] }
 0x2fd   : > { %v2305_v13 = vpack.c.bf16 %v2209_v40, %v2205_v44  ;;  %v2307_v8 = vpack.c.bf16 %v2211_v60, %v2207_v39 }
 0x2fe   : > { %v2306_v57 = vpack.c.bf16 %v2210_v28, %v2206_v19  ;;  %v2308_v25 = vpack.c.bf16 %v2212_v51, %v2208_v47 }
 0x300   : > { %2580 = vmatprep.mubr.bf16.mxu0 %v2306_v57  ;;  %2668 = vmatprep.mubr.bf16.mxu1 %v2308_v25 }
 0x301   : > { %2581 = vmatmul.mubr.bf16.gmra.mrb[44].mxu0 %v2305_v13  ;;  %2669 = vmatmul.mubr.bf16.gmra.mrb[44].mxu1 %v2307_v8 }
 0x302   : > { %v2055_v3 = vpop.f32.mrb[20].mxu0  ;;  %v2156_v12 = vpop.f32.mrb[20].mxu1 }
 0x303   : > { %v2056_v33 = vadd.f32 %v2055_v3, %v4886_v5  ;;  %v2157_v43 = vadd.f32 %v2156_v12, %v4888_v53  ;;  %v2057_v45 = vpop.f32.mrb[21].mxu0  ;;  %v2158_v48 = vpop.f32.mrb[21].mxu1 }
 0x304   : > { %v2058_v4 = vadd.f32 %v2057_v45, %v4890_v31  ;;  %v2159_v32 = vadd.f32 %v2158_v48, %v4892_v42  ;;  %v2059_v22 = vpop.f32.mrb[22].mxu0  ;;  %v2160_v21 = vpop.f32.mrb[22].mxu1 }
 0x305   : > { %v2060_v14 = vadd.f32 %v2059_v22, %v4886_v5  ;;  %v2161_v2 = vadd.f32 %v2160_v21, %v4888_v53  ;;  %v2061_v11 = vpop.f32.mrb[23].mxu0  ;;  %v2162_v16 = vpop.f32.mrb[23].mxu1  ;;  %v2213_v61 = vmax.f32 %v2056_v33, 0.0  ;;  %v2215_v55 = vmax.f32 %v2157_v43, 0.0 }
 0x306   : > { %v2062_v24 = vadd.f32 %v2061_v11, %v4890_v31  ;;  %v2163_v46 = vadd.f32 %v2162_v16, %v4892_v42  ;;  %v2214_v59 = vmax.f32 %v2058_v4, 0.0  ;;  %v2216_v17 = vmax.f32 %v2159_v32, 0.0 }
 0x307   : > { %v2217_v58 = vmax.f32 %v2060_v14, 0.0  ;;  %v2219_v23 = vmax.f32 %v2161_v2, 0.0 }
 0x308   : > { %v2218_v30 = vmax.f32 %v2062_v24, 0.0  ;;  %v2220_v20 = vmax.f32 %v2163_v46, 0.0 }
 0x309   : > { %v2309_v10 = vpack.c.bf16 %v2217_v58, %v2213_v61  ;;  %v2311_v56 = vpack.c.bf16 %v2219_v23, %v2215_v55 }
 0x30a   : > { %v2310_v1 = vpack.c.bf16 %v2218_v30, %v2214_v59  ;;  %v2312_v0 = vpack.c.bf16 %v2220_v20, %v2216_v17  ;;  %v2065_v37 = vpop.f32.mrb[24].mxu0  ;;  %v2166_v54 = vpop.f32.mrb[24].mxu1 }
 0x30b   : > { %v2066_v18 = vadd.f32 %v2065_v37, %v4886_v5  ;;  %v2167_v52 = vadd.f32 %v2166_v54, %v4888_v53  ;;  %v2067_v29 = vpop.f32.mrb[25].mxu0  ;;  %v2168_v34 = vpop.f32.mrb[25].mxu1 }
 0x30c   : > { %v2068_v15 = vadd.f32 %v2067_v29, %v4890_v31  ;;  %v2169_v63 = vadd.f32 %v2168_v34, %v4892_v42  ;;  %v2069_v49 = vpop.f32.mrb[26].mxu0  ;;  %v2170_v38 = vpop.f32.mrb[26].mxu1  ;;  %2588 = vmatprep.mubr.bf16.mxu0 %v2310_v1  ;;  %2676 = vmatprep.mubr.bf16.mxu1 %v2312_v0 }
 0x30d   : > { %v2070_v62 = vpop.f32.mrb[27].mxu0  ;;  %v2171_v6 = vpop.f32.mrb[27].mxu1  ;;  %2589 = vmatmul.mubr.bf16.gmra.mrb[48].mxu0 %v2309_v10  ;;  %2677 = vmatmul.mubr.bf16.gmra.mrb[48].mxu1 %v2311_v56  ;;  %v2221_v5 = vmax.f32 %v2066_v18, 0.0  ;;  %v2223_v53 = vmax.f32 %v2167_v52, 0.0 }
 0x30e   : > { %v2222_v41 = vmax.f32 %v2068_v15, 0.0  ;;  %v2224_v36 = vmax.f32 %v2169_v63, 0.0 }
 0x30f   : > { %v2313_v31 = vpack.c.bf16 %v2221_v5, %v2221_v5  ;;  %v2315_v42 = vpack.c.bf16 %v2223_v53, %v2223_v53 }
 0x310   : > { %v2314_v7 = vpack.c.bf16 %v2222_v41, %v2222_v41  ;;  %v2316_v27 = vpack.c.bf16 %v2224_v36, %v2224_v36 }
 0x312   : > { %2596 = vmatprep.mubr.bf16.mxu0 %v2314_v7  ;;  %2684 = vmatprep.mubr.bf16.mxu1 %v2316_v27 }
 0x315   : > { %2597 = vmatmul.mubr.bf16.gmra.mrb[52].mxu0 %v2313_v31  ;;  %2685 = vmatmul.mubr.bf16.gmra.mrb[52].mxu1 %v2315_v42 }
 0x3a4   : > { %v2951_v26 = vpop.f32.mrb[28].mxu0  ;;  %v3009_v50 = vpop.f32.mrb[28].mxu1 }
 0x3a5   : > { %v2952_v35 = vpop.f32.mrb[29].mxu0  ;;  %v3010_v44 = vpop.f32.mrb[29].mxu1 }
 0x3a6   : > { %v2953_v39 = vadd.f32 %v2952_v35, %v2951_v26  ;;  %v3011_v40 = vadd.f32 %v3010_v44, %v3009_v50  ;;  %v2954_v60 = vpop.f32.mrb[30].mxu0  ;;  %v3012_v19 = vpop.f32.mrb[30].mxu1 }
 0x3a7   : > { %v2955_v47 = vpop.f32.mrb[31].mxu0  ;;  %v3013_v28 = vpop.f32.mrb[31].mxu1 }
 0x3a8   : > { %v2551_v51 = vadd.f32 %v2953_v39, %v4950_v9  ;;  %v2956_v13 = vadd.f32 %v2955_v47, %v2954_v60  ;;  %v3014_v8 = vadd.f32 %v3013_v28, %v3012_v19 }
 0x3aa   : > { %v2639_v57 = vadd.f32 %v3011_v40, %v2551_v51  ;;  %v2554_v25 = vadd.f32 %v2956_v13, %v4950_v9 }
 0x3ac   : > { %2692 = vst [vmem:[%s4956_s17] sm:$0xff] %v2639_v57  ;;  %v2642_v3 = vadd.f32 %v3014_v8, %v2554_v25 }
 0x3ae   : > { %2693 = vst [vmem:[%s4956_s17 + $0x8] sm:$0xff] %v2642_v3 }
 0x3b0   : > { %v2957_v12 = vpop.f32.mrb[32].mxu0  ;;  %v3015_v33 = vpop.f32.mrb[32].mxu1 }
 0x3b1   : > { %v2958_v43 = vpop.f32.mrb[33].mxu0  ;;  %v3016_v45 = vpop.f32.mrb[33].mxu1 }
 0x3b2   : > { %v2959_v48 = vadd.f32 %v2958_v43, %v2957_v12  ;;  %v3017_v4 = vadd.f32 %v3016_v45, %v3015_v33  ;;  %v2960_v32 = vpop.f32.mrb[34].mxu0  ;;  %v3018_v22 = vpop.f32.mrb[34].mxu1 }
 0x3b3   : > { %v2961_v21 = vpop.f32.mrb[35].mxu0  ;;  %v3019_v14 = vpop.f32.mrb[35].mxu1 }
 0x3b4   : > { %v2559_v2 = vadd.f32 %v2959_v48, %v4950_v9  ;;  %v2962_v11 = vadd.f32 %v2961_v21, %v2960_v32  ;;  %v3020_v16 = vadd.f32 %v3019_v14, %v3018_v22 }
 0x3b6   : > { %v2647_v24 = vadd.f32 %v3017_v4, %v2559_v2  ;;  %v2562_v46 = vadd.f32 %v2962_v11, %v4950_v9 }
 0x3b8   : > { %2694 = vst [vmem:[%s4956_s17 + $0x10] sm:$0xff] %v2647_v24  ;;  %v2650_v61 = vadd.f32 %v3020_v16, %v2562_v46 }
 0x3ba   : > { %2695 = vst [vmem:[%s4956_s17 + $0x18] sm:$0xff] %v2650_v61 }
 0x3c1   : > { %v2963_v55 = vpop.f32.mrb[36].mxu0  ;;  %v3021_v58 = vpop.f32.mrb[36].mxu1 }
 0x3c2   : > { %v2964_v23 = vpop.f32.mrb[37].mxu0  ;;  %v3022_v59 = vpop.f32.mrb[37].mxu1 }
 0x3c3   : > { %v2965_v17 = vadd.f32 %v2964_v23, %v2963_v55  ;;  %v3023_v30 = vadd.f32 %v3022_v59, %v3021_v58  ;;  %v2966_v20 = vpop.f32.mrb[38].mxu0  ;;  %v3024_v10 = vpop.f32.mrb[38].mxu1 }
 0x3c4   : > { %v2967_v56 = vpop.f32.mrb[39].mxu0  ;;  %v3025_v1 = vpop.f32.mrb[39].mxu1 }
 0x3c5   : > { %v2567_v0 = vadd.f32 %v2965_v17, %v4950_v9  ;;  %v2968_v37 = vadd.f32 %v2967_v56, %v2966_v20  ;;  %v3026_v54 = vadd.f32 %v3025_v1, %v3024_v10 }
 0x3c7   : > { %v2655_v18 = vadd.f32 %v3023_v30, %v2567_v0  ;;  %v2570_v52 = vadd.f32 %v2968_v37, %v4950_v9 }
 0x3c9   : > { %2696 = vst [vmem:[%s4956_s17 + $0x20] sm:$0xff] %v2655_v18  ;;  %v2658_v29 = vadd.f32 %v3026_v54, %v2570_v52 }
 0x3ca   : > { %v2969_v34 = vpop.f32.mrb[40].mxu0  ;;  %v3027_v15 = vpop.f32.mrb[40].mxu1 }
 0x3cb   : > { %v2970_v63 = vpop.f32.mrb[41].mxu0  ;;  %v3028_v49 = vpop.f32.mrb[41].mxu1  ;;  %2697 = vst [vmem:[%s4956_s17 + $0x28] sm:$0xff] %v2658_v29 }
 0x3cc   : > { %v2971_v38 = vadd.f32 %v2970_v63, %v2969_v34  ;;  %v3029_v62 = vadd.f32 %v3028_v49, %v3027_v15  ;;  %v2972_v6 = vpop.f32.mrb[42].mxu0  ;;  %v3030_v41 = vpop.f32.mrb[42].mxu1 }
 0x3cd   : > { %v2973_v36 = vpop.f32.mrb[43].mxu0  ;;  %v3031_v5 = vpop.f32.mrb[43].mxu1 }
 0x3ce   : > { %v2575_v53 = vadd.f32 %v2971_v38, %v4950_v9  ;;  %v2974_v7 = vadd.f32 %v2973_v36, %v2972_v6  ;;  %v3032_v27 = vadd.f32 %v3031_v5, %v3030_v41 }
 0x3d0   : > { %v2663_v31 = vadd.f32 %v3029_v62, %v2575_v53  ;;  %v2578_v42 = vadd.f32 %v2974_v7, %v4950_v9 }
 0x3d2   : > { %2698 = vst [vmem:[%s4956_s17 + $0x30] sm:$0xff] %v2663_v31  ;;  %v2666_v26 = vadd.f32 %v3032_v27, %v2578_v42 }
 0x3d4   : > { %v2975_v50 = vpop.f32.mrb[44].mxu0  ;;  %v3033_v35 = vpop.f32.mrb[44].mxu1  ;;  %2699 = vst [vmem:[%s4956_s17 + $0x38] sm:$0xff] %v2666_v26 }
 0x3d5   : > { %v2976_v44 = vpop.f32.mrb[45].mxu0  ;;  %v3034_v39 = vpop.f32.mrb[45].mxu1 }
 0x3d6   : > { %v2977_v40 = vadd.f32 %v2976_v44, %v2975_v50  ;;  %v3035_v60 = vadd.f32 %v3034_v39, %v3033_v35  ;;  %v2978_v19 = vpop.f32.mrb[46].mxu0  ;;  %v3036_v47 = vpop.f32.mrb[46].mxu1 }
 0x3d7   : > { %v2979_v28 = vpop.f32.mrb[47].mxu0  ;;  %v3037_v51 = vpop.f32.mrb[47].mxu1 }
 0x3d8   : > { %v2583_v13 = vadd.f32 %v2977_v40, %v4950_v9  ;;  %v2980_v8 = vadd.f32 %v2979_v28, %v2978_v19  ;;  %v3038_v57 = vadd.f32 %v3037_v51, %v3036_v47 }
 0x3da   : > { %v2671_v25 = vadd.f32 %v3035_v60, %v2583_v13  ;;  %v2586_v3 = vadd.f32 %v2980_v8, %v4950_v9 }
 0x3dc   : > { %2700 = vst [vmem:[%s4956_s17 + $0x40] sm:$0xff] %v2671_v25  ;;  %v2674_v12 = vadd.f32 %v3038_v57, %v2586_v3 }
 0x3de   : > { %2701 = vst [vmem:[%s4956_s17 + $0x48] sm:$0xff] %v2674_v12 }
 0x3e0   : > { %v2981_v33 = vpop.f32.mrb[48].mxu0  ;;  %v3039_v43 = vpop.f32.mrb[48].mxu1 }
 0x3e1   : > { %v2982_v45 = vpop.f32.mrb[49].mxu0  ;;  %v3040_v48 = vpop.f32.mrb[49].mxu1 }
 0x3e2   : > { %v2983_v4 = vadd.f32 %v2982_v45, %v2981_v33  ;;  %v3041_v32 = vadd.f32 %v3040_v48, %v3039_v43  ;;  %v2984_v22 = vpop.f32.mrb[50].mxu0  ;;  %v3042_v21 = vpop.f32.mrb[50].mxu1 }
 0x3e3   : > { %v2985_v14 = vpop.f32.mrb[51].mxu0  ;;  %v3043_v2 = vpop.f32.mrb[51].mxu1 }
 0x3e4   : > { %v2591_v11 = vadd.f32 %v2983_v4, %v4950_v9  ;;  %v2986_v16 = vadd.f32 %v2985_v14, %v2984_v22  ;;  %v3044_v24 = vadd.f32 %v3043_v2, %v3042_v21 }
 0x3e6   : > { %v2679_v46 = vadd.f32 %v3041_v32, %v2591_v11  ;;  %v2594_v61 = vadd.f32 %v2986_v16, %v4950_v9 }
 0x3e8   : > { %2702 = vst [vmem:[%s4956_s17 + $0x50] sm:$0xff] %v2679_v46  ;;  %v2682_v55 = vadd.f32 %v3044_v24, %v2594_v61  ;;  %v2987_v58 = vpop.f32.mrb[52].mxu0  ;;  %v3045_v23 = vpop.f32.mrb[52].mxu1 }
 0x3e9   : > { %v2988_v59 = vpop.f32.mrb[53].mxu0  ;;  %v3046_v17 = vpop.f32.mrb[53].mxu1 }
 0x3ea   : > { %2703 = vst [vmem:[%s4956_s17 + $0x58] sm:$0xff] %v2682_v55  ;;  %v2989_v30 = vadd.f32 %v2988_v59, %v2987_v58  ;;  %v3047_v20 = vadd.f32 %v3046_v17, %v3045_v23  ;;  %v2990_v10 = vpop.f32.mrb[54].mxu0  ;;  %v3048_v56 = vpop.f32.mrb[54].mxu1 }
 0x3eb   : > { %v2991_v1 = vpop.f32.mrb[55].mxu0  ;;  %v3049_v0 = vpop.f32.mrb[55].mxu1 }
 0x3ec   : > { %v2599_v37 = vadd.f32 %v2989_v30, %v4950_v9 }
 0x3ee   : > { %v2687_v54 = vadd.f32 %v3047_v20, %v2599_v37 }
 0x3f0   : > { %2704 = vst [vmem:[%s4956_s17 + $0x60] sm:$0xff] %v2687_v54 }
 0x3f1   : > { %3382 = shalt.err (!%p3379_p11)
}
 0x3f2   : > { %s3383_s15 = scalar_lea.hbm %s4988_s28, 1664  ;;  %s3387_s14 = scalar_lea.hbm %s5040_s6, 3328 }
 0x3f3   : > { %p3384_p13 = scmp.ne.s32.totalorder %s4988_s28, %s3383_s15  ;;  %p3388_p6 = scmp.lt.u32.totalorder %s4988_s28, %s5040_s6 }
 0x3f4   : > { %p3389_p9 = scmp.lt.u32.totalorder %s3387_s14, %s3383_s15  ;;  %p3391_p10 = scmp.lt.u32.totalorder %s3383_s15, %s4988_s28 }
 0x3f5   : > { %p3385_p0 = pnand %p3384_p13, %p5173_p1 }
 0x3f6   : > { %p3390_p12 = por %p3389_p9, %p3388_p6 }
 0x3f7   : > { %p3386_p5 = pneg %p3385_p0 }
 0x3f8   : > { %p3392_p2 = por %p3391_p10, %p3390_p12 }
 0x3fa   : > { %p3393_p3 = pnand %p3392_p2, %p3386_p5 }
 0x3fc   : > { %3396 = shalt.err (!%p3393_p3)
}
 0x3fd   : > { %s3455_s18 = smov 128   ;;  %s3456_s20 = smov 8  }
 0x3fe   : > { %3112 = dma.vmem_to_hbm [thread:$0]  (%p5173_p1), %s4983_s19, 1664, %s4988_s28, %s4993_s11, %s3455_s18, %s3455_s18, %s3456_s20  }
 0x3ff PF: > { %p3129_p4 = scmp.ge.s32.totalorder %s3439_s24, 2  ;;  %s2734_s26 = sand.u32 1, %s3427_s21  }
 0x400   : > { %p5174_p7 = scmp.ne.s32.totalorder %s5087_s8, 0  ;;  %s2735_s25 = scalar_lea.sflag [#allocation4], %s2734_s26 }
 0x402   : > { %p3122_p8 = pnand %p3129_p4, %p5174_p7 }
 0x404   : > { %3422 = dma.done.wait (!%p3122_p8), %s2735_s25, 1664  }
 0x405   : > { %3424 = vsyncadd (!%p3122_p8), %s2735_s25, 4294965632  ;;  %p18_p11 = scmp.ge.s32.totalorder %s3517_s27, 4   ;;  %s5175_s21 = smov %s3431_s22 }
 0x406   : > { %s5176_s22 = smov %s3435_s23  ;;  %s5177_s23 = smov %s3528_s30 }
 0x407   : > { %s5178_s24 = smov %s3517_s27  ;;  %20 = sbr.rel (!%p18_p11) target bundleno = 5 (0x5), region = 88 }
 0x40e   :  { %2740 = vsyncpa [#allocation3], 1 }
 0x40f   :  { %2742 = vsyncpa [#allocation3 + $0x1], 1 }
 0x410   :  { %2743 = vsyncpa [#allocation6], 1 }
 0x411   :  { %2744 = vsyncpa [#allocation4], 1 }
 0x412   :  { %2746 = vsyncpa [#allocation4 + $0x1], 1 }

</bundles_post_ra>
